<compile_context>
chip_gen: v5e
topology: v5e:2x2
jax: 0.10.0
libtpu: 0.0.40
codegen_flags: <defaults>
</compile_context>

<pallas_src>
import math
import functools

import numpy as np
import jax
import jax.numpy as jnp
from jax.experimental import pallas as pl
from jax.experimental.pallas import tpu as pltpu

BN_EPS = 1e-5
CARDINALITY = 32        # BottleneckX.cardinality
LANES = 128


def _round_up(v, m):
    return (v + m - 1) // m * m


# ------------------------------ Pallas kernel ------------------------------- #

def _bottleneckx_kernel(*refs, H, W, d, g, has_residual):
    """One image per grid step.

    refs = (x[, residual], w1, b1, w2, b2, w3, b3, out, pad_scratch)
      x / residual / out : (1, H*W, Cp)     x bf16, residual/out f32
      w1 : (Cp, g*Cp) bf16   -- conv1 weight, BN1 scale folded, g column-permuted copies
      b1 : (1, g*Cp)  f32    -- folded BN1 bias (permuted per copy)
      w2 : (9, g, 1, Cp) f32 -- grouped 3x3 weight as per-(tap, rotation) lane vectors
      b2 : (1, Cp)    f32
      w3 : (Cp, Cp)   bf16   -- conv3 weight, BN3 scale folded
      b3 : (1, Cp)    f32
      pad_scratch : VMEM (g, H+2d, W+2d, Cp) f32
    """
    if has_residual:
        (x_ref, r_ref, w1_ref, b1_ref, w2_ref, b2_ref, w3_ref, b3_ref,
         o_ref, pad_ref) = refs
    else:
        (x_ref, w1_ref, b1_ref, w2_ref, b2_ref, w3_ref, b3_ref,
         o_ref, pad_ref) = refs
        r_ref = None

    HW = H * W
    Cp = o_ref.shape[-1]
    Wp = W + 2 * d

    x = x_ref[0]                                                   # (HW, Cp) bf16

    # ---- conv1 (1x1) + bn1 + relu, producing all g within-group rotations ----
    # One wide MXU matmul (N = g*128 lanes, fully lane-dense on v6e/v7x).
    y1 = jnp.dot(x, w1_ref[...], preferred_element_type=jnp.float32)   # (HW, g*Cp)
    y1 = jnp.maximum(y1 + b1_ref[...], 0.0)

    # ---- stage the rotations, zero-padded by `d` spatially, into VMEM scratch ----
    # Full-slot aligned stores (padding built by concatenation) -> no border
    # bookkeeping, safe under megacore "parallel" grid splitting.
    zc = jnp.zeros((H, d, Cp), jnp.float32)
    zr = jnp.zeros((d, Wp, Cp), jnp.float32)
    for r in range(g):
        y1r = y1[:, r * Cp:(r + 1) * Cp].reshape(H, W, Cp)
        pw = jnp.concatenate([zc, y1r, zc], axis=1)                # (H, Wp, Cp)
        pad_ref[r] = jnp.concatenate([zr, pw, zr], axis=0)         # (H+2d, Wp, Cp)

    # ---- conv2 (3x3, groups=cardinality, padding=dilation) + bn2 + relu -------
    # Pure VPU: per tap and per rotation, a lane-broadcast multiply-accumulate.
    # (For large group width g the 9 dense MXU matmuls become competitive again;
    #  DLA uses g = planes/32 <= 32, and the demo uses g = 2.)
    acc = None
    for di in (-1, 0, 1):
        r0 = d * (1 + di)                     # row offset into the padded scratch
        for dj in (-1, 0, 1):
            c0 = d * (1 + dj)                 # col offset into the padded scratch
            t = (di + 1) * 3 + (dj + 1)       # tap index = kh*3 + kw
            for r in range(g):
                rows = pad_ref[r, pl.ds(r0, H), :, :]              # (H, Wp, Cp)
                win = rows[:, c0:c0 + W, :]                        # (H, W, Cp)
                term = win * w2_ref[t, r]                          # (1, Cp) lane bcast
                acc = term if acc is None else acc + term
    y2 = jnp.maximum(acc + b2_ref[...], 0.0)                       # (H, W, Cp) f32
    y2 = y2.reshape(HW, Cp).astype(jnp.bfloat16)

    # ---- conv3 (1x1) + bn3 + residual + relu ---------------------------------
    y3 = jnp.dot(y2, w3_ref[...], preferred_element_type=jnp.float32)  # (HW, Cp)
    res = r_ref[0] if has_residual else x.astype(jnp.float32)
    o_ref[0] = jnp.maximum(y3 + b3_ref[...] + res, 0.0).astype(o_ref.dtype)


# ------------------------------ parameter init ------------------------------ #

def init_bottleneckx_params(key, inplanes, planes, cardinality=CARDINALITY):
    """Random (PyTorch-style) conv weights with eval-mode BN folded (fresh stats).

    Returns (kernel_params, reference_params).  To load trained PyTorch weights,
    permute conv weights (O,I,kh,kw) into these dense layouts and fold
    scale = gamma/sqrt(running_var+eps) into the weights, bias = beta - mean*scale
    into the b1/b2/b3 streams (the bias path is already wired into the kernel).
    """
    bottle = planes * cardinality // 32
    assert bottle % cardinality == 0
    g = bottle // cardinality                       # channels per group
    Cp = _round_up(max(inplanes, bottle, planes), LANES)
    assert Cp % g == 0 and bottle % g == 0

    k1, k2, k3 = jax.random.split(key, 3)
    w1 = np.asarray(jax.random.normal(k1, (inplanes, bottle), jnp.float32)) * math.sqrt(2.0 / inplanes)
    # per group, per tap, a (g_in, g_out) matrix; tap = kh*3 + kw
    w2g = np.asarray(jax.random.normal(k2, (cardinality, 9, g, g), jnp.float32)) * math.sqrt(2.0 / (9 * g))
    w3 = np.asarray(jax.random.normal(k3, (bottle, planes), jnp.float32)) * math.sqrt(2.0 / bottle)

    # Eval-mode BN fold with fresh stats: scale = 1/sqrt(1+eps), bias = 0.
    bn_scale = 1.0 / math.sqrt(1.0 + BN_EPS)
    w1 = w1 * bn_scale
    w2g = w2g * bn_scale
    w3 = w3 * bn_scale
    b1 = np.zeros((bottle,), np.float32)
    b2 = np.zeros((bottle,), np.float32)
    b3 = np.zeros((planes,), np.float32)

    # ---- kernel layouts ------------------------------------------------------
    # conv1: lane-pad, then stack g column-permuted copies; column block r yields
    # the "rotate by r within each g-lane group" view of relu(conv1(x)).
    w1p = np.zeros((Cp, Cp), np.float32); w1p[:inplanes, :bottle] = w1
    b1p = np.zeros((Cp,), np.float32);    b1p[:bottle] = b1
    lanes = np.arange(Cp)
    base, p = (lanes // g) * g, lanes % g
    w1_stack = np.concatenate([w1p[:, base + (p + r) % g] for r in range(g)], axis=1)
    b1_stack = np.concatenate([b1p[base + (p + r) % g] for r in range(g)], axis=0)

    # conv2: per-(tap, rotation) lane vectors of the grouped 3x3 weight.
    w2lane = np.zeros((9, g, Cp), np.float32)
    c = np.arange(bottle); gi, pp = c // g, c % g
    for t in range(9):
        for r in range(g):
            w2lane[t, r, :bottle] = w2g[gi, t, (pp + r) % g, pp]
    b2p = np.zeros((Cp,), np.float32); b2p[:bottle] = b2

    # conv3: plain lane-padded dense.
    w3p = np.zeros((Cp, Cp), np.float32); w3p[:bottle, :planes] = w3
    b3p = np.zeros((Cp,), np.float32);    b3p[:planes] = b3

    params = {
        "w1": jnp.asarray(w1_stack, jnp.bfloat16),
        "b1": jnp.asarray(b1_stack.reshape(1, g * Cp), jnp.float32),
        "w2": jnp.asarray(w2lane.reshape(9, g, 1, Cp), jnp.float32),
        "b2": jnp.asarray(b2p.reshape(1, Cp), jnp.float32),
        "w3": jnp.asarray(w3p, jnp.bfloat16),
        "b3": jnp.asarray(b3p.reshape(1, Cp), jnp.float32),
    }

    # Plain dense/padded copies for the pure-JAX reference.
    w2taps = np.zeros((9, Cp, Cp), np.float32)
    for gix in range(cardinality):
        s = gix * g
        w2taps[:, s:s + g, s:s + g] = w2g[gix]
    ref = {
        "w1": jnp.asarray(w1p), "b1": jnp.asarray(b1p),
        "w2": jnp.asarray(w2taps), "b2": jnp.asarray(b2p),
        "w3": jnp.asarray(w3p), "b3": jnp.asarray(b3p),
    }
    return params, ref


# --------------------------------- forward ---------------------------------- #

def _bottleneckx_pallas(inputs, params, *, N, H, W, Cp, g, dilation, has_residual):
    """pallas_call on channel-padded NHWC-flattened activations (N, H*W, Cp)."""
    HW = H * W
    d = dilation
    kernel = functools.partial(_bottleneckx_kernel, H=H, W=W, d=d, g=g,
                               has_residual=has_residual)
    act_spec = pl.BlockSpec((1, HW, Cp), lambda b: (b, 0, 0))
    in_specs = [act_spec] + ([act_spec] if has_residual else []) + [
        pl.BlockSpec((Cp, g * Cp), lambda b: (0, 0)),          # w1 (bn1 folded)
        pl.BlockSpec((1, g * Cp), lambda b: (0, 0)),           # b1
        pl.BlockSpec((9, g, 1, Cp), lambda b: (0, 0, 0, 0)),   # w2 lane vectors
        pl.BlockSpec((1, Cp), lambda b: (0, 0)),               # b2
        pl.BlockSpec((Cp, Cp), lambda b: (0, 0)),              # w3 (bn3 folded)
        pl.BlockSpec((1, Cp), lambda b: (0, 0)),               # b3
    ]
    return pl.pallas_call(
        kernel,
        out_shape=jax.ShapeDtypeStruct((N, HW, Cp), jnp.float32),
        grid=(N,),
        in_specs=in_specs,
        out_specs=act_spec,
        scratch_shapes=[pltpu.VMEM((g, H + 2 * d, W + 2 * d, Cp), jnp.float32)],
        compiler_params=pltpu.CompilerParams(dimension_semantics=("parallel",)),
    )(*inputs, params["w1"], params["b1"], params["w2"], params["b2"],
      params["w3"], params["b3"])


@functools.partial(jax.jit, static_argnames=("planes", "dilation"))
def bottleneckx_forward(params, x_nchw, residual_nchw=None, *, planes, dilation=1):
    """BottleneckX.forward (stride=1).  x_nchw: (N, Cin, H, W) f32 -> (N, planes, H, W).

    NCHW adapter around the channel-padded NHWC kernel.  Inside a full DLA network the
    padded (N, H*W, Cp) layout should be kept across layers (call _bottleneckx_pallas
    directly) to avoid per-block transpose/pad HBM round-trips.
    """
    N, Cin, H, W = x_nchw.shape
    Cp = params["w3"].shape[0]
    g = params["w2"].shape[1]
    HW = H * W

    x = jnp.transpose(x_nchw, (0, 2, 3, 1)).reshape(N, HW, Cin)
    x = jnp.pad(x, ((0, 0), (0, 0), (0, Cp - Cin))).astype(jnp.bfloat16)
    inputs = [x]
    has_residual = residual_nchw is not None
    if has_residual:
        Cr = residual_nchw.shape[1]
        r = jnp.transpose(residual_nchw, (0, 2, 3, 1)).reshape(N, HW, Cr)
        r = jnp.pad(r, ((0, 0), (0, 0), (0, Cp - Cr))).astype(jnp.float32)
        inputs.append(r)

    out = _bottleneckx_pallas(inputs, params, N=N, H=H, W=W, Cp=Cp, g=g,
                              dilation=dilation, has_residual=has_residual)
    out = out[:, :, :planes].reshape(N, H, W, planes)
    return jnp.transpose(out, (0, 3, 1, 2))                    # NHWC -> NCHW


# --------------------------- pure-JAX reference ------------------------------ #

def _reference_forward(ref, x_nchw, planes, dilation=1):
    """f32 NHWC reference using the plain folded/padded weights (identity residual)."""
    N, Cin, H, W = x_nchw.shape
    Cp = ref["w1"].shape[0]
    x = jnp.transpose(x_nchw, (0, 2, 3, 1))
    xp = jnp.pad(x, ((0, 0), (0, 0), (0, 0), (0, Cp - Cin)))
    y1 = jnp.maximum(jnp.einsum("nhwc,cd->nhwd", xp, ref["w1"]) + ref["b1"], 0.0)
    d = dilation
    y1p = jnp.pad(y1, ((0, 0), (d, d), (d, d), (0, 0)))
    acc = jnp.zeros_like(y1)
    t = 0
    for di in (-1, 0, 1):
        for dj in (-1, 0, 1):
            win = y1p[:, d + di * d:d + di * d + H, d + dj * d:d + dj * d + W, :]
            acc = acc + jnp.einsum("nhwc,cd->nhwd", win, ref["w2"][t])
            t += 1
    y2 = jnp.maximum(acc + ref["b2"], 0.0)
    out = jnp.maximum(jnp.einsum("nhwc,cd->nhwd", y2, ref["w3"]) + ref["b3"] + xp, 0.0)
    return jnp.transpose(out[..., :planes], (0, 3, 1, 2))


# ----------------------------------- main ------------------------------------ #

if __name__ == "__main__":
    # Small but representative: inplanes == planes so the identity residual path of
    # BottleneckX.forward (stride=1, residual=None) is valid; 32 groups of 2 channels.
    N, H, W = 4, 16, 16
    inplanes = planes = 64

    key = jax.random.PRNGKey(0)
    pkey, xkey = jax.random.split(key)
    params, ref_w = init_bottleneckx_params(pkey, inplanes, planes)
    x = jax.random.normal(xkey, (N, inplanes, H, W), jnp.float32)   # NCHW, like PyTorch

    out = jax.block_until_ready(bottleneckx_forward(params, x, planes=planes))
    assert out.shape == (N, planes, H, W), out.shape
    assert bool(jnp.all(jnp.isfinite(out)))

    # Loose numerical check (kernel streams x / matmul operands in bf16).
    ref = _reference_forward(ref_w, x, planes)
    max_err = float(jnp.max(jnp.abs(out - ref)))
    assert bool(jnp.allclose(out, ref, rtol=5e-2, atol=2e-1)), max_err

    print("KERNEL_OK")
</pallas_src>

<mosaic_0001>
module attributes {stable_mosaic.version = 11 : i64} {
  func.func @_bottleneckx_kernel(%arg0: i32, %arg1: memref<1x256x128xbf16, #tpu.memory_space<vmem>>, %arg2: memref<128x256xbf16, #tpu.memory_space<vmem>>, %arg3: memref<1x256xf32, #tpu.memory_space<vmem>>, %arg4: memref<9x2x1x128xf32, #tpu.memory_space<vmem>>, %arg5: memref<1x128xf32, #tpu.memory_space<vmem>>, %arg6: memref<128x128xbf16, #tpu.memory_space<vmem>>, %arg7: memref<1x128xf32, #tpu.memory_space<vmem>>, %arg8: memref<1x256x128xf32, #tpu.memory_space<vmem>>, %arg9: memref<2x18x18x128xf32, #tpu.memory_space<vmem>>) attributes {dimension_semantics = [#tpu.dimension_semantics<parallel>], iteration_bounds = array<i64: 4>, scalar_prefetch = 0 : i64, scratch_operands = 1 : i64, tpu.core_type = #tpu.core_type<tc>, window_params = [{transform_indices = @transform_0, window_bounds = array<i64: 1, 256, 128>}, {pipeline_mode = #tpu.pipeline_mode<synchronous>, transform_indices = @transform_1, window_bounds = array<i64: 128, 256>}, {pipeline_mode = #tpu.pipeline_mode<synchronous>, transform_indices = @transform_2, window_bounds = array<i64: 1, 256>}, {pipeline_mode = #tpu.pipeline_mode<synchronous>, transform_indices = @transform_3, window_bounds = array<i64: 9, 2, 1, 128>}, {pipeline_mode = #tpu.pipeline_mode<synchronous>, transform_indices = @transform_4, window_bounds = array<i64: 1, 128>}, {pipeline_mode = #tpu.pipeline_mode<synchronous>, transform_indices = @transform_5, window_bounds = array<i64: 128, 128>}, {pipeline_mode = #tpu.pipeline_mode<synchronous>, transform_indices = @transform_6, window_bounds = array<i64: 1, 128>}, {transform_indices = @transform_7, window_bounds = array<i64: 1, 256, 128>}]} {
    %c0 = arith.constant 0 : index
    %c0_0 = arith.constant 0 : index
    %c0_1 = arith.constant 0 : index
    %0 = vector.load %arg1[%c0, %c0_0, %c0_1] : memref<1x256x128xbf16, #tpu.memory_space<vmem>>, vector<1x256x128xbf16>
    %1 = vector.shape_cast %0 : vector<1x256x128xbf16> to vector<256x128xbf16>
    %c0_2 = arith.constant 0 : index
    %c0_3 = arith.constant 0 : index
    %2 = vector.load %arg2[%c0_2, %c0_3] : memref<128x256xbf16, #tpu.memory_space<vmem>>, vector<128x256xbf16>
    %cst = arith.constant dense<0.000000e+00> : vector<256x256xf32>
    %3 = tpu.matmul %1, %2, %cst {dimension_numbers = #tpu.dot_dimension_numbers<[1], [0], [0], [1], [0, 0, 1, 1], [], []>} : vector<256x128xbf16>, vector<128x256xbf16>, vector<256x256xf32> -> vector<256x256xf32>
    %c0_4 = arith.constant 0 : index
    %c0_5 = arith.constant 0 : index
    %4 = vector.load %arg3[%c0_4, %c0_5] : memref<1x256xf32, #tpu.memory_space<vmem>>, vector<1x256xf32>
    %5 = vector.broadcast %4 : vector<1x256xf32> to vector<256x256xf32>
    %6 = arith.addf %3, %5 : vector<256x256xf32>
    %cst_6 = arith.constant 0.000000e+00 : f32
    %7 = vector.broadcast %cst_6 : f32 to vector<256x256xf32>
    %8 = arith.maximumf %6, %7 : vector<256x256xf32>
    %cst_7 = arith.constant 0.000000e+00 : f32
    %9 = vector.broadcast %cst_7 : f32 to vector<16x1x128xf32>
    %cst_8 = arith.constant 0.000000e+00 : f32
    %10 = vector.broadcast %cst_8 : f32 to vector<1x18x128xf32>
    %11 = vector.extract_strided_slice %8 {offsets = [0, 0], sizes = [256, 128], strides = [1, 1]} : vector<256x256xf32> to vector<256x128xf32>
    %12 = vector.shape_cast %11 : vector<256x128xf32> to vector<16x16x128xf32>
    %13 = tpu.concatenate %9, %12, %9 in 1 : vector<16x1x128xf32>, vector<16x16x128xf32>, vector<16x1x128xf32> -> vector<16x18x128xf32>
    %14 = tpu.concatenate %10, %13, %10 in 0 : vector<1x18x128xf32>, vector<16x18x128xf32>, vector<1x18x128xf32> -> vector<18x18x128xf32>
    %c0_9 = arith.constant 0 : index
    %c0_10 = arith.constant 0 : index
    %c0_11 = arith.constant 0 : index
    %c0_12 = arith.constant 0 : index
    %15 = vector.load %arg9[%c0_9, %c0_10, %c0_11, %c0_12] : memref<2x18x18x128xf32, #tpu.memory_space<vmem>>, vector<1x18x18x128xf32>
    %16 = vector.shape_cast %15 : vector<1x18x18x128xf32> to vector<18x18x128xf32>
    %17 = vector.shape_cast %14 : vector<18x18x128xf32> to vector<1x18x18x128xf32>
    tpu.vector_store %arg9[%c0_9, %c0_10, %c0_11, %c0_12], %17 {strides = array<i32>} : memref<2x18x18x128xf32, #tpu.memory_space<vmem>>, vector<1x18x18x128xf32>,
    %18 = vector.extract_strided_slice %8 {offsets = [0, 128], sizes = [256, 128], strides = [1, 1]} : vector<256x256xf32> to vector<256x128xf32>
    %19 = vector.shape_cast %18 : vector<256x128xf32> to vector<16x16x128xf32>
    %20 = tpu.concatenate %9, %19, %9 in 1 : vector<16x1x128xf32>, vector<16x16x128xf32>, vector<16x1x128xf32> -> vector<16x18x128xf32>
    %21 = tpu.concatenate %10, %20, %10 in 0 : vector<1x18x128xf32>, vector<16x18x128xf32>, vector<1x18x128xf32> -> vector<18x18x128xf32>
    %c1 = arith.constant 1 : index
    %c0_13 = arith.constant 0 : index
    %c0_14 = arith.constant 0 : index
    %c0_15 = arith.constant 0 : index
    %22 = vector.load %arg9[%c1, %c0_13, %c0_14, %c0_15] : memref<2x18x18x128xf32, #tpu.memory_space<vmem>>, vector<1x18x18x128xf32>
    %23 = vector.shape_cast %22 : vector<1x18x18x128xf32> to vector<18x18x128xf32>
    %24 = vector.shape_cast %21 : vector<18x18x128xf32> to vector<1x18x18x128xf32>
    tpu.vector_store %arg9[%c1, %c0_13, %c0_14, %c0_15], %24 {strides = array<i32>} : memref<2x18x18x128xf32, #tpu.memory_space<vmem>>, vector<1x18x18x128xf32>,
    %c0_16 = arith.constant 0 : index
    %c0_17 = arith.constant 0 : index
    %c0_18 = arith.constant 0 : index
    %c0_19 = arith.constant 0 : index
    %25 = vector.load %arg9[%c0_16, %c0_17, %c0_18, %c0_19] : memref<2x18x18x128xf32, #tpu.memory_space<vmem>>, vector<1x16x18x128xf32>
    %26 = vector.shape_cast %25 : vector<1x16x18x128xf32> to vector<16x18x128xf32>
    %27 = vector.extract_strided_slice %26 {offsets = [0, 0, 0], sizes = [16, 16, 128], strides = [1, 1, 1]} : vector<16x18x128xf32> to vector<16x16x128xf32>
    %c0_20 = arith.constant 0 : index
    %c0_21 = arith.constant 0 : index
    %c0_22 = arith.constant 0 : index
    %c0_23 = arith.constant 0 : index
    %28 = vector.load %arg4[%c0_20, %c0_21, %c0_22, %c0_23] : memref<9x2x1x128xf32, #tpu.memory_space<vmem>>, vector<1x1x1x128xf32>
    %29 = vector.shape_cast %28 : vector<1x1x1x128xf32> to vector<1x128xf32>
    %30 = vector.shape_cast %29 : vector<1x128xf32> to vector<1x1x128xf32>
    %31 = vector.broadcast %30 : vector<1x1x128xf32> to vector<16x16x128xf32>
    %32 = arith.mulf %27, %31 : vector<16x16x128xf32>
    %c1_24 = arith.constant 1 : index
    %c0_25 = arith.constant 0 : index
    %c0_26 = arith.constant 0 : index
    %c0_27 = arith.constant 0 : index
    %33 = vector.load %arg9[%c1_24, %c0_25, %c0_26, %c0_27] : memref<2x18x18x128xf32, #tpu.memory_space<vmem>>, vector<1x16x18x128xf32>
    %34 = vector.shape_cast %33 : vector<1x16x18x128xf32> to vector<16x18x128xf32>
    %35 = vector.extract_strided_slice %34 {offsets = [0, 0, 0], sizes = [16, 16, 128], strides = [1, 1, 1]} : vector<16x18x128xf32> to vector<16x16x128xf32>
    %c0_28 = arith.constant 0 : index
    %c1_29 = arith.constant 1 : index
    %c0_30 = arith.constant 0 : index
    %c0_31 = arith.constant 0 : index
    %36 = vector.load %arg4[%c0_28, %c1_29, %c0_30, %c0_31] : memref<9x2x1x128xf32, #tpu.memory_space<vmem>>, vector<1x1x1x128xf32>
    %37 = vector.shape_cast %36 : vector<1x1x1x128xf32> to vector<1x128xf32>
    %38 = vector.shape_cast %37 : vector<1x128xf32> to vector<1x1x128xf32>
    %39 = vector.broadcast %38 : vector<1x1x128xf32> to vector<16x16x128xf32>
    %40 = arith.mulf %35, %39 : vector<16x16x128xf32>
    %41 = arith.addf %32, %40 : vector<16x16x128xf32>
    %c0_32 = arith.constant 0 : index
    %c0_33 = arith.constant 0 : index
    %c0_34 = arith.constant 0 : index
    %c0_35 = arith.constant 0 : index
    %42 = vector.load %arg9[%c0_32, %c0_33, %c0_34, %c0_35] : memref<2x18x18x128xf32, #tpu.memory_space<vmem>>, vector<1x16x18x128xf32>
    %43 = vector.shape_cast %42 : vector<1x16x18x128xf32> to vector<16x18x128xf32>
    %44 = vector.extract_strided_slice %43 {offsets = [0, 1, 0], sizes = [16, 16, 128], strides = [1, 1, 1]} : vector<16x18x128xf32> to vector<16x16x128xf32>
    %c1_36 = arith.constant 1 : index
    %c0_37 = arith.constant 0 : index
    %c0_38 = arith.constant 0 : index
    %c0_39 = arith.constant 0 : index
    %45 = vector.load %arg4[%c1_36, %c0_37, %c0_38, %c0_39] : memref<9x2x1x128xf32, #tpu.memory_space<vmem>>, vector<1x1x1x128xf32>
    %46 = vector.shape_cast %45 : vector<1x1x1x128xf32> to vector<1x128xf32>
    %47 = vector.shape_cast %46 : vector<1x128xf32> to vector<1x1x128xf32>
    %48 = vector.broadcast %47 : vector<1x1x128xf32> to vector<16x16x128xf32>
    %49 = arith.mulf %44, %48 : vector<16x16x128xf32>
    %50 = arith.addf %41, %49 : vector<16x16x128xf32>
    %c1_40 = arith.constant 1 : index
    %c0_41 = arith.constant 0 : index
    %c0_42 = arith.constant 0 : index
    %c0_43 = arith.constant 0 : index
    %51 = vector.load %arg9[%c1_40, %c0_41, %c0_42, %c0_43] : memref<2x18x18x128xf32, #tpu.memory_space<vmem>>, vector<1x16x18x128xf32>
    %52 = vector.shape_cast %51 : vector<1x16x18x128xf32> to vector<16x18x128xf32>
    %53 = vector.extract_strided_slice %52 {offsets = [0, 1, 0], sizes = [16, 16, 128], strides = [1, 1, 1]} : vector<16x18x128xf32> to vector<16x16x128xf32>
    %c1_44 = arith.constant 1 : index
    %c1_45 = arith.constant 1 : index
    %c0_46 = arith.constant 0 : index
    %c0_47 = arith.constant 0 : index
    %54 = vector.load %arg4[%c1_44, %c1_45, %c0_46, %c0_47] : memref<9x2x1x128xf32, #tpu.memory_space<vmem>>, vector<1x1x1x128xf32>
    %55 = vector.shape_cast %54 : vector<1x1x1x128xf32> to vector<1x128xf32>
    %56 = vector.shape_cast %55 : vector<1x128xf32> to vector<1x1x128xf32>
    %57 = vector.broadcast %56 : vector<1x1x128xf32> to vector<16x16x128xf32>
    %58 = arith.mulf %53, %57 : vector<16x16x128xf32>
    %59 = arith.addf %50, %58 : vector<16x16x128xf32>
    %c0_48 = arith.constant 0 : index
    %c0_49 = arith.constant 0 : index
    %c0_50 = arith.constant 0 : index
    %c0_51 = arith.constant 0 : index
    %60 = vector.load %arg9[%c0_48, %c0_49, %c0_50, %c0_51] : memref<2x18x18x128xf32, #tpu.memory_space<vmem>>, vector<1x16x18x128xf32>
    %61 = vector.shape_cast %60 : vector<1x16x18x128xf32> to vector<16x18x128xf32>
    %62 = vector.extract_strided_slice %61 {offsets = [0, 2, 0], sizes = [16, 16, 128], strides = [1, 1, 1]} : vector<16x18x128xf32> to vector<16x16x128xf32>
    %c2 = arith.constant 2 : index
    %c0_52 = arith.constant 0 : index
    %c0_53 = arith.constant 0 : index
    %c0_54 = arith.constant 0 : index
    %63 = vector.load %arg4[%c2, %c0_52, %c0_53, %c0_54] : memref<9x2x1x128xf32, #tpu.memory_space<vmem>>, vector<1x1x1x128xf32>
    %64 = vector.shape_cast %63 : vector<1x1x1x128xf32> to vector<1x128xf32>
    %65 = vector.shape_cast %64 : vector<1x128xf32> to vector<1x1x128xf32>
    %66 = vector.broadcast %65 : vector<1x1x128xf32> to vector<16x16x128xf32>
    %67 = arith.mulf %62, %66 : vector<16x16x128xf32>
    %68 = arith.addf %59, %67 : vector<16x16x128xf32>
    %c1_55 = arith.constant 1 : index
    %c0_56 = arith.constant 0 : index
    %c0_57 = arith.constant 0 : index
    %c0_58 = arith.constant 0 : index
    %69 = vector.load %arg9[%c1_55, %c0_56, %c0_57, %c0_58] : memref<2x18x18x128xf32, #tpu.memory_space<vmem>>, vector<1x16x18x128xf32>
    %70 = vector.shape_cast %69 : vector<1x16x18x128xf32> to vector<16x18x128xf32>
    %71 = vector.extract_strided_slice %70 {offsets = [0, 2, 0], sizes = [16, 16, 128], strides = [1, 1, 1]} : vector<16x18x128xf32> to vector<16x16x128xf32>
    %c2_59 = arith.constant 2 : index
    %c1_60 = arith.constant 1 : index
    %c0_61 = arith.constant 0 : index
    %c0_62 = arith.constant 0 : index
    %72 = vector.load %arg4[%c2_59, %c1_60, %c0_61, %c0_62] : memref<9x2x1x128xf32, #tpu.memory_space<vmem>>, vector<1x1x1x128xf32>
    %73 = vector.shape_cast %72 : vector<1x1x1x128xf32> to vector<1x128xf32>
    %74 = vector.shape_cast %73 : vector<1x128xf32> to vector<1x1x128xf32>
    %75 = vector.broadcast %74 : vector<1x1x128xf32> to vector<16x16x128xf32>
    %76 = arith.mulf %71, %75 : vector<16x16x128xf32>
    %77 = arith.addf %68, %76 : vector<16x16x128xf32>
    %c0_63 = arith.constant 0 : index
    %c1_64 = arith.constant 1 : index
    %c0_65 = arith.constant 0 : index
    %c0_66 = arith.constant 0 : index
    %78 = vector.load %arg9[%c0_63, %c1_64, %c0_65, %c0_66] : memref<2x18x18x128xf32, #tpu.memory_space<vmem>>, vector<1x16x18x128xf32>
    %79 = vector.shape_cast %78 : vector<1x16x18x128xf32> to vector<16x18x128xf32>
    %80 = vector.extract_strided_slice %79 {offsets = [0, 0, 0], sizes = [16, 16, 128], strides = [1, 1, 1]} : vector<16x18x128xf32> to vector<16x16x128xf32>
    %c3 = arith.constant 3 : index
    %c0_67 = arith.constant 0 : index
    %c0_68 = arith.constant 0 : index
    %c0_69 = arith.constant 0 : index
    %81 = vector.load %arg4[%c3, %c0_67, %c0_68, %c0_69] : memref<9x2x1x128xf32, #tpu.memory_space<vmem>>, vector<1x1x1x128xf32>
    %82 = vector.shape_cast %81 : vector<1x1x1x128xf32> to vector<1x128xf32>
    %83 = vector.shape_cast %82 : vector<1x128xf32> to vector<1x1x128xf32>
    %84 = vector.broadcast %83 : vector<1x1x128xf32> to vector<16x16x128xf32>
    %85 = arith.mulf %80, %84 : vector<16x16x128xf32>
    %86 = arith.addf %77, %85 : vector<16x16x128xf32>
    %c1_70 = arith.constant 1 : index
    %c1_71 = arith.constant 1 : index
    %c0_72 = arith.constant 0 : index
    %c0_73 = arith.constant 0 : index
    %87 = vector.load %arg9[%c1_70, %c1_71, %c0_72, %c0_73] : memref<2x18x18x128xf32, #tpu.memory_space<vmem>>, vector<1x16x18x128xf32>
    %88 = vector.shape_cast %87 : vector<1x16x18x128xf32> to vector<16x18x128xf32>
    %89 = vector.extract_strided_slice %88 {offsets = [0, 0, 0], sizes = [16, 16, 128], strides = [1, 1, 1]} : vector<16x18x128xf32> to vector<16x16x128xf32>
    %c3_74 = arith.constant 3 : index
    %c1_75 = arith.constant 1 : index
    %c0_76 = arith.constant 0 : index
    %c0_77 = arith.constant 0 : index
    %90 = vector.load %arg4[%c3_74, %c1_75, %c0_76, %c0_77] : memref<9x2x1x128xf32, #tpu.memory_space<vmem>>, vector<1x1x1x128xf32>
    %91 = vector.shape_cast %90 : vector<1x1x1x128xf32> to vector<1x128xf32>
    %92 = vector.shape_cast %91 : vector<1x128xf32> to vector<1x1x128xf32>
    %93 = vector.broadcast %92 : vector<1x1x128xf32> to vector<16x16x128xf32>
    %94 = arith.mulf %89, %93 : vector<16x16x128xf32>
    %95 = arith.addf %86, %94 : vector<16x16x128xf32>
    %c0_78 = arith.constant 0 : index
    %c1_79 = arith.constant 1 : index
    %c0_80 = arith.constant 0 : index
    %c0_81 = arith.constant 0 : index
    %96 = vector.load %arg9[%c0_78, %c1_79, %c0_80, %c0_81] : memref<2x18x18x128xf32, #tpu.memory_space<vmem>>, vector<1x16x18x128xf32>
    %97 = vector.shape_cast %96 : vector<1x16x18x128xf32> to vector<16x18x128xf32>
    %98 = vector.extract_strided_slice %97 {offsets = [0, 1, 0], sizes = [16, 16, 128], strides = [1, 1, 1]} : vector<16x18x128xf32> to vector<16x16x128xf32>
    %c4 = arith.constant 4 : index
    %c0_82 = arith.constant 0 : index
    %c0_83 = arith.constant 0 : index
    %c0_84 = arith.constant 0 : index
    %99 = vector.load %arg4[%c4, %c0_82, %c0_83, %c0_84] : memref<9x2x1x128xf32, #tpu.memory_space<vmem>>, vector<1x1x1x128xf32>
    %100 = vector.shape_cast %99 : vector<1x1x1x128xf32> to vector<1x128xf32>
    %101 = vector.shape_cast %100 : vector<1x128xf32> to vector<1x1x128xf32>
    %102 = vector.broadcast %101 : vector<1x1x128xf32> to vector<16x16x128xf32>
    %103 = arith.mulf %98, %102 : vector<16x16x128xf32>
    %104 = arith.addf %95, %103 : vector<16x16x128xf32>
    %c1_85 = arith.constant 1 : index
    %c1_86 = arith.constant 1 : index
    %c0_87 = arith.constant 0 : index
    %c0_88 = arith.constant 0 : index
    %105 = vector.load %arg9[%c1_85, %c1_86, %c0_87, %c0_88] : memref<2x18x18x128xf32, #tpu.memory_space<vmem>>, vector<1x16x18x128xf32>
    %106 = vector.shape_cast %105 : vector<1x16x18x128xf32> to vector<16x18x128xf32>
    %107 = vector.extract_strided_slice %106 {offsets = [0, 1, 0], sizes = [16, 16, 128], strides = [1, 1, 1]} : vector<16x18x128xf32> to vector<16x16x128xf32>
    %c4_89 = arith.constant 4 : index
    %c1_90 = arith.constant 1 : index
    %c0_91 = arith.constant 0 : index
    %c0_92 = arith.constant 0 : index
    %108 = vector.load %arg4[%c4_89, %c1_90, %c0_91, %c0_92] : memref<9x2x1x128xf32, #tpu.memory_space<vmem>>, vector<1x1x1x128xf32>
    %109 = vector.shape_cast %108 : vector<1x1x1x128xf32> to vector<1x128xf32>
    %110 = vector.shape_cast %109 : vector<1x128xf32> to vector<1x1x128xf32>
    %111 = vector.broadcast %110 : vector<1x1x128xf32> to vector<16x16x128xf32>
    %112 = arith.mulf %107, %111 : vector<16x16x128xf32>
    %113 = arith.addf %104, %112 : vector<16x16x128xf32>
    %c0_93 = arith.constant 0 : index
    %c1_94 = arith.constant 1 : index
    %c0_95 = arith.constant 0 : index
    %c0_96 = arith.constant 0 : index
    %114 = vector.load %arg9[%c0_93, %c1_94, %c0_95, %c0_96] : memref<2x18x18x128xf32, #tpu.memory_space<vmem>>, vector<1x16x18x128xf32>
    %115 = vector.shape_cast %114 : vector<1x16x18x128xf32> to vector<16x18x128xf32>
    %116 = vector.extract_strided_slice %115 {offsets = [0, 2, 0], sizes = [16, 16, 128], strides = [1, 1, 1]} : vector<16x18x128xf32> to vector<16x16x128xf32>
    %c5 = arith.constant 5 : index
    %c0_97 = arith.constant 0 : index
    %c0_98 = arith.constant 0 : index
    %c0_99 = arith.constant 0 : index
    %117 = vector.load %arg4[%c5, %c0_97, %c0_98, %c0_99] : memref<9x2x1x128xf32, #tpu.memory_space<vmem>>, vector<1x1x1x128xf32>
    %118 = vector.shape_cast %117 : vector<1x1x1x128xf32> to vector<1x128xf32>
    %119 = vector.shape_cast %118 : vector<1x128xf32> to vector<1x1x128xf32>
    %120 = vector.broadcast %119 : vector<1x1x128xf32> to vector<16x16x128xf32>
    %121 = arith.mulf %116, %120 : vector<16x16x128xf32>
    %122 = arith.addf %113, %121 : vector<16x16x128xf32>
    %c1_100 = arith.constant 1 : index
    %c1_101 = arith.constant 1 : index
    %c0_102 = arith.constant 0 : index
    %c0_103 = arith.constant 0 : index
    %123 = vector.load %arg9[%c1_100, %c1_101, %c0_102, %c0_103] : memref<2x18x18x128xf32, #tpu.memory_space<vmem>>, vector<1x16x18x128xf32>
    %124 = vector.shape_cast %123 : vector<1x16x18x128xf32> to vector<16x18x128xf32>
    %125 = vector.extract_strided_slice %124 {offsets = [0, 2, 0], sizes = [16, 16, 128], strides = [1, 1, 1]} : vector<16x18x128xf32> to vector<16x16x128xf32>
    %c5_104 = arith.constant 5 : index
    %c1_105 = arith.constant 1 : index
    %c0_106 = arith.constant 0 : index
    %c0_107 = arith.constant 0 : index
    %126 = vector.load %arg4[%c5_104, %c1_105, %c0_106, %c0_107] : memref<9x2x1x128xf32, #tpu.memory_space<vmem>>, vector<1x1x1x128xf32>
    %127 = vector.shape_cast %126 : vector<1x1x1x128xf32> to vector<1x128xf32>
    %128 = vector.shape_cast %127 : vector<1x128xf32> to vector<1x1x128xf32>
    %129 = vector.broadcast %128 : vector<1x1x128xf32> to vector<16x16x128xf32>
    %130 = arith.mulf %125, %129 : vector<16x16x128xf32>
    %131 = arith.addf %122, %130 : vector<16x16x128xf32>
    %c0_108 = arith.constant 0 : index
    %c2_109 = arith.constant 2 : index
    %c0_110 = arith.constant 0 : index
    %c0_111 = arith.constant 0 : index
    %132 = vector.load %arg9[%c0_108, %c2_109, %c0_110, %c0_111] : memref<2x18x18x128xf32, #tpu.memory_space<vmem>>, vector<1x16x18x128xf32>
    %133 = vector.shape_cast %132 : vector<1x16x18x128xf32> to vector<16x18x128xf32>
    %134 = vector.extract_strided_slice %133 {offsets = [0, 0, 0], sizes = [16, 16, 128], strides = [1, 1, 1]} : vector<16x18x128xf32> to vector<16x16x128xf32>
    %c6 = arith.constant 6 : index
    %c0_112 = arith.constant 0 : index
    %c0_113 = arith.constant 0 : index
    %c0_114 = arith.constant 0 : index
    %135 = vector.load %arg4[%c6, %c0_112, %c0_113, %c0_114] : memref<9x2x1x128xf32, #tpu.memory_space<vmem>>, vector<1x1x1x128xf32>
    %136 = vector.shape_cast %135 : vector<1x1x1x128xf32> to vector<1x128xf32>
    %137 = vector.shape_cast %136 : vector<1x128xf32> to vector<1x1x128xf32>
    %138 = vector.broadcast %137 : vector<1x1x128xf32> to vector<16x16x128xf32>
    %139 = arith.mulf %134, %138 : vector<16x16x128xf32>
    %140 = arith.addf %131, %139 : vector<16x16x128xf32>
    %c1_115 = arith.constant 1 : index
    %c2_116 = arith.constant 2 : index
    %c0_117 = arith.constant 0 : index
    %c0_118 = arith.constant 0 : index
    %141 = vector.load %arg9[%c1_115, %c2_116, %c0_117, %c0_118] : memref<2x18x18x128xf32, #tpu.memory_space<vmem>>, vector<1x16x18x128xf32>
    %142 = vector.shape_cast %141 : vector<1x16x18x128xf32> to vector<16x18x128xf32>
    %143 = vector.extract_strided_slice %142 {offsets = [0, 0, 0], sizes = [16, 16, 128], strides = [1, 1, 1]} : vector<16x18x128xf32> to vector<16x16x128xf32>
    %c6_119 = arith.constant 6 : index
    %c1_120 = arith.constant 1 : index
    %c0_121 = arith.constant 0 : index
    %c0_122 = arith.constant 0 : index
    %144 = vector.load %arg4[%c6_119, %c1_120, %c0_121, %c0_122] : memref<9x2x1x128xf32, #tpu.memory_space<vmem>>, vector<1x1x1x128xf32>
    %145 = vector.shape_cast %144 : vector<1x1x1x128xf32> to vector<1x128xf32>
    %146 = vector.shape_cast %145 : vector<1x128xf32> to vector<1x1x128xf32>
    %147 = vector.broadcast %146 : vector<1x1x128xf32> to vector<16x16x128xf32>
    %148 = arith.mulf %143, %147 : vector<16x16x128xf32>
    %149 = arith.addf %140, %148 : vector<16x16x128xf32>
    %c0_123 = arith.constant 0 : index
    %c2_124 = arith.constant 2 : index
    %c0_125 = arith.constant 0 : index
    %c0_126 = arith.constant 0 : index
    %150 = vector.load %arg9[%c0_123, %c2_124, %c0_125, %c0_126] : memref<2x18x18x128xf32, #tpu.memory_space<vmem>>, vector<1x16x18x128xf32>
    %151 = vector.shape_cast %150 : vector<1x16x18x128xf32> to vector<16x18x128xf32>
    %152 = vector.extract_strided_slice %151 {offsets = [0, 1, 0], sizes = [16, 16, 128], strides = [1, 1, 1]} : vector<16x18x128xf32> to vector<16x16x128xf32>
    %c7 = arith.constant 7 : index
    %c0_127 = arith.constant 0 : index
    %c0_128 = arith.constant 0 : index
    %c0_129 = arith.constant 0 : index
    %153 = vector.load %arg4[%c7, %c0_127, %c0_128, %c0_129] : memref<9x2x1x128xf32, #tpu.memory_space<vmem>>, vector<1x1x1x128xf32>
    %154 = vector.shape_cast %153 : vector<1x1x1x128xf32> to vector<1x128xf32>
    %155 = vector.shape_cast %154 : vector<1x128xf32> to vector<1x1x128xf32>
    %156 = vector.broadcast %155 : vector<1x1x128xf32> to vector<16x16x128xf32>
    %157 = arith.mulf %152, %156 : vector<16x16x128xf32>
    %158 = arith.addf %149, %157 : vector<16x16x128xf32>
    %c1_130 = arith.constant 1 : index
    %c2_131 = arith.constant 2 : index
    %c0_132 = arith.constant 0 : index
    %c0_133 = arith.constant 0 : index
    %159 = vector.load %arg9[%c1_130, %c2_131, %c0_132, %c0_133] : memref<2x18x18x128xf32, #tpu.memory_space<vmem>>, vector<1x16x18x128xf32>
    %160 = vector.shape_cast %159 : vector<1x16x18x128xf32> to vector<16x18x128xf32>
    %161 = vector.extract_strided_slice %160 {offsets = [0, 1, 0], sizes = [16, 16, 128], strides = [1, 1, 1]} : vector<16x18x128xf32> to vector<16x16x128xf32>
    %c7_134 = arith.constant 7 : index
    %c1_135 = arith.constant 1 : index
    %c0_136 = arith.constant 0 : index
    %c0_137 = arith.constant 0 : index
    %162 = vector.load %arg4[%c7_134, %c1_135, %c0_136, %c0_137] : memref<9x2x1x128xf32, #tpu.memory_space<vmem>>, vector<1x1x1x128xf32>
    %163 = vector.shape_cast %162 : vector<1x1x1x128xf32> to vector<1x128xf32>
    %164 = vector.shape_cast %163 : vector<1x128xf32> to vector<1x1x128xf32>
    %165 = vector.broadcast %164 : vector<1x1x128xf32> to vector<16x16x128xf32>
    %166 = arith.mulf %161, %165 : vector<16x16x128xf32>
    %167 = arith.addf %158, %166 : vector<16x16x128xf32>
    %c0_138 = arith.constant 0 : index
    %c2_139 = arith.constant 2 : index
    %c0_140 = arith.constant 0 : index
    %c0_141 = arith.constant 0 : index
    %168 = vector.load %arg9[%c0_138, %c2_139, %c0_140, %c0_141] : memref<2x18x18x128xf32, #tpu.memory_space<vmem>>, vector<1x16x18x128xf32>
    %169 = vector.shape_cast %168 : vector<1x16x18x128xf32> to vector<16x18x128xf32>
    %170 = vector.extract_strided_slice %169 {offsets = [0, 2, 0], sizes = [16, 16, 128], strides = [1, 1, 1]} : vector<16x18x128xf32> to vector<16x16x128xf32>
    %c8 = arith.constant 8 : index
    %c0_142 = arith.constant 0 : index
    %c0_143 = arith.constant 0 : index
    %c0_144 = arith.constant 0 : index
    %171 = vector.load %arg4[%c8, %c0_142, %c0_143, %c0_144] : memref<9x2x1x128xf32, #tpu.memory_space<vmem>>, vector<1x1x1x128xf32>
    %172 = vector.shape_cast %171 : vector<1x1x1x128xf32> to vector<1x128xf32>
    %173 = vector.shape_cast %172 : vector<1x128xf32> to vector<1x1x128xf32>
    %174 = vector.broadcast %173 : vector<1x1x128xf32> to vector<16x16x128xf32>
    %175 = arith.mulf %170, %174 : vector<16x16x128xf32>
    %176 = arith.addf %167, %175 : vector<16x16x128xf32>
    %c1_145 = arith.constant 1 : index
    %c2_146 = arith.constant 2 : index
    %c0_147 = arith.constant 0 : index
    %c0_148 = arith.constant 0 : index
    %177 = vector.load %arg9[%c1_145, %c2_146, %c0_147, %c0_148] : memref<2x18x18x128xf32, #tpu.memory_space<vmem>>, vector<1x16x18x128xf32>
    %178 = vector.shape_cast %177 : vector<1x16x18x128xf32> to vector<16x18x128xf32>
    %179 = vector.extract_strided_slice %178 {offsets = [0, 2, 0], sizes = [16, 16, 128], strides = [1, 1, 1]} : vector<16x18x128xf32> to vector<16x16x128xf32>
    %c8_149 = arith.constant 8 : index
    %c1_150 = arith.constant 1 : index
    %c0_151 = arith.constant 0 : index
    %c0_152 = arith.constant 0 : index
    %180 = vector.load %arg4[%c8_149, %c1_150, %c0_151, %c0_152] : memref<9x2x1x128xf32, #tpu.memory_space<vmem>>, vector<1x1x1x128xf32>
    %181 = vector.shape_cast %180 : vector<1x1x1x128xf32> to vector<1x128xf32>
    %182 = vector.shape_cast %181 : vector<1x128xf32> to vector<1x1x128xf32>
    %183 = vector.broadcast %182 : vector<1x1x128xf32> to vector<16x16x128xf32>
    %184 = arith.mulf %179, %183 : vector<16x16x128xf32>
    %185 = arith.addf %176, %184 : vector<16x16x128xf32>
    %c0_153 = arith.constant 0 : index
    %c0_154 = arith.constant 0 : index
    %186 = vector.load %arg5[%c0_153, %c0_154] : memref<1x128xf32, #tpu.memory_space<vmem>>, vector<1x128xf32>
    %187 = vector.shape_cast %186 : vector<1x128xf32> to vector<1x1x128xf32>
    %188 = vector.broadcast %187 : vector<1x1x128xf32> to vector<16x16x128xf32>
    %189 = arith.addf %185, %188 : vector<16x16x128xf32>
    %cst_155 = arith.constant 0.000000e+00 : f32
    %190 = vector.broadcast %cst_155 : f32 to vector<16x16x128xf32>
    %191 = arith.maximumf %189, %190 : vector<16x16x128xf32>
    %192 = vector.shape_cast %191 : vector<16x16x128xf32> to vector<256x128xf32>
    %193 = arith.truncf %192 : vector<256x128xf32> to vector<256x128xbf16>
    %c0_156 = arith.constant 0 : index
    %c0_157 = arith.constant 0 : index
    %194 = vector.load %arg6[%c0_156, %c0_157] : memref<128x128xbf16, #tpu.memory_space<vmem>>, vector<128x128xbf16>
    %cst_158 = arith.constant dense<0.000000e+00> : vector<256x128xf32>
    %195 = tpu.matmul %193, %194, %cst_158 {dimension_numbers = #tpu.dot_dimension_numbers<[1], [0], [0], [1], [0, 0, 1, 1], [], []>} : vector<256x128xbf16>, vector<128x128xbf16>, vector<256x128xf32> -> vector<256x128xf32>
    %196 = arith.extf %1 : vector<256x128xbf16> to vector<256x128xf32>
    %c0_159 = arith.constant 0 : index
    %c0_160 = arith.constant 0 : index
    %197 = vector.load %arg7[%c0_159, %c0_160] : memref<1x128xf32, #tpu.memory_space<vmem>>, vector<1x128xf32>
    %198 = vector.broadcast %197 : vector<1x128xf32> to vector<256x128xf32>
    %199 = arith.addf %195, %198 : vector<256x128xf32>
    %200 = arith.addf %199, %196 : vector<256x128xf32>
    %cst_161 = arith.constant 0.000000e+00 : f32
    %201 = vector.broadcast %cst_161 : f32 to vector<256x128xf32>
    %202 = arith.maximumf %200, %201 : vector<256x128xf32>
    %c0_162 = arith.constant 0 : index
    %c0_163 = arith.constant 0 : index
    %c0_164 = arith.constant 0 : index
    %203 = vector.load %arg8[%c0_162, %c0_163, %c0_164] : memref<1x256x128xf32, #tpu.memory_space<vmem>>, vector<1x256x128xf32>
    %204 = vector.shape_cast %203 : vector<1x256x128xf32> to vector<256x128xf32>
    %205 = vector.shape_cast %202 : vector<256x128xf32> to vector<1x256x128xf32>
    tpu.vector_store %arg8[%c0_162, %c0_163, %c0_164], %205 {strides = array<i32>} : memref<1x256x128xf32, #tpu.memory_space<vmem>>, vector<1x256x128xf32>,
    return
  }
  func.func @transform_0(%arg0: i32) -> (i32, i32, i32) {
    %c0_i32 = arith.constant 0 : i32
    %c0_i32_0 = arith.constant 0 : i32
    %c0_i32_1 = arith.constant 0 : i32
    return %arg0, %c0_i32, %c0_i32_0 : i32, i32, i32
  }
  func.func @transform_1(%arg0: i32) -> (i32, i32) {
    %c0_i32 = arith.constant 0 : i32
    %c0_i32_0 = arith.constant 0 : i32
    %c0_i32_1 = arith.constant 0 : i32
    return %c0_i32, %c0_i32_0 : i32, i32
  }
  func.func @transform_2(%arg0: i32) -> (i32, i32) {
    %c0_i32 = arith.constant 0 : i32
    %c0_i32_0 = arith.constant 0 : i32
    %c0_i32_1 = arith.constant 0 : i32
    return %c0_i32, %c0_i32_0 : i32, i32
  }
  func.func @transform_3(%arg0: i32) -> (i32, i32, i32, i32) {
    %c0_i32 = arith.constant 0 : i32
    %c0_i32_0 = arith.constant 0 : i32
    %c0_i32_1 = arith.constant 0 : i32
    %c0_i32_2 = arith.constant 0 : i32
    %c0_i32_3 = arith.constant 0 : i32
    return %c0_i32, %c0_i32_0, %c0_i32_1, %c0_i32_2 : i32, i32, i32, i32
  }
  func.func @transform_4(%arg0: i32) -> (i32, i32) {
    %c0_i32 = arith.constant 0 : i32
    %c0_i32_0 = arith.constant 0 : i32
    %c0_i32_1 = arith.constant 0 : i32
    return %c0_i32, %c0_i32_0 : i32, i32
  }
  func.func @transform_5(%arg0: i32) -> (i32, i32) {
    %c0_i32 = arith.constant 0 : i32
    %c0_i32_0 = arith.constant 0 : i32
    %c0_i32_1 = arith.constant 0 : i32
    return %c0_i32, %c0_i32_0 : i32, i32
  }
  func.func @transform_6(%arg0: i32) -> (i32, i32) {
    %c0_i32 = arith.constant 0 : i32
    %c0_i32_0 = arith.constant 0 : i32
    %c0_i32_1 = arith.constant 0 : i32
    return %c0_i32, %c0_i32_0 : i32, i32
  }
  func.func @transform_7(%arg0: i32) -> (i32, i32, i32) {
    %c0_i32 = arith.constant 0 : i32
    %c0_i32_0 = arith.constant 0 : i32
    %c0_i32_1 = arith.constant 0 : i32
    return %arg0, %c0_i32, %c0_i32_0 : i32, i32, i32
  }
}

</mosaic_0001>

<bundles_post_ra>
// kernel: bottleneckx_forward.1
= control target key start
LH: loop header
LB: loop body
LE: loop exit
PB: predicated region body
PF: predicated region fallthrough
CT: control target
= control target key end

     0   :  { %12 = vsyncpa [#allocation4], 0  ;;  %s9206_s0 = inlined_call_operand.vmem [shape: bf16[4,256,128], index: 0, kind: input, shape index: {}]   ;;  %s9207_s1 = inlined_call_operand.vmem [shape: bf16[128,256], index: 1, kind: input, shape index: {}]   ;;  %s9208_s2 = inlined_call_operand.vmem [shape: f32[1,256], index: 2, kind: input, shape index: {}]   ;;  %s9209_s3 = inlined_call_operand.vmem [shape: f32[9,2,1,128], index: 3, kind: input, shape index: {}]   ;;  %s9210_s4 = inlined_call_operand.vmem [shape: f32[1,128], index: 4, kind: input, shape index: {}]   ;;  %s9211_s5 = inlined_call_operand.vmem [shape: bf16[128,128], index: 5, kind: input, shape index: {}]   ;;  %s9212_s6 = inlined_call_operand.vmem [shape: f32[1,128], index: 6, kind: input, shape index: {}]   ;;  %s9213_s7 = inlined_call_operand.hbm [shape: f32[4,256,128], index: 7, kind: output, shape index: {}]  }
   0x1   :  { %14 = vsyncpa [#allocation4 + $0x1], 0  ;;  %s5796_s24 = smov 0   ;;  %s5798_s25 = smov 0  }
   0x2   :  { %s5800_s26 = smov 0   ;;  %s5802_s27 = smov 0  }
   0x3 LB: > { %s5817_s28 = sadd.s32 4294967295, %s5751_s27   ;;  %s5241_s29 = sadd.s32 4294967294, %s5751_s27   ;;  %s5751_s27 = sphi %s5802_s27, %s9622_s27   ;;  %s5747_s26 = sphi %s5800_s26, %s9621_s26   ;;  %s5743_s25 = sphi %s5798_s25, %s9620_s25   ;;  %s5739_s24 = sphi %s5796_s24, %s9619_s24  }
   0x4   : > { %s5821_s30 = sadd.s32 1, %s5751_s27   ;;  %s179_s8 = sadd.s32 1, %s5747_s26 }
   0x5   : > { %s176_s9 = ssub.s32 %s5751_s27, %s5821_s30  ;;  %p189_p0 = scmp.ne.s32.totalorder %s5747_s26, %s5743_s25 }
   0x6   : > { %p177_p1 = scmp.eq.s32.totalorder %s176_s9, 0  ;;  %p190_p2 = scmp.eq.s32.totalorder %s5817_s28, 3 }
   0x7   : > { %p195_p3 = scmp.ne.s32.totalorder %s5743_s25, %s5739_s24  ;;  %p196_p4 = scmp.eq.s32.totalorder %s5241_s29, 3 }
   0x8   : > { %s5832_s10 = scalar_select %p177_p1, %s5747_s26, %s179_s8  }
   0x9   : > { %p5834_p5 = por %p190_p2, %p189_p0  ;;  %p5838_p6 = por %p196_p4, %p195_p3 }
   0xa   : > { %p5244_p7 = scmp.ge.s32.totalorder %s5751_s27, 1  ;;  %p240_p8 = scmp.lt.s32.totalorder %s5751_s27, 5 }
   0xc   : > { %p241_p9 = pnand %p5244_p7, %p240_p8 }
   0xe   : > { %244 = sbr.rel (%p241_p9) target bundleno = 1034 (0x40a), region = 48 }
  0x13   : > { %v5370_v0 = vld [vmem:[%s9207_s1 + $0x70] sm:$0xf]  ;;  %v5462_v1 = vld [vmem:[%s9207_s1 + $0x74] sm:$0xf0]  ;;  %v5461_v2 = vld [vmem:[%s9207_s1 + $0x74] sm:$0xf] }
  0x14   : > { %v5371_v3 = vor.u32 %v5462_v1, %v5370_v0  ;;  %v5372_v4 = vld [vmem:[%s9207_s1 + $0x78] sm:$0xf0]  ;;  %v5362_v5 = vld [vmem:[%s9207_s1 + $0x60] sm:$0xf]  ;;  %v5460_v6 = vld [vmem:[%s9207_s1 + $0x64] sm:$0xf0] }
  0x15   : > { %v5862_v7 = vor.u32 %v5461_v2, %v5372_v4  ;;  %v5459_v8 = vld [vmem:[%s9207_s1 + $0x64] sm:$0xf]  ;;  %v5364_v9 = vld [vmem:[%s9207_s1 + $0x68] sm:$0xf0]  ;;  %v5363_v10 = vor.u32 %v5460_v6, %v5362_v5  ;;  %v5354_v12 = vld [vmem:[%s9207_s1 + $0x50] sm:$0xf] }
  0x16   : > { %507 = vmatpush.bf16.msra.mxu0 %v5371_v3  ;;  %5472 = vmatpush.bf16.msra.mxu3 %v5371_v3  ;;  %v5871_v11 = vor.u32 %v5459_v8, %v5364_v9  ;;  %v5458_v13 = vld [vmem:[%s9207_s1 + $0x54] sm:$0xf0]  ;;  %v5457_v14 = vld [vmem:[%s9207_s1 + $0x54] sm:$0xf]  ;;  %v5356_v15 = vld [vmem:[%s9207_s1 + $0x58] sm:$0xf0] }
  0x17   : > { %596 = vmatpush.bf16.msra.mxu1 %v5862_v7  ;;  %v5355_v16 = vor.u32 %v5458_v13, %v5354_v12  ;;  %v5359_v17 = vor.u32 %v5457_v14, %v5356_v15  ;;  %v5346_v18 = vld [vmem:[%s9207_s1 + $0x40] sm:$0xf]  ;;  %v5456_v19 = vld [vmem:[%s9207_s1 + $0x44] sm:$0xf0]  ;;  %v5455_v20 = vld [vmem:[%s9207_s1 + $0x44] sm:$0xf] }
  0x18   : > { %v5348_v21 = vld [vmem:[%s9207_s1 + $0x48] sm:$0xf0]  ;;  %v5338_v22 = vld [vmem:[%s9207_s1 + $0x30] sm:$0xf]  ;;  %v5454_v23 = vld [vmem:[%s9207_s1 + $0x34] sm:$0xf0]  ;;  %v5347_v24 = vor.u32 %v5456_v19, %v5346_v18 }
  0x19   : > { %v5453_v25 = vld [vmem:[%s9207_s1 + $0x34] sm:$0xf]  ;;  %v5351_v26 = vor.u32 %v5455_v20, %v5348_v21  ;;  %v5340_v27 = vld [vmem:[%s9207_s1 + $0x38] sm:$0xf0]  ;;  %v5330_v28 = vld [vmem:[%s9207_s1 + $0x20] sm:$0xf]  ;;  %v5339_v30 = vor.u32 %v5454_v23, %v5338_v22 }
  0x1a   : > { %508 = vmatpush.bf16.msra.mxu0 %v5363_v10  ;;  %5473 = vmatpush.bf16.msra.mxu3 %v5363_v10  ;;  %v5452_v29 = vld [vmem:[%s9207_s1 + $0x24] sm:$0xf0]  ;;  %v5451_v31 = vld [vmem:[%s9207_s1 + $0x24] sm:$0xf]  ;;  %v5343_v32 = vor.u32 %v5453_v25, %v5340_v27  ;;  %v5332_v33 = vld [vmem:[%s9207_s1 + $0x28] sm:$0xf0] }
  0x1b   : > { %597 = vmatpush.bf16.msra.mxu1 %v5871_v11  ;;  %p272_p10 = scmp.lt.s32.totalorder %s5817_s28, 3  ;;  %v5331_v34 = vor.u32 %v5452_v29, %v5330_v28  ;;  %v5335_v35 = vor.u32 %v5451_v31, %v5332_v33  ;;  %v5322_v36 = vld [vmem:[%s9207_s1 + $0x10] sm:$0xf]  ;;  %v5450_v37 = vld [vmem:[%s9207_s1 + $0x14] sm:$0xf0]  ;;  %v5753_v59 = vmov 0.0  }
  0x1c   : > { %v5449_v38 = vld [vmem:[%s9207_s1 + $0x14] sm:$0xf]  ;;  %v5324_v39 = vld [vmem:[%s9207_s1 + $0x18] sm:$0xf0]  ;;  %v5323_v40 = vor.u32 %v5450_v37, %v5322_v36  ;;  %v5314_v42 = vld [vmem:[%s9207_s1] sm:$0xf] }
  0x1d   : > { %s273_s23 = scalar_select %p272_p10, %s5817_s28, 3  ;;  %v5327_v41 = vor.u32 %v5449_v38, %v5324_v39  ;;  %v5448_v43 = vld [vmem:[%s9207_s1 + $0x4] sm:$0xf0]  ;;  %v5447_v44 = vld [vmem:[%s9207_s1 + $0x4] sm:$0xf]  ;;  %910 = vst [vmem:[#allocation2 + $0x2b0] sm:$0xff] %v5753_v59 }
  0x1e   : > { %509 = vmatpush.bf16.msra.mxu0 %v5355_v16  ;;  %5474 = vmatpush.bf16.msra.mxu3 %v5355_v16  ;;  %v5316_v45 = vld [vmem:[%s9207_s1 + $0x8] sm:$0xf0]  ;;  %v5315_v46 = vor.u32 %v5448_v43, %v5314_v42  ;;  %912 = vst [vmem:[#allocation2 + $0x10] sm:$0x3] %v5753_v59  ;;  %v5969_v60 = vld [vmem:[%s9209_s3 + $0x2] ss:$0 sm:$0xff] }
  0x1f   : > { %598 = vmatpush.bf16.msra.mxu1 %v5359_v17  ;;  %s5430_s18 = sshll.u32 %s273_s23, 7  ;;  %v5319_v47 = vor.u32 %v5447_v44, %v5316_v45  ;;  %1127 = vst [vmem:[#allocation2 + $0x270] sm:$0x3] %v5753_v59  ;;  %v5974_v61 = vld [vmem:[%s9209_s3] ss:$0 sm:$0xff]  ;;  %v1385_v1 = vmul.f32 0.0, %v5969_v60 }
  0x20   : > { %s5951_s9 = scalar_lea.vmem %s9206_s0, %s5430_s18  ;;  %963 = vst [vmem:[#allocation2 + $0x208] sm:$0x3] %v5753_v59  ;;  %v5979_v62 = vld [vmem:[%s9209_s3 + $0x1] ss:$0 sm:$0xff]  ;;  %v5985_v0 = vld [vmem:[%s9209_s3 + $0x3] ss:$0 sm:$0xff] }
  0x21   : > { %v5431_v48 = vld [vmem:[%s5951_s9] sm:$0xff]  ;;  %v5432_v50 = vld [vmem:[%s5951_s9 + $0x8] sm:$0xff]  ;;  %v5433_v52 = vld [vmem:[%s5951_s9 + $0x10] sm:$0xff]  ;;  %1178 = vst [vmem:[#allocation2 + $0x210] sm:$0x3] %v5753_v59  ;;  %v1231_v3 = vmul.f32 0.0, %v5974_v61 }
  0x22   : > { %510 = vmatpush.bf16.msra.mxu0 %v5347_v24  ;;  %5475 = vmatpush.bf16.msra.mxu3 %v5347_v24  ;;  %v5443_v49 = vld [vmem:[%s5951_s9 + $0x60] sm:$0xff]  ;;  %v5444_v51 = vld [vmem:[%s5951_s9 + $0x68] sm:$0xff]  ;;  %v5445_v53 = vld [vmem:[%s5951_s9 + $0x70] sm:$0xff]  ;;  %v1316_v4 = vmul.f32 0.0, %v5979_v62  ;;  %v1482_v6 = vrot.slane %v1385_v1, 1  ;;  %vm1481_vm0 = vcmask 1046528  }
  0x23   : > { %599 = vmatpush.bf16.msra.mxu1 %v5351_v26  ;;  %v5434_v54 = vld [vmem:[%s5951_s9 + $0x18] sm:$0xff]  ;;  %v5435_v56 = vld [vmem:[%s5951_s9 + $0x20] sm:$0xff]  ;;  %v5436_v57 = vld [vmem:[%s5951_s9 + $0x28] sm:$0xff]  ;;  %vm1972_vm1 = vcmask 1045504   ;;  %vm781_vm2 = vcmask 1040384   ;;  %s269_s16 = sand.u32 1, %s5743_s25  }
  0x24   : > { %v5446_v55 = vld [vmem:[%s5951_s9 + $0x78] sm:$0xff]  ;;  %v5437_v58 = vld [vmem:[%s5951_s9 + $0x30] sm:$0xff]  ;;  %v5993_v5 = vld [vmem:[%s9209_s3 + $0x4] ss:$0 sm:$0xff]  ;;  %v1348_v10 = vadd.f32 %v1316_v4, %v1231_v3  ;;  %s5245_s17 = sshll.u32 %s269_s16, 8  ;;  %s5471_s22 = sshll.u32 %s5817_s28, 8 }
  0x25   : > { %v5438_v63 = vld [vmem:[%s5951_s9 + $0x38] sm:$0xff]  ;;  %v1181_v2 = vld [vmem:[#allocation2 + $0x10] sm:$0x3]  ;;  %v1876_v12 = vmul.f32 0.0, %v5993_v5  ;;  %v6001_v13 = vld [vmem:[%s9209_s3 + $0x5] ss:$0 sm:$0xff]  ;;  %s5175_s23 = scalar_lea.hbm %s9213_s7, %s5471_s22 }
  0x26   : > { %511 = vmatpush.bf16.msra.mxu0 %v5339_v30  ;;  %5476 = vmatpush.bf16.msra.mxu3 %v5339_v30  ;;  %v1387_v8 = vmul.f32 %v5969_v60, %v1181_v2  ;;  %v1265_v9 = vld [vmem:[#allocation2 + $0x270] sm:$0x3]  ;;  %v325_v16 = vld [vmem:[%s9208_s2] sm:$0x3]  ;;  %v2122_v19 = vmul.f32 0.0, %v6001_v13  ;;  %v1878_v23 = vmul.f32 %v5993_v5, %v1181_v2  ;;  %v5470_v25 = vld [vmem:[%s9211_s5 + $0x38] sm:$0xff] }
  0x27   : > { %600 = vmatpush.bf16.msra.mxu1 %v5343_v32  ;;  %v1633_v15 = vmul.f32 %v5985_v0, %v1265_v9  ;;  %v1973_v18 = vrot.slane %v1876_v12, 2  ;;  %v6008_v20 = vperm.slane %v325_v16, 0  ;;  %v6012_v24 = vperm.slane %v325_v16, 1  ;;  %v5439_v27 = vld [vmem:[%s5951_s9 + $0x40] sm:$0xff]  ;;  %4978 = vmatpush.bf16.msra.mxu2 %v5470_v25  ;;  %v5469_v37 = vld [vmem:[%s9211_s5 + $0x30] sm:$0xff]  ;;  %s8211_s18 = scalar_lea.vmem [#allocation3], %s5245_s17 }
  0x28   : > { %v1485_v14 = vrot.slane %v1387_v8, 1  ;;  %v2218_v28 = vrot.slane %v2122_v19, 2  ;;  %v6028_v42 = vld [vmem:[%s9209_s3 + $0x6] ss:$0 sm:$0xff]  ;;  %v6065_v59 = vld [vmem:[%s9209_s3 + $0xb] ss:$0 sm:$0xff] }
  0x29   : > { %v1730_v22 = vrot.slane %v1633_v15, 1  ;;  %s5176_s13 = sshll.u32 %s8211_s18, 4  ;;  %s5178_s14 = sshll.u32 %s5175_s23, 4  ;;  %s5177_s13 = int_to_ptr.vmem [resolvable:$true] %s5176_s13  ;;  %s5179_s14 = int_to_ptr.hbm [resolvable:$true] %s5178_s14 }
  0x2a   : > { %512 = vmatpush.bf16.msra.mxu0 %v5331_v34  ;;  %5477 = vmatpush.bf16.msra.mxu3 %v5331_v34  ;;  %v1486_v21 = vsel %vm1481_vm0, %v1482_v6, %v1485_v14  ;;  %v1976_v34 = vrot.slane %v1878_v23, 2  ;;  %s5703_s28 = sshra.s32 %s5179_s14, 4  ;;  %s5709_s20 = scalar_lea.hbm %s9213_s7, 1024  ;;  %s5704_s28 = int_to_ptr.hbm [resolvable:$true] %s5703_s28 }
  0x2b   : > { %601 = vmatpush.bf16.msra.mxu1 %v5335_v35  ;;  %v1595_v30 = vadd.f32 %v1486_v21, %v1348_v10  ;;  %4979 = vmatpush.bf16.msra.mxu2 %v5469_v37  ;;  %s5705_s15 = scalar_lea.hbm %s5704_s28, 256  ;;  %p5710_p0 = scmp.lt.s32.totalorder %s5704_s28, %s9213_s7 }
  0x2c   : > { %v1977_v44 = vsel %vm1972_vm1, %v1973_v18, %v1976_v34  ;;  %p5706_p11 = scmp.ne.s32.totalorder %s5704_s28, %s5705_s15  ;;  %p5711_p1 = scmp.lt.s32.totalorder %s5709_s20, %s5705_s15 }
  0x2e   : > { %513 = vmatpush.bf16.msra.mxu0 %v5323_v40  ;;  %5478 = vmatpush.bf16.msra.mxu3 %v5323_v40  ;;  %p5707_p12 = pnand %p5706_p11, %p5834_p5  ;;  %p5712_p2 = por %p5711_p1, %p5710_p0 }
  0x2f   : > { %602 = vmatpush.bf16.msra.mxu1 %v5327_v41 }
  0x30   : > { %p5708_p13 = pneg %p5707_p12 }
  0x32   : > { %514 = vmatpush.bf16.msra.mxu0 %v5315_v46  ;;  %5479 = vmatpush.bf16.msra.mxu3 %v5315_v46  ;;  %p5713_p3 = pnand %p5712_p2, %p5708_p13 }
  0x33   : > { %603 = vmatpush.bf16.msra.mxu1 %v5319_v47 }
  0x35   : > { %515 = vmatmul.bf16.vlgmr.msra.gmra.mxu0 %v5431_v48  ;;  %575 = vmatmul.bf16.vlgmr.msra.gmra.mxu3 %v5443_v49 }
  0x36   : > { %5480 = vmatpush.bf16.msrb.mxu3 %v5862_v7  ;;  %604 = vmatmul.bf16.vlgmr.msra.gmra.mxu1 %v5431_v48  ;;  %v1631_v7 = vmul.f32 0.0, %v5985_v0 }
  0x3a   : > { %5481 = vmatpush.bf16.msrb.mxu3 %v5871_v11  ;;  %v1727_v11 = vrot.slane %v1631_v7, 1  ;;  %v5467_v7 = vld [vmem:[%s9211_s5 + $0x20] sm:$0xff] }
  0x3c   : > { %v1731_v33 = vsel %vm1481_vm0, %v1727_v11, %v1730_v22 }
  0x3e   : > { %5482 = vmatpush.bf16.msrb.mxu3 %v5359_v17  ;;  %v1594_v17 = vadd.f32 %v1482_v6, %v1348_v10 }
  0x42   : > { %5483 = vmatpush.bf16.msrb.mxu3 %v5351_v26  ;;  %v1839_v26 = vadd.f32 %v1727_v11, %v1594_v17 }
  0x44   : > { %v2085_v38 = vadd.f32 %v1973_v18, %v1839_v26 }
  0x45   : > { %520 = vmatmul.bf16.gmra.mxu0 %v5432_v50  ;;  %580 = vmatmul.bf16.gmra.mxu3 %v5444_v51 }
  0x46   : > { %5484 = vmatpush.bf16.msrb.mxu3 %v5343_v32  ;;  %609 = vmatmul.bf16.gmra.mxu1 %v5432_v50  ;;  %v2330_v48 = vadd.f32 %v2218_v28, %v2085_v38  ;;  %v6042_v50 = vld [vmem:[%s9209_s3 + $0x8] ss:$0 sm:$0xff] }
  0x4a   : > { %5485 = vmatpush.bf16.msrb.mxu3 %v5335_v35  ;;  %v2124_v35 = vmul.f32 %v6001_v13, %v1265_v9 }
  0x4c   : > { %v2221_v45 = vrot.slane %v2124_v35, 2 }
  0x4e   : > { %5486 = vmatpush.bf16.msrb.mxu3 %v5327_v41  ;;  %v1840_v41 = vadd.f32 %v1731_v33, %v1595_v30  ;;  %v2222_v4 = vsel %vm1972_vm1, %v2218_v28, %v2221_v45 }
  0x52   : > { %5487 = vmatpush.bf16.msrb.mxu3 %v5319_v47  ;;  %v5468_v47 = vld [vmem:[%s9211_s5 + $0x28] sm:$0xff] }
  0x53   : > { %4980 = vmatpush.bf16.msra.mxu2 %v5468_v47 }
  0x55   : > { %525 = vmatmul.bf16.gmra.mxu0 %v5433_v52  ;;  %585 = vmatmul.bf16.gmra.mxu3 %v5445_v53 }
  0x56   : > { %614 = vmatmul.bf16.gmra.mxu1 %v5433_v52  ;;  %5488 = vmatpush.bf16.msra.mxu3 %v5470_v25  ;;  %v6050_v52 = vld [vmem:[%s9209_s3 + $0x9] ss:$0 sm:$0xff] }
  0x57   : > { %4981 = vmatpush.bf16.msra.mxu2 %v5467_v7 }
  0x5a   : > { %5489 = vmatpush.bf16.msra.mxu3 %v5469_v37 }
  0x5e   : > { %5490 = vmatpush.bf16.msra.mxu3 %v5468_v47 }
  0x62   : > { %5491 = vmatpush.bf16.msra.mxu3 %v5467_v7 }
  0x65   : > { %530 = vmatmul.bf16.gmra.mxu0 %v5434_v54  ;;  %590 = vmatmul.bf16.gmra.mxu3 %v5446_v55 }
  0x66   : > { %619 = vmatmul.bf16.gmra.mxu1 %v5434_v54 }
  0x75   : > { %535 = vmatmul.bf16.gmra.mxu0 %v5435_v56  ;;  %664 = vmatmul.bf16.vlgmr.msrb.gmra.mxu3 %v5443_v49  ;;  %v6037_v49 = vld [vmem:[%s9209_s3 + $0x7] ss:$0 sm:$0xff] }
  0x76   : > { %624 = vmatmul.bf16.gmra.mxu1 %v5435_v56 }
  0x85   : > { %540 = vmatmul.bf16.gmra.mxu0 %v5436_v57  ;;  %669 = vmatmul.bf16.gmra.mxu3 %v5444_v51 }
  0x86   : > { %629 = vmatmul.bf16.gmra.mxu1 %v5436_v57  ;;  %v2086_v57 = vadd.f32 %v1977_v44, %v1840_v41 }
  0x88   : > { %v2331_v17 = vadd.f32 %v2222_v4, %v2086_v57 }
  0x95   : > { %545 = vmatmul.bf16.gmra.mxu0 %v5437_v58  ;;  %674 = vmatmul.bf16.gmra.mxu3 %v5445_v53  ;;  %v6055_v53 = vld [vmem:[%s9209_s3 + $0xa] ss:$0 sm:$0xff] }
  0x96   : > { %634 = vmatmul.bf16.gmra.mxu1 %v5437_v58 }
  0xa5   : > { %550 = vmatmul.bf16.gmra.mxu0 %v5438_v63  ;;  %679 = vmatmul.bf16.gmra.mxu3 %v5446_v55 }
  0xa6   : > { %639 = vmatmul.bf16.gmra.mxu1 %v5438_v63 }
  0xb2   : > { %v516_v29 = vpop.f32.mrf.mxu0 }
  0xb3   : > { %v517_v31 = vadd.f32 %v516_v29, %v6008_v20  ;;  %v605_v32 = vpop.f32.mrf.mxu1 }
  0xb4   : > { %v606_v36 = vadd.f32 %v605_v32, %v6012_v24  ;;  %v5440_v32 = vld [vmem:[%s5951_s9 + $0x48] sm:$0xff] }
  0xb5   : > { %v685_v39 = vmax.f32 %v517_v31, 0.0  ;;  %555 = vmatmul.bf16.gmra.mxu0 %v5439_v27 }
  0xb6   : > { %v686_v40 = vmax.f32 %v606_v36, 0.0  ;;  %644 = vmatmul.bf16.gmra.mxu1 %v5439_v27  ;;  %v5466_v27 = vld [vmem:[%s9211_s5 + $0x18] sm:$0xff] }
  0xb7   : > { %v782_v43 = vrot.slane %v685_v39, 7  ;;  %4982 = vmatpush.bf16.msra.mxu2 %v5466_v27  ;;  %5492 = vmatpush.bf16.msra.mxu3 %v5466_v27 }
  0xb8   : > { %v996_v46 = vrot.slane %v686_v40, 7  ;;  %v576_v56 = vpop.f32.mrf.mxu3 }
  0xb9   : > { %v6045_v51 = vsel %vm781_vm2, 0.0, %v782_v43  ;;  %v577_v26 = vadd.f32 %v576_v56, %v6008_v20 }
  0xba   : > { %v6058_v54 = vsel %vm781_vm2, 0.0, %v996_v46  ;;  %v518_v55 = vpop.f32.mrf.mxu0  ;;  %v2416_v58 = vmul.f32 %v6028_v42, %v6045_v51  ;;  %v6069_v63 = vmul.f32 %v5969_v60, %v6045_v51  ;;  %v6085_v10 = vmul.f32 %v6042_v50, %v6045_v51 }
  0xbb   : > { %v6073_v1 = vmul.f32 %v5985_v0, %v6058_v54  ;;  %v519_v2 = vadd.f32 %v518_v55, %v6008_v20  ;;  %v607_v3 = vpop.f32.mrf.mxu1  ;;  %v2534_v9 = vmul.f32 %v6037_v49, %v6058_v54  ;;  %v6089_v12 = vmul.f32 %v6050_v52, %v6058_v54  ;;  %v5465_v55 = vld [vmem:[%s9211_s5 + $0x10] sm:$0xff] }
  0xbc   : > { %v608_v6 = vadd.f32 %v607_v3, %v6012_v24  ;;  %v2448_v8 = vadd.f32 %v2416_v58, %v2330_v48  ;;  %v6093_v14 = vmul.f32 %v6055_v53, %v6045_v51  ;;  %v6097_v15 = vmul.f32 %v5974_v61, %v6045_v51  ;;  %4983 = vmatpush.bf16.msra.mxu2 %v5465_v55 }
  0xbd   : > { %v687_v11 = vmax.f32 %v519_v2, 0.0  ;;  %v6101_v18 = vmul.f32 %v6065_v59, %v6058_v54  ;;  %v6106_v21 = vmul.f32 %v5979_v62, %v6058_v54  ;;  %v2699_v29 = vrot.slane %v6085_v10, 1  ;;  %5493 = vmatpush.bf16.msra.mxu3 %v5465_v55 }
  0xbe   : > { %v688_v16 = vmax.f32 %v608_v6, 0.0  ;;  %v6113_v28 = vadd.f32 %v2534_v9, %v2448_v8  ;;  %v2944_v33 = vrot.slane %v6089_v12, 1  ;;  %v3189_v34 = vrot.slane %v6093_v14, 2 }
  0xbf   : > { %v783_v23 = vrot.slane %v687_v11, 7  ;;  %v733_v38 = vmax.f32 %v577_v26, 0.0 }
  0xc0   : > { %v997_v25 = vrot.slane %v688_v16, 7  ;;  %v6140_v48 = vpop.f32.mrf.mxu3 }
  0xc1   : > { %v6117_v30 = vsel %vm781_vm2, %v782_v43, %v783_v23  ;;  %v894_v31 = vsel %vm781_vm2, %v783_v23, 0.0  ;;  %v6138_v47 = vrot.slane %v733_v38, 7  ;;  %v5464_v23 = vld [vmem:[%s9211_s5 + $0x8] sm:$0xff]  ;;  %v579_v22 = vadd.f32 %v6140_v48, %v6008_v20 }
  0xc2   : > { %v998_v35 = vsel %vm781_vm2, %v996_v46, %v997_v25  ;;  %v1108_v36 = vsel %vm781_vm2, %v997_v25, 0.0  ;;  %v521_v37 = vpop.f32.mrf.mxu0  ;;  %915 = vst [vmem:[#allocation2 + $0x38] sm:$0x3] %v894_v31  ;;  %v6128_v40 = vmul.f32 %v5969_v60, %v6117_v30  ;;  %v2417_v44 = vmul.f32 %v6028_v42, %v6117_v30  ;;  %4984 = vmatpush.bf16.msra.mxu2 %v5464_v23 }
  0xc3   : > { %v522_v41 = vadd.f32 %v521_v37, %v6008_v20  ;;  %v610_v43 = vpop.f32.mrf.mxu1  ;;  %v6135_v45 = vmul.f32 %v6042_v50, %v6117_v30  ;;  %1129 = vst [vmem:[#allocation2 + $0xe0] sm:$0xff] %v998_v35  ;;  %v2535_v56 = vmul.f32 %v6037_v49, %v998_v35  ;;  %v6147_v57 = vmul.f32 %v6050_v52, %v998_v35 }
  0xc4   : > { %v611_v46 = vadd.f32 %v610_v43, %v6012_v24  ;;  %1130 = vst [vmem:[#allocation2] sm:$0x3] %v1108_v36  ;;  %v2449_v2 = vadd.f32 %v2417_v44, %v2331_v17  ;;  %v6152_v4 = vmul.f32 %v6055_v53, %v6117_v30  ;;  %v890_v7 = vsel %vm781_vm2, 0.0, %v6138_v47  ;;  %5494 = vmatpush.bf16.msra.mxu3 %v5464_v23 }
  0xc5   : > { %v689_v58 = vmax.f32 %v522_v41, 0.0  ;;  %560 = vmatmul.bf16.gmra.mxu0 %v5440_v32  ;;  %v9216_v3 = vrot.slane %v6135_v45, 1  ;;  %v9215_v8 = vrot.slane %v6147_v57, 1  ;;  %v6158_v9 = vmul.f32 %v6065_v59, %v998_v35  ;;  %949 = vst [vmem:[#allocation2 + $0xb0] sm:$0xff] %v890_v7 }
  0xc6   : > { %v690_v6 = vmax.f32 %v611_v46, 0.0  ;;  %649 = vmatmul.bf16.gmra.mxu1 %v5440_v32  ;;  %v6162_v12 = vmul.f32 %v5974_v61, %v890_v7  ;;  %v6165_v16 = vmul.f32 %v5969_v60, %v890_v7  ;;  %v2567_v25 = vadd.f32 %v2535_v56, %v2449_v2 }
  0xc7   : > { %v785_v11 = vrot.slane %v689_v58, 7  ;;  %v2701_v26 = vsel %vm1481_vm0, %v2699_v29, %v9216_v3  ;;  %v9214_v27 = vrot.slane %v6152_v4, 2  ;;  %v2946_v35 = vsel %vm1481_vm0, %v2944_v33, %v9215_v8 }
  0xc8   : > { %9308 = vst [vmem:[#allocation6_spill] sm:$0xff] %v6162_v12  ;;  %v999_v17 = vrot.slane %v690_v6, 7  ;;  %v2811_v33 = vadd.f32 %v2701_v26, %v6113_v28  ;;  %v581_v39 = vpop.f32.mrf.mxu3  ;;  %v735_v12 = vmax.f32 %v579_v22, 0.0 }
  0xc9   : > { %9309 = vst [vmem:[#allocation7_spill] sm:$0xff] %v6165_v16  ;;  %v6175_v31 = vsel %vm781_vm2, 0.0, %v785_v11  ;;  %v1184_v37 = vld [vmem:[#allocation2 + $0x38] sm:$0x3]  ;;  %v3191_v2 = vsel %vm1972_vm1, %v3189_v34, %v9214_v27  ;;  %v582_v34 = vadd.f32 %v581_v39, %v6008_v20 }
  0xca   : > { %916 = vst [vmem:[#allocation2 + $0xf8] sm:$0xff] %v6175_v31  ;;  %v6185_v29 = vmul.f32 %v5974_v61, %v6175_v31  ;;  %v6189_v38 = vmul.f32 %v5969_v60, %v6175_v31  ;;  %v6192_v41 = vsel %vm781_vm2, 0.0, %v999_v17  ;;  %v523_v43 = vpop.f32.mrf.mxu0  ;;  %v2365_v44 = vld [vmem:[#allocation2 + $0x38] sm:$0x3]  ;;  %v6196_v46 = vmul.f32 %v5969_v60, %v1184_v37 }
  0xcb   : > { %v6199_v55 = vmul.f32 %v5993_v5, %v1184_v37  ;;  %1131 = vst [vmem:[#allocation2 + $0xb8] sm:$0xff] %v6192_v41  ;;  %v6204_v56 = vmul.f32 %v5985_v0, %v6192_v41  ;;  %v612_v58 = vpop.f32.mrf.mxu1  ;;  %v6211_v28 = vld [vmem:[#allocation2] sm:$0x3]  ;;  %v6215_v6 = vmul.f32 %v5979_v62, %v6192_v41  ;;  %v524_v7 = vadd.f32 %v523_v43, %v6008_v20 }
  0xcc   : > { %9310 = vst [vmem:[#allocation8_spill] sm:$0xff] %v6185_v29  ;;  %v613_v26 = vadd.f32 %v612_v58, %v6012_v24  ;;  %v5463_v37 = vld [vmem:[%s9211_s5] sm:$0xff]  ;;  %v2605_v14 = vmul.f32 %v6042_v50, %v2365_v44  ;;  %v6229_v19 = vmul.f32 %v5985_v0, %v6211_v28  ;;  %v3056_v8 = vadd.f32 %v2946_v35, %v2811_v33 }
  0xcd   : > { %9311 = vst [vmem:[#allocation9_spill] sm:$0xff] %v6189_v38  ;;  %v6222_v32 = vld [vmem:[#allocation2] sm:$0x3]  ;;  %v691_v58 = vmax.f32 %v524_v7, 0.0  ;;  %4985 = vmatpush.bf16.msra.mxu2 %v5463_v37  ;;  %v9314_v43 = vrot.slane %v6135_v45, 1  ;;  %5495 = vmatpush.bf16.msra.mxu3 %v5463_v37  ;;  %v737_v38 = vmax.f32 %v582_v34, 0.0  ;;  %v3095_v23 = vmul.f32 %v6055_v53, %v2365_v44 }
  0xce   : > { %9312 = vst [vmem:[#allocation10_spill] sm:$0xff] %v6204_v56  ;;  %v692_v10 = vmax.f32 %v613_v26, 0.0  ;;  %v2702_v36 = vrot.slane %v2605_v14, 1  ;;  %v2850_v27 = vmul.f32 %v6050_v52, %v6222_v32  ;;  %v5441_v14 = vld [vmem:[%s5951_s9 + $0x50] sm:$0xff]  ;;  %v819_v35 = vrot.slane %v735_v12, 7 }
  0xcf   : > { %9313 = vst [vmem:[#allocation11_spill] sm:$0xff] %v6215_v6  ;;  %v786_v3 = vrot.slane %v691_v58, 7  ;;  %v3192_v44 = vrot.slane %v3095_v23, 2  ;;  %v6275_v23 = vld [vmem:[%s9209_s3 + $0xc] ss:$0 sm:$0xff] }
  0xd0   : > { %v1000_v16 = vrot.slane %v692_v10, 7  ;;  %v2703_v7 = vsel %vm1481_vm0, %v9314_v43, %v2702_v36  ;;  %v2947_v26 = vrot.slane %v2850_v27, 1  ;;  %v6256_v36 = vrot.slane %v737_v38, 7 }
  0xd1   : > { %v2812_v6 = vadd.f32 %v2703_v7, %v2567_v25  ;;  %v6244_v56 = vsel %vm781_vm2, %v785_v11, %v786_v3  ;;  %v895_v39 = vsel %vm781_vm2, %v786_v3, 0.0  ;;  %v820_v37 = vsel %vm781_vm2, %v6138_v47, %v819_v35 }
  0xd2   : > { %v6248_v48 = vsel %vm781_vm2, %v999_v17, %v1000_v16  ;;  %v1109_v45 = vsel %vm781_vm2, %v1000_v16, 0.0  ;;  %v526_v10 = vpop.f32.mrf.mxu0  ;;  %v6253_v27 = vmul.f32 %v5969_v60, %v6244_v56  ;;  %918 = vst [vmem:[#allocation2 + $0x80] sm:$0x3] %v895_v39  ;;  %v9316_v17 = vrot.slane %v6147_v57, 1 }
  0xd3   : > { %v527_v22 = vadd.f32 %v526_v10, %v6008_v20  ;;  %v615_v25 = vpop.f32.mrf.mxu1  ;;  %1132 = vst [vmem:[#allocation2 + $0x160] sm:$0xff] %v6248_v48  ;;  %v906_v12 = vsel %vm781_vm2, %v819_v35, 0.0  ;;  %v3301_v38 = vadd.f32 %v3191_v2, %v3056_v8  ;;  %v6268_v43 = vmul.f32 %v5969_v60, %v820_v37 }
  0xd4   : > { %9315 = vst [vmem:[#allocation12_spill] sm:$0xff] %v6253_v27  ;;  %v616_v3 = vadd.f32 %v615_v25, %v6012_v24  ;;  %v2948_v16 = vsel %vm1481_vm0, %v9316_v17, %v2947_v26  ;;  %v891_v57 = vsel %vm781_vm2, 0.0, %v6256_v36  ;;  %v9321_v35 = vrot.slane %v6158_v9, 2 }
  0xd5   : > { %v693_v33 = vmax.f32 %v527_v22, 0.0  ;;  %565 = vmatmul.bf16.gmra.mxu0 %v5441_v14  ;;  %1133 = vst [vmem:[#allocation2 + $0x140] sm:$0x3] %v1109_v45  ;;  %v3057_v58 = vadd.f32 %v2948_v16, %v2812_v6  ;;  %v6279_v8 = vmul.f32 %v5974_v61, %v891_v57  ;;  %v6282_v2 = vmul.f32 %v5969_v60, %v891_v57 }
  0xd6   : > { %v694_v34 = vmax.f32 %v616_v3, 0.0  ;;  %654 = vmatmul.bf16.gmra.mxu1 %v5441_v14  ;;  %9317 = vst [vmem:[#allocation13_spill] sm:$0xff] %v6268_v43  ;;  %v9320_v6 = vrot.slane %v6152_v4, 2  ;;  %v3340_v45 = vmul.f32 %v6065_v59, %v6222_v32  ;;  %v9322_v3 = vrot.slane %v6101_v18, 2 }
  0xd7   : > { %v788_v7 = vrot.slane %v693_v33, 7  ;;  %950 = vst [vmem:[#allocation2 + $0x1a8] sm:$0xff] %v820_v37  ;;  %v3632_v33 = vmul.f32 %v6275_v23, %v6175_v31  ;;  %v3633_v47 = vmul.f32 %v6275_v23, %v6244_v56 }
  0xd8   : > { %9318 = vst [vmem:[#allocation14_spill] sm:$0xff] %v6279_v8  ;;  %v1002_v26 = vrot.slane %v694_v34, 7  ;;  %v3193_v39 = vsel %vm1972_vm1, %v9320_v6, %v3192_v44  ;;  %v3436_v17 = vsel %vm1972_vm1, %v9322_v3, %v9321_v35  ;;  %v3437_v32 = vrot.slane %v3340_v45, 2  ;;  %v6323_v35 = vld [vmem:[%s9209_s3 + $0xd] ss:$0 sm:$0xff] }
  0xd9   : > { %9319 = vst [vmem:[#allocation15_spill] sm:$0xff] %v6282_v2  ;;  %v880_v10 = vsel %vm781_vm2, 0.0, %v788_v7  ;;  %v3302_v25 = vadd.f32 %v3193_v39, %v3057_v58  ;;  %v1187_v37 = vld [vmem:[#allocation2 + $0x80] sm:$0x3]  ;;  %v3546_v58 = vadd.f32 %v3436_v17, %v3301_v38 }
  0xda   : > { %951 = vst [vmem:[#allocation2 + $0x230] sm:$0x3] %v906_v12  ;;  %v6298_v4 = vmul.f32 %v5969_v60, %v880_v10  ;;  %v1094_v16 = vsel %vm781_vm2, 0.0, %v1002_v26  ;;  %v528_v44 = vpop.f32.mrf.mxu0  ;;  %v6304_v12 = vmul.f32 %v5974_v61, %v880_v10  ;;  %v6311_v6 = vmul.f32 %v5969_v60, %v1187_v37 }
  0xdb   : > { %952 = vst [vmem:[#allocation2 + $0x328] sm:$0xff] %v891_v57  ;;  %v6307_v18 = vmul.f32 %v5985_v0, %v1094_v16  ;;  %v529_v34 = vadd.f32 %v528_v44, %v6008_v20  ;;  %v617_v57 = vpop.f32.mrf.mxu1  ;;  %v6314_v39 = vmul.f32 %v5993_v5, %v1187_v37  ;;  %v6317_v45 = vmul.f32 %v5979_v62, %v1094_v16 }
  0xdc   : > { %919 = vst [vmem:[#allocation2 + $0x308] sm:$0xff] %v880_v10  ;;  %v618_v10 = vadd.f32 %v617_v57, %v6012_v24  ;;  %v6325_v3 = vld [vmem:[#allocation2 + $0x140] sm:$0x3]  ;;  %v9330_v37 = vrot.slane %v6158_v9, 2  ;;  %v3664_v2 = vadd.f32 %v3632_v33, %v3546_v58  ;;  %v6362_v58 = vld [vmem:[%s9209_s3 + $0xf] ss:$0 sm:$0xff] }
  0xdd   : > { %9323 = vst [vmem:[#allocation16_spill] sm:$0xff] %v6298_v4  ;;  %v695_v44 = vmax.f32 %v529_v34, 0.0  ;;  %v6335_v57 = vmul.f32 %v5985_v0, %v6325_v3 }
  0xde   : > { %9324 = vst [vmem:[#allocation17_spill] sm:$0xff] %v6304_v12  ;;  %v3438_v22 = vsel %vm1972_vm1, %v9330_v37, %v3437_v32  ;;  %v696_v14 = vmax.f32 %v618_v10, 0.0  ;;  %v6351_v10 = vld [vmem:[%s9209_s3 + $0xe] ss:$0 sm:$0xff] }
  0xdf   : > { %1134 = vst [vmem:[#allocation2 + $0x258] sm:$0xff] %v1094_v16  ;;  %v789_v11 = vrot.slane %v695_v44, 7  ;;  %v3547_v34 = vadd.f32 %v3438_v22, %v3302_v25  ;;  %v3750_v16 = vmul.f32 %v6323_v35, %v6192_v41  ;;  %v5442_v25 = vld [vmem:[%s5951_s9 + $0x58] sm:$0xff]  ;;  %v3819_v4 = vmul.f32 %v6351_v10, %v6175_v31 }
  0xe0   : > { %9325 = vst [vmem:[#allocation18_spill] sm:$0xff] %v6307_v18  ;;  %v1003_v9 = vrot.slane %v696_v14, 7 }
  0xe1   : > { %9326 = vst [vmem:[#allocation19_spill] sm:$0xff] %v6311_v6  ;;  %v1220_v17 = vld [vmem:[#allocation2 + $0x230] sm:$0x3]  ;;  %v6355_v22 = vsel %vm781_vm2, %v788_v7, %v789_v11  ;;  %v896_v14 = vsel %vm781_vm2, %v789_v11, 0.0  ;;  %v3665_v33 = vadd.f32 %v3633_v47, %v3547_v34  ;;  %v6373_v11 = vld [vmem:[#allocation2 + $0x80] sm:$0x3]  ;;  %v3751_v47 = vmul.f32 %v6323_v35, %v6248_v48 }
  0xe2   : > { %9327 = vst [vmem:[#allocation20_spill] sm:$0xff] %v6314_v39  ;;  %v6341_v32 = vmul.f32 %v5969_v60, %v1220_v17  ;;  %v6344_v37 = vmul.f32 %v5993_v5, %v1220_v17  ;;  %v6367_v17 = vmul.f32 %v5969_v60, %v6355_v22  ;;  %v6370_v38 = vsel %vm781_vm2, %v1002_v26, %v1003_v9  ;;  %v531_v44 = vpop.f32.mrf.mxu0 }
  0xe3   : > { %9328 = vst [vmem:[#allocation21_spill] sm:$0xff] %v6317_v45  ;;  %v1110_v7 = vsel %vm781_vm2, %v1003_v9, 0.0  ;;  %v532_v43 = vadd.f32 %v531_v44, %v6008_v20  ;;  %v620_v18 = vpop.f32.mrf.mxu1  ;;  %v6380_v45 = vld [vmem:[#allocation2 + $0x140] sm:$0x3]  ;;  %v3782_v26 = vadd.f32 %v3750_v16, %v3664_v2  ;;  %v3783_v12 = vadd.f32 %v3751_v47, %v3665_v33 }
  0xe4   : > { %9329 = vst [vmem:[#allocation22_spill] sm:$0xff] %v6325_v3  ;;  %v621_v9 = vadd.f32 %v620_v18, %v6012_v24  ;;  %v3821_v44 = vmul.f32 %v6351_v10, %v6373_v11  ;;  %v4064_v2 = vmul.f32 %v6362_v58, %v6192_v41  ;;  %v4065_v16 = vmul.f32 %v6362_v58, %v6248_v48  ;;  %v6397_v18 = vld [vmem:[%s9209_s3 + $0x10] ss:$0 sm:$0xff] }
  0xe5   : > { %9331 = vst [vmem:[#allocation23_spill] sm:$0xff] %v6335_v57  ;;  %v697_v34 = vmax.f32 %v532_v43, 0.0  ;;  %570 = vmatmul.bf16.gmra.mxu0 %v5442_v25  ;;  %v3915_v47 = vrot.slane %v3819_v4, 1  ;;  %v4066_v43 = vmul.f32 %v6362_v58, %v6380_v45  ;;  %v4309_v4 = vmul.f32 %v6397_v18, %v6175_v31 }
  0xe6   : > { %9332 = vst [vmem:[#allocation24_spill] sm:$0xff] %v6341_v32  ;;  %v698_v33 = vmax.f32 %v621_v9, 0.0  ;;  %659 = vmatmul.bf16.gmra.mxu1 %v5442_v25  ;;  %v3918_v32 = vrot.slane %v3821_v44, 1  ;;  %v4161_v3 = vrot.slane %v4065_v16, 1  ;;  %v4160_v6 = vrot.slane %v4064_v2, 1 }
  0xe7   : > { %9333 = vst [vmem:[#allocation25_spill] sm:$0xff] %v6344_v37  ;;  %v791_v37 = vrot.slane %v697_v34, 7  ;;  %v4163_v27 = vrot.slane %v4066_v43, 1 }
  0xe8   : > { %9334 = vst [vmem:[#allocation26_spill] sm:$0xff] %v6351_v10  ;;  %v1005_v39 = vrot.slane %v698_v33, 7  ;;  %v4162_v16 = vsel %vm1481_vm0, %v4160_v6, %v4161_v3 }
  0xe9   : > { %9335 = vst [vmem:[#allocation27_spill] sm:$0xff] %v6362_v58  ;;  %v881_v29 = vsel %vm781_vm2, 0.0, %v791_v37  ;;  %v4310_v58 = vmul.f32 %v6397_v18, %v6244_v56 }
  0xea   : > { %920 = vst [vmem:[#allocation2 + $0x138] sm:$0xff] %v6355_v22  ;;  %v6408_v8 = vmul.f32 %v5974_v61, %v881_v29  ;;  %v6411_v34 = vmul.f32 %v5969_v60, %v881_v29  ;;  %v1095_v44 = vsel %vm781_vm2, 0.0, %v1005_v39  ;;  %v533_v2 = vpop.f32.mrf.mxu0 }
  0xeb   : > { %9336 = vst [vmem:[#allocation28_spill] sm:$0xff] %v6367_v17  ;;  %v6422_v31 = vmul.f32 %v5985_v0, %v1095_v44  ;;  %v6426_v43 = vmul.f32 %v5979_v62, %v1095_v44  ;;  %v534_v6 = vadd.f32 %v533_v2, %v6008_v20  ;;  %v4405_v17 = vrot.slane %v4309_v4, 2 }
  0xec   : > { %921 = vst [vmem:[#allocation2 + $0xf0] sm:$0x3] %v896_v14  ;;  %v3820_v14 = vmul.f32 %v6351_v10, %v6244_v56  ;;  %v4311_v10 = vmul.f32 %v6397_v18, %v6373_v11 }
  0xed   : > { %1135 = vst [vmem:[#allocation2 + $0x90] sm:$0xff] %v6370_v38 }
  0xee   : > { %1136 = vst [vmem:[#allocation2 + $0x78] sm:$0x3] %v1110_v7  ;;  %v3916_v7 = vrot.slane %v3820_v14, 1 }
  0xef   : > { %922 = vst [vmem:[#allocation2 + $0x18] sm:$0xff] %v881_v29 }
  0xf0   : > { %v3917_v57 = vsel %vm1481_vm0, %v3915_v47, %v3916_v7  ;;  %v3919_v9 = vsel %vm1481_vm0, %v3916_v7, %v3918_v32  ;;  %9337 = vst [vmem:[#allocation29_spill] sm:$0xff] %v6408_v8  ;;  %v622_v32 = vpop.f32.mrf.mxu1  ;;  %v583_v47 = vpop.f32.mrf.mxu3  ;;  %v4164_v7 = vsel %vm1481_vm0, %v4161_v3, %v4163_v27  ;;  %v4406_v3 = vrot.slane %v4310_v58, 2 }
  0xf1   : > { %v4027_v25 = vadd.f32 %v3917_v57, %v3782_v26  ;;  %9338 = vst [vmem:[#allocation30_spill] sm:$0xff] %v6411_v34  ;;  %v4028_v26 = vadd.f32 %v3919_v9, %v3783_v12  ;;  %v623_v8 = vadd.f32 %v622_v32, %v6012_v24 }
  0xf2   : > { %1137 = vst [vmem:[#allocation2 + $0x218] sm:$0xff] %v1095_v44 }
  0xf3   : > { %v1190_v14 = vld [vmem:[#allocation2 + $0xf0] sm:$0x3]  ;;  %9340 = vst [vmem:[#allocation32_spill] sm:$0xff] %v6426_v43  ;;  %v699_v43 = vmax.f32 %v534_v6, 0.0  ;;  %v700_v2 = vmax.f32 %v623_v8, 0.0  ;;  %v4272_v34 = vadd.f32 %v4162_v16, %v4027_v25  ;;  %v4273_v32 = vadd.f32 %v4164_v7, %v4028_v26  ;;  %v536_v7 = vpop.f32.mrf.mxu0 }
  0xf4   : > { %v6416_v33 = vmul.f32 %v5969_v60, %v1190_v14  ;;  %v6419_v57 = vmul.f32 %v5993_v5, %v1190_v14  ;;  %v6433_v14 = vld [vmem:[%s9209_s3 + $0x11] ss:$0 sm:$0xff]  ;;  %v4408_v6 = vrot.slane %v4311_v10, 2  ;;  %v584_v25 = vadd.f32 %v583_v47, %v6008_v20 }
  0xf5   : > { %v1274_v29 = vld [vmem:[#allocation2 + $0x78] sm:$0x3]  ;;  %v1006_v12 = vrot.slane %v700_v2, 7  ;;  %v4555_v27 = vmul.f32 %v6433_v14, %v6248_v48  ;;  %v4556_v8 = vmul.f32 %v6433_v14, %v6380_v45  ;;  %v4407_v10 = vsel %vm1972_vm1, %v4405_v17, %v4406_v3 }
  0xf6   : > { %9339 = vst [vmem:[#allocation31_spill] sm:$0xff] %v6416_v33  ;;  %v6438_v9 = vmul.f32 %v5985_v0, %v1274_v29  ;;  %v792_v33 = vrot.slane %v699_v43, 7  ;;  %v4554_v29 = vmul.f32 %v6433_v14, %v6192_v41  ;;  %v4409_v58 = vsel %vm1972_vm1, %v4406_v3, %v4408_v6  ;;  %v6470_v6 = vld [vmem:[#allocation2 + $0xe0] sm:$0xff] }
  0xf7   : > { %v1007_v4 = vsel %vm781_vm2, %v1005_v39, %v1006_v12  ;;  %v1111_v26 = vsel %vm781_vm2, %v1006_v12, 0.0  ;;  %v4517_v47 = vadd.f32 %v4407_v10, %v4272_v34  ;;  %v4651_v2 = vrot.slane %v4555_v27, 2  ;;  %v6466_v12 = vld [vmem:[%s9210_s4] ss:$0 sm:$0xff] }
  0xf8   : > { %v793_v16 = vsel %vm781_vm2, %v791_v37, %v792_v33  ;;  %v897_v11 = vsel %vm781_vm2, %v792_v33, 0.0  ;;  %v4650_v45 = vrot.slane %v4554_v29, 2  ;;  %v625_v43 = vpop.f32.mrf.mxu1  ;;  %v4518_v37 = vadd.f32 %v4409_v58, %v4273_v32  ;;  %1138 = vst [vmem:[#allocation2 + $0x338] sm:$0xff] %v1007_v4  ;;  %v586_v29 = vpop.f32.mrf.mxu3 }
  0xf9   : > { %923 = vst [vmem:[#allocation2 + $0x2c8] sm:$0xff] %v793_v16  ;;  %v6458_v41 = vmul.f32 %v5969_v60, %v793_v16  ;;  %v4653_v33 = vrot.slane %v4556_v8, 2  ;;  %v739_v16 = vmax.f32 %v584_v25, 0.0  ;;  %v537_v17 = vadd.f32 %v536_v7, %v6008_v20 }
  0xfa   : > { %924 = vst [vmem:[#allocation2 + $0x318] sm:$0x3] %v897_v11  ;;  %v626_v3 = vadd.f32 %v625_v43, %v6012_v24  ;;  %v4652_v32 = vsel %vm1972_vm1, %v4650_v45, %v4651_v2  ;;  %v587_v8 = vadd.f32 %v586_v29, %v6008_v20  ;;  %v1234_v43 = vmul.f32 %v5974_v61, %v6117_v30 }
  0xfb   : > { %1139 = vst [vmem:[#allocation2 + $0x358] sm:$0x3] %v1111_v26  ;;  %v4654_v27 = vsel %vm1972_vm1, %v4651_v2, %v4653_v33  ;;  %v4762_v11 = vadd.f32 %v4652_v32, %v4517_v47  ;;  %v822_v10 = vrot.slane %v739_v16, 7  ;;  %v701_v25 = vmax.f32 %v537_v17, 0.0 }
  0xfc   : > { %v4763_v4 = vadd.f32 %v4654_v27, %v4518_v37  ;;  %v702_v58 = vmax.f32 %v626_v3, 0.0  ;;  %v741_v7 = vmax.f32 %v587_v8, 0.0  ;;  %v1319_v44 = vmul.f32 %v5979_v62, %v6470_v6  ;;  %v538_v3 = vpop.f32.mrf.mxu0 }
  0xfd   : > { %v4798_v26 = vadd.f32 %v6466_v12, %v4762_v11  ;;  %v823_v2 = vsel %vm781_vm2, %v6256_v36, %v822_v10  ;;  %v907_v47 = vsel %vm781_vm2, %v822_v10, 0.0  ;;  %v794_v33 = vrot.slane %v701_v25, 7 }
  0xfe   : > { %v4799_v45 = vadd.f32 %v6466_v12, %v4763_v4  ;;  %953 = vst [vmem:[#allocation2 + $0x290] sm:$0xff] %v823_v2  ;;  %v6486_v37 = vmul.f32 %v5969_v60, %v823_v2  ;;  %v1008_v16 = vrot.slane %v702_v58, 7  ;;  %v6488_v17 = vrot.slane %v741_v7, 7 }
  0xff   : > { %v4830_v32 = vmax.f32 %v4798_v26, 0.0  ;;  %954 = vst [vmem:[#allocation2 + $0x1c8] sm:$0x3] %v907_v47  ;;  %v539_v8 = vadd.f32 %v538_v3, %v6008_v20  ;;  %v1350_v36 = vadd.f32 %v6106_v21, %v6097_v15  ;;  %v882_v10 = vsel %vm781_vm2, 0.0, %v794_v33 }
 0x100   : > { %9341 = vst [vmem:[#allocation33_spill] sm:$0xff] %v6486_v37  ;;  %v4831_v27 = vmax.f32 %v4799_v45, 0.0  ;;  %v1351_v25 = vadd.f32 %v1319_v44, %v1234_v43  ;;  %v6502_v45 = vmul.f32 %v5969_v60, %v882_v10  ;;  %v1096_v2 = vsel %vm781_vm2, 0.0, %v1008_v16  ;;  %v627_v15 = vpop.f32.mrf.mxu1 }
 0x101   : > { %v1193_v29 = vld [vmem:[#allocation2 + $0x318] sm:$0x3]  ;;  %925 = vst [vmem:[#allocation2 + $0x20] sm:$0xff] %v882_v10  ;;  %v6511_v44 = vmul.f32 %v5974_v61, %v882_v10  ;;  %v6514_v43 = vmul.f32 %v5979_v62, %v1096_v2  ;;  %v9347_v21 = vrot.slane %v6128_v40, 1  ;;  %v9349_v37 = vrot.slane %v6196_v46, 1 }
 0x102   : > { %v6494_v11 = vmul.f32 %v5969_v60, %v1193_v29  ;;  %v6497_v4 = vmul.f32 %v5993_v5, %v1193_v29  ;;  %v1277_v58 = vld [vmem:[#allocation2 + $0x358] sm:$0x3]  ;;  %v4862_v7 = vpack.c.bf16 %v4831_v27, %v4830_v32  ;;  %9342 = vst [vmem:[#allocation34_spill] sm:$0xff] %v6502_v45  ;;  %v6517_v29 = vmul.f32 %v5985_v0, %v1096_v2 }
 0x103   : > { %v6508_v3 = vmul.f32 %v5985_v0, %v1277_v58  ;;  %1140 = vst [vmem:[#allocation2 + $0x58] sm:$0xff] %v1096_v2  ;;  %v892_v32 = vsel %vm781_vm2, 0.0, %v6488_v17  ;;  %v703_v27 = vmax.f32 %v539_v8, 0.0  ;;  %v9348_v8 = vrot.slane %v6069_v63, 1 }
 0x104   : > { %4986 = vmatmul.bf16.vlgmr.msra.gmra.mxu2 %v4862_v7  ;;  %9343 = vst [vmem:[#allocation35_spill] sm:$0xff] %v6514_v43  ;;  %v6524_v10 = vmul.f32 %v5969_v60, %v892_v32  ;;  %v628_v7 = vadd.f32 %v627_v15, %v6012_v24  ;;  %v6529_v47 = vmul.f32 %v5974_v61, %v892_v32 }
 0x105   : > { %9344 = vst [vmem:[#allocation36_spill] sm:$0xff] %v6517_v29  ;;  %v795_v2 = vrot.slane %v703_v27, 7  ;;  %v1489_v26 = vsel %vm1481_vm0, %v9348_v8, %v9347_v21  ;;  %v9350_v15 = vmov %v9347_v21  ;;  %v1635_v40 = vmul.f32 %v5985_v0, %v6470_v6 }
 0x106   : > { %955 = vst [vmem:[#allocation2 + $0x1c0] sm:$0xff] %v892_v32  ;;  %v1223_v34 = vld [vmem:[#allocation2 + $0x1c8] sm:$0x3]  ;;  %v704_v39 = vmax.f32 %v628_v7, 0.0  ;;  %v1491_v62 = vsel %vm1481_vm0, %v9350_v15, %v9349_v37  ;;  %v1596_v29 = vadd.f32 %v1489_v26, %v1350_v36  ;;  %v1879_v37 = vmul.f32 %v5993_v5, %v6045_v51 }
 0x107   : > { %9345 = vst [vmem:[#allocation37_spill] sm:$0xff] %v6524_v10  ;;  %v6543_v61 = vmul.f32 %v5969_v60, %v1223_v34  ;;  %v6546_v32 = vmul.f32 %v5993_v5, %v1223_v34  ;;  %v796_v63 = vsel %vm781_vm2, %v794_v33, %v795_v2  ;;  %v898_v21 = vsel %vm781_vm2, %v795_v2, 0.0  ;;  %v2366_v2 = vld [vmem:[#allocation2 + $0xf8] sm:$0xff] }
 0x108   : > { %9346 = vst [vmem:[#allocation38_spill] sm:$0xff] %v6529_v47  ;;  %v6551_v27 = vmul.f32 %v5969_v60, %v796_v63  ;;  %v1009_v46 = vrot.slane %v704_v39, 7  ;;  %v1597_v34 = vadd.f32 %v1491_v62, %v1351_v25  ;;  %v1880_v33 = vmul.f32 %v5993_v5, %v6117_v30 }
 0x109   : > { %9351 = vst [vmem:[#allocation39_spill] sm:$0xff] %v6543_v61  ;;  %v2125_v26 = vmul.f32 %v6001_v13, %v6058_v54  ;;  %v1733_v0 = vrot.slane %v1635_v40, 1  ;;  %v1978_v51 = vrot.slane %v1879_v37, 2  ;;  %v2126_v25 = vmul.f32 %v6001_v13, %v6470_v6  ;;  %v2368_v6 = vld [vmem:[#allocation2 + $0x80] sm:$0x3] }
 0x10a   : > { %9352 = vst [vmem:[#allocation40_spill] sm:$0xff] %v6546_v32  ;;  %v1010_v39 = vsel %vm781_vm2, %v1008_v16, %v1009_v46  ;;  %v1112_v7 = vsel %vm781_vm2, %v1009_v46, 0.0  ;;  %v1979_v8 = vrot.slane %v1880_v33, 2  ;;  %v2127_v30 = vmul.f32 %v6001_v13, %v6211_v28 }
 0x10b   : > { %926 = vst [vmem:[#allocation2 + $0x2c0] sm:$0xff] %v796_v63  ;;  %v9354_v54 = vrot.slane %v6073_v1, 1  ;;  %v9355_v15 = vrot.slane %v6229_v19, 1  ;;  %v2418_v33 = vmul.f32 %v6028_v42, %v2366_v2  ;;  %v9356_v13 = vrot.slane %v6199_v55, 2  ;;  %v2484_v19 = vld [vmem:[#allocation2 + $0xb8] sm:$0xff] }
 0x10c   : > { %9353 = vst [vmem:[#allocation41_spill] sm:$0xff] %v6551_v27  ;;  %v1980_v37 = vsel %vm1972_vm1, %v1978_v51, %v1979_v8  ;;  %v2226_v1 = vrot.slane %v2127_v30, 2  ;;  %v2607_v55 = vmul.f32 %v6042_v50, %v6244_v56  ;;  %v2537_v58 = vmul.f32 %v6037_v49, %v6248_v48 }
 0x10d   : > { %927 = vst [vmem:[#allocation2 + $0x188] sm:$0x3] %v898_v21  ;;  %v1734_v16 = vsel %vm1481_vm0, %v9354_v54, %v1733_v0  ;;  %v1736_v63 = vsel %vm1481_vm0, %v1733_v0, %v9355_v15  ;;  %v2223_v21 = vrot.slane %v2125_v26, 2  ;;  %v1982_v28 = vsel %vm1972_vm1, %v1979_v8, %v9356_v13 }
 0x10e   : > { %1141 = vst [vmem:[#allocation2 + $0x1f8] sm:$0xff] %v1010_v39  ;;  %v1841_v46 = vadd.f32 %v1734_v16, %v1596_v29  ;;  %v1842_v40 = vadd.f32 %v1736_v63, %v1597_v34  ;;  %v2224_v39 = vrot.slane %v2126_v25, 2  ;;  %v2536_v29 = vmul.f32 %v6037_v49, %v2484_v19 }
 0x10f   : > { %1142 = vst [vmem:[#allocation2 + $0x2a8] sm:$0x3] %v1112_v7  ;;  %v2419_v7 = vmul.f32 %v6028_v42, %v6244_v56  ;;  %v2606_v34 = vmul.f32 %v6042_v50, %v2366_v2  ;;  %v2608_v8 = vmul.f32 %v6042_v50, %v2368_v6  ;;  %v6593_v42 = vld [vmem:[%s9209_s3 + $0x2] ss:$0 sm:$0xff]  ;;  %v2851_v13 = vmul.f32 %v6050_v52, %v2484_v19 }
 0x110   : > { %v2087_v54 = vadd.f32 %v1980_v37, %v1841_v46  ;;  %v2088_v0 = vadd.f32 %v1982_v28, %v1842_v40  ;;  %v2225_v51 = vsel %vm1972_vm1, %v2223_v21, %v2224_v39  ;;  %v2227_v16 = vsel %vm1972_vm1, %v2224_v39, %v2226_v1  ;;  %v2486_v21 = vld [vmem:[#allocation2 + $0x140] sm:$0x3] }
 0x111   : > { %v2704_v46 = vrot.slane %v2606_v34, 1  ;;  %v2705_v40 = vrot.slane %v2607_v55, 1  ;;  %v2707_v37 = vrot.slane %v2608_v8, 1  ;;  %v2852_v34 = vmul.f32 %v6050_v52, %v6248_v48 }
 0x112   : > { %v2332_v15 = vadd.f32 %v2225_v51, %v2087_v54  ;;  %v2333_v63 = vadd.f32 %v2227_v16, %v2088_v0  ;;  %v2949_v49 = vrot.slane %v2851_v13, 1  ;;  %v3096_v55 = vmul.f32 %v6055_v53, %v2366_v2  ;;  %v6625_v13 = vld [vmem:[#allocation2 + $0x308] sm:$0xff] }
 0x113   : > { %v2708_v0 = vsel %vm1481_vm0, %v2705_v40, %v2707_v37  ;;  %v2706_v51 = vsel %vm1481_vm0, %v2704_v46, %v2705_v40  ;;  %v2950_v16 = vrot.slane %v2852_v34, 1  ;;  %v3097_v8 = vmul.f32 %v6055_v53, %v6244_v56 }
 0x114   : > { %v1196_v26 = vld [vmem:[#allocation2 + $0x188] sm:$0x3]  ;;  %v2450_v39 = vadd.f32 %v2418_v33, %v2332_v15  ;;  %v2451_v1 = vadd.f32 %v2419_v7, %v2333_v63  ;;  %v3098_v37 = vmul.f32 %v6055_v53, %v2368_v6  ;;  %v3343_v53 = vmul.f32 %v6065_v59, %v2486_v21 }
 0x115   : > { %v6596_v25 = vmul.f32 %v6593_v42, %v1196_v26  ;;  %v6599_v30 = vmul.f32 %v5993_v5, %v1196_v26  ;;  %v6609_v5 = vld [vmem:[%s9209_s3 + $0x3] ss:$0 sm:$0xff]  ;;  %v2853_v26 = vmul.f32 %v6050_v52, %v2486_v21  ;;  %v2951_v36 = vsel %vm1481_vm0, %v2949_v49, %v2950_v16  ;;  %v6635_v49 = vld [vmem:[#allocation2 + $0x258] sm:$0xff] }
 0x116   : > { %v1280_v28 = vld [vmem:[#allocation2 + $0x2a8] sm:$0x3]  ;;  %v2568_v33 = vadd.f32 %v2536_v29, %v2450_v39  ;;  %v2569_v7 = vadd.f32 %v2537_v58, %v2451_v1  ;;  %v3194_v29 = vrot.slane %v3096_v55, 2  ;;  %v3195_v58 = vrot.slane %v3097_v8, 2  ;;  %v3702_v21 = vld [vmem:[#allocation2 + $0x78] sm:$0x3] }
 0x117   : > { %9357 = vst [vmem:[#allocation42_spill] sm:$0xff] %v6596_v25  ;;  %v6612_v54 = vmul.f32 %v6609_v5, %v1280_v28  ;;  %v2952_v28 = vrot.slane %v2853_v26, 1  ;;  %v3341_v52 = vmul.f32 %v6065_v59, %v2484_v19  ;;  %v3197_v2 = vrot.slane %v3098_v37, 2  ;;  %v3584_v19 = vld [vmem:[#allocation2 + $0xf0] sm:$0x3]  ;;  %v9360_v8 = vld [vmem:[#allocation26_spill] sm:$0xff] }
 0x118   : > { %9358 = vst [vmem:[#allocation43_spill] sm:$0xff] %v6599_v30  ;;  %v2813_v15 = vadd.f32 %v2706_v51, %v2568_v33  ;;  %v2814_v63 = vadd.f32 %v2708_v0, %v2569_v7  ;;  %v3342_v39 = vmul.f32 %v6065_v59, %v6248_v48  ;;  %v3196_v0 = vsel %vm1972_vm1, %v3194_v29, %v3195_v58 }
 0x119   : > { %9359 = vst [vmem:[#allocation44_spill] sm:$0xff] %v6612_v54  ;;  %v2953_v46 = vsel %vm1481_vm0, %v2950_v16, %v2952_v28  ;;  %v3439_v6 = vrot.slane %v3341_v52, 2  ;;  %v3198_v34 = vsel %vm1972_vm1, %v3195_v58, %v3197_v2  ;;  %v3634_v26 = vmul.f32 %v6275_v23, %v6625_v13  ;;  %v588_v28 = vpop.f32.mrf.mxu3  ;;  %v9361_v58 = vld [vmem:[#allocation27_spill] sm:$0xff] }
 0x11a   : > { %v3058_v40 = vadd.f32 %v2951_v36, %v2813_v15  ;;  %v3059_v1 = vadd.f32 %v2953_v46, %v2814_v63  ;;  %v3440_v7 = vrot.slane %v3342_v39, 2  ;;  %v3442_v51 = vrot.slane %v3343_v53, 2  ;;  %v541_v46 = vpop.f32.mrf.mxu0 }
 0x11b   : > { %v3635_v48 = vmul.f32 %v6275_v23, %v6355_v22  ;;  %v3752_v16 = vmul.f32 %v6323_v35, %v6635_v49  ;;  %v3753_v55 = vmul.f32 %v6323_v35, %v6370_v38  ;;  %v3822_v15 = vmul.f32 %v9360_v8, %v6625_v13 }
 0x11c   : > { %v3303_v33 = vadd.f32 %v3196_v0, %v3058_v40  ;;  %v3304_v36 = vadd.f32 %v3198_v34, %v3059_v1  ;;  %v3441_v59 = vsel %vm1972_vm1, %v3439_v6, %v3440_v7  ;;  %v3823_v63 = vmul.f32 %v9360_v8, %v6355_v22  ;;  %v630_v40 = vpop.f32.mrf.mxu1 }
 0x11d   : > { %v3443_v37 = vsel %vm1972_vm1, %v3440_v7, %v3442_v51  ;;  %v3824_v23 = vmul.f32 %v9360_v8, %v3584_v19  ;;  %v4067_v52 = vmul.f32 %v9361_v58, %v6635_v49  ;;  %v3920_v39 = vrot.slane %v3822_v15, 1 }
 0x11e   : > { %v3548_v29 = vadd.f32 %v3441_v59, %v3303_v33  ;;  %v3549_v2 = vadd.f32 %v3443_v37, %v3304_v36  ;;  %v3921_v1 = vrot.slane %v3823_v63, 1  ;;  %v4068_v0 = vmul.f32 %v9361_v58, %v6370_v38 }
 0x11f   : > { %v3923_v6 = vrot.slane %v3824_v23, 1  ;;  %v4069_v34 = vmul.f32 %v9361_v58, %v3702_v21  ;;  %v4165_v60 = vrot.slane %v4067_v52, 1  ;;  %v4312_v59 = vmul.f32 %v6397_v18, %v6625_v13 }
 0x120   : > { %v3666_v53 = vadd.f32 %v3634_v26, %v3548_v29  ;;  %v3667_v7 = vadd.f32 %v3635_v48, %v3549_v2  ;;  %v3922_v33 = vsel %vm1481_vm0, %v3920_v39, %v3921_v1  ;;  %v4166_v51 = vrot.slane %v4068_v0, 1 }
 0x121   : > { %v3924_v36 = vsel %vm1481_vm0, %v3921_v1, %v3923_v6  ;;  %v4168_v15 = vrot.slane %v4069_v34, 1  ;;  %v4313_v63 = vmul.f32 %v6397_v18, %v6355_v22  ;;  %v4314_v29 = vmul.f32 %v6397_v18, %v3584_v19 }
 0x122   : > { %v3784_v62 = vadd.f32 %v3752_v16, %v3666_v53  ;;  %v3785_v37 = vadd.f32 %v3753_v55, %v3667_v7  ;;  %v4167_v26 = vsel %vm1481_vm0, %v4165_v60, %v4166_v51  ;;  %v4410_v23 = vrot.slane %v4312_v59, 2 }
 0x123   : > { %v4169_v52 = vsel %vm1481_vm0, %v4166_v51, %v4168_v15  ;;  %v4411_v2 = vrot.slane %v4313_v63, 2  ;;  %v4557_v39 = vmul.f32 %v6433_v14, %v6635_v49  ;;  %v4413_v0 = vrot.slane %v4314_v29, 2  ;;  %v543_v15 = vpop.f32.mrf.mxu0 }
 0x124   : > { %v4029_v48 = vadd.f32 %v3922_v33, %v3784_v62  ;;  %v4030_v16 = vadd.f32 %v3924_v36, %v3785_v37  ;;  %v4558_v1 = vmul.f32 %v6433_v14, %v6370_v38  ;;  %v4559_v22 = vmul.f32 %v6433_v14, %v3702_v21  ;;  %v591_v33 = vpop.f32.mrf.mxu3  ;;  %v632_v21 = vpop.f32.mrf.mxu1 }
 0x125   : > { %v4412_v60 = vsel %vm1972_vm1, %v4410_v23, %v4411_v2  ;;  %v4655_v53 = vrot.slane %v4557_v39, 2  ;;  %v589_v19 = vadd.f32 %v588_v28, %v6008_v20  ;;  %v4414_v6 = vsel %vm1972_vm1, %v4411_v2, %v4413_v0 }
 0x126   : > { %v4274_v55 = vadd.f32 %v4167_v26, %v4029_v48  ;;  %v4275_v62 = vadd.f32 %v4169_v52, %v4030_v16  ;;  %v4656_v34 = vrot.slane %v4558_v1, 2  ;;  %v4658_v7 = vrot.slane %v4559_v22, 2 }
 0x127   : > { %v743_v59 = vmax.f32 %v589_v19, 0.0  ;;  %v542_v36 = vadd.f32 %v541_v46, %v6008_v20  ;;  %v631_v38 = vadd.f32 %v630_v40, %v6012_v24  ;;  %v592_v28 = vadd.f32 %v591_v33, %v6008_v20 }
 0x128   : > { %v4519_v51 = vadd.f32 %v4412_v60, %v4274_v55  ;;  %v4520_v63 = vadd.f32 %v4414_v6, %v4275_v62  ;;  %v4657_v37 = vsel %vm1972_vm1, %v4655_v53, %v4656_v34  ;;  %v4659_v26 = vsel %vm1972_vm1, %v4656_v34, %v4658_v7 }
 0x129   : > { %v825_v23 = vrot.slane %v743_v59, 7  ;;  %v705_v48 = vmax.f32 %v542_v36, 0.0  ;;  %v706_v52 = vmax.f32 %v631_v38, 0.0  ;;  %v745_v39 = vmax.f32 %v592_v28, 0.0 }
 0x12a   : > { %v4764_v29 = vadd.f32 %v4657_v37, %v4519_v51  ;;  %v4765_v2 = vadd.f32 %v4659_v26, %v4520_v63  ;;  %v544_v16 = vadd.f32 %v543_v15, %v6008_v20  ;;  %v633_v46 = vadd.f32 %v632_v21, %v6012_v24  ;;  %v1270_v63 = vld [vmem:[#allocation2 + $0x160] sm:$0xff] }
 0x12b   : > { %v826_v0 = vsel %vm781_vm2, %v6488_v17, %v825_v23  ;;  %v908_v1 = vsel %vm781_vm2, %v825_v23, 0.0  ;;  %v797_v22 = vrot.slane %v705_v48, 7  ;;  %v1011_v53 = vrot.slane %v706_v52, 7  ;;  %v6701_v26 = vld [vmem:[%s9209_s3] ss:$0 sm:$0xff] }
 0x12c   : > { %v4800_v40 = vadd.f32 %v6466_v12, %v4764_v29  ;;  %v4801_v55 = vadd.f32 %v6466_v12, %v4765_v2  ;;  %956 = vst [vmem:[#allocation2 + $0x298] sm:$0xff] %v826_v0  ;;  %v6685_v60 = vmul.f32 %v6593_v42, %v826_v0  ;;  %v6687_v19 = vrot.slane %v745_v39, 7  ;;  %v6713_v48 = vld [vmem:[%s9209_s3 + $0x1] ss:$0 sm:$0xff] }
 0x12d   : > { %957 = vst [vmem:[#allocation2 + $0x310] sm:$0x3] %v908_v1  ;;  %v883_v6 = vsel %vm781_vm2, 0.0, %v797_v22  ;;  %v707_v34 = vmax.f32 %v544_v16, 0.0  ;;  %v708_v7 = vmax.f32 %v633_v46, 0.0  ;;  %v1097_v36 = vsel %vm781_vm2, 0.0, %v1011_v53 }
 0x12e   : > { %9362 = vst [vmem:[#allocation26_spill] sm:$0xff] %v6685_v60  ;;  %v4832_v17 = vmax.f32 %v4800_v40, 0.0  ;;  %v4833_v33 = vmax.f32 %v4801_v55, 0.0  ;;  %v6693_v59 = vmul.f32 %v6593_v42, %v883_v6  ;;  %v893_v38 = vsel %vm781_vm2, 0.0, %v6687_v19  ;;  %v9368_v55 = vld [vmem:[#allocation8_spill] sm:$0xff] }
 0x12f   : > { %928 = vst [vmem:[#allocation2 + $0x198] sm:$0xff] %v883_v6  ;;  %v798_v15 = vrot.slane %v707_v34, 7  ;;  %v1012_v21 = vrot.slane %v708_v7, 7  ;;  %v6704_v28 = vmul.f32 %v6701_v26, %v883_v6  ;;  %v6708_v23 = vmul.f32 %v6609_v5, %v1097_v36  ;;  %v9369_v6 = vld [vmem:[#allocation11_spill] sm:$0xff]  ;;  %v9370_v34 = vld [vmem:[#allocation12_spill] sm:$0xff] }
 0x130   : > { %9363 = vst [vmem:[#allocation27_spill] sm:$0xff] %v6693_v59  ;;  %v4863_v37 = vpack.c.bf16 %v4833_v33, %v4832_v17  ;;  %v6716_v52 = vmul.f32 %v6713_v48, %v1097_v36  ;;  %v1236_v0 = vmul.f32 %v6701_v26, %v6244_v56  ;;  %v1321_v1 = vmul.f32 %v6713_v48, %v1270_v63  ;;  %v9372_v17 = vld [vmem:[#allocation9_spill] sm:$0xff] }
 0x131   : > { %9364 = vst [vmem:[#allocation45_spill] sm:$0xff] %v6704_v28  ;;  %v799_v2 = vsel %vm781_vm2, %v797_v22, %v798_v15  ;;  %v899_v39 = vsel %vm781_vm2, %v798_v15, 0.0  ;;  %v1013_v16 = vsel %vm781_vm2, %v1011_v53, %v1012_v21  ;;  %v1113_v40 = vsel %vm781_vm2, %v1012_v21, 0.0 }
 0x132   : > { %1143 = vst [vmem:[#allocation2 + $0x108] sm:$0xff] %v1097_v36  ;;  %4991 = vmatmul.bf16.gmra.mxu2 %v4863_v37  ;;  %v6722_v46 = vmul.f32 %v6593_v42, %v799_v2  ;;  %v1352_v22 = vadd.f32 %v9369_v6, %v9368_v55  ;;  %v9371_v7 = vrot.slane %v9370_v34, 1  ;;  %v9373_v53 = vrot.slane %v9372_v17, 1  ;;  %v9374_v36 = vld [vmem:[#allocation19_spill] sm:$0xff]  ;;  %v6745_v55 = vld [vmem:[%s9209_s3 + $0x4] ss:$0 sm:$0xff] }
 0x133   : > { %9365 = vst [vmem:[#allocation46_spill] sm:$0xff] %v6708_v23  ;;  %v1638_v37 = vmul.f32 %v6609_v5, %v1270_v63  ;;  %v1353_v51 = vadd.f32 %v1321_v1, %v1236_v0  ;;  %v5563_v6 = vld [vmem:[#allocation2 + $0xf8] sm:$0xff]  ;;  %v1883_v34 = vmul.f32 %v6745_v55, %v6244_v56 }
 0x134   : > { %9366 = vst [vmem:[#allocation47_spill] sm:$0xff] %v6716_v52  ;;  %v1494_v33 = vsel %vm1481_vm0, %v9373_v53, %v9371_v7  ;;  %v9376_v15 = vmov %v9371_v7  ;;  %v1882_v7 = vmul.f32 %v5563_v6, %v6745_v55  ;;  %v5565_v6 = vld [vmem:[#allocation2 + $0xb8] sm:$0xff] }
 0x135   : > { %958 = vst [vmem:[#allocation2 + $0x2b8] sm:$0xff] %v893_v38  ;;  %v9375_v38 = vrot.slane %v9374_v36, 1  ;;  %v1738_v0 = vrot.slane %v1638_v37, 1  ;;  %v2489_v37 = vld [vmem:[#allocation2 + $0x78] sm:$0x3] }
 0x136   : > { %929 = vst [vmem:[#allocation2 + $0x148] sm:$0xff] %v799_v2  ;;  %v1226_v2 = vld [vmem:[#allocation2 + $0x310] sm:$0x3]  ;;  %v1983_v36 = vrot.slane %v1882_v7, 2 }
 0x137   : > { %9367 = vst [vmem:[#allocation48_spill] sm:$0xff] %v6722_v46  ;;  %v1496_v21 = vsel %vm1481_vm0, %v9376_v15, %v9375_v38  ;;  %v6751_v17 = vmul.f32 %v6593_v42, %v1226_v2  ;;  %v6754_v53 = vmul.f32 %v6745_v55, %v1226_v2  ;;  %v1984_v38 = vrot.slane %v1883_v34, 2  ;;  %v6759_v15 = vld [vmem:[%s9209_s3 + $0x5] ss:$0 sm:$0xff] }
 0x138   : > { %930 = vst [vmem:[#allocation2 + $0x2d0] sm:$0x3] %v899_v39  ;;  %v1599_v1 = vadd.f32 %v1496_v21, %v1353_v51  ;;  %v2128_v56 = vmul.f32 %v5565_v6, %v6759_v15  ;;  %v9379_v2 = vld [vmem:[#allocation10_spill] sm:$0xff]  ;;  %v2370_v21 = vld [vmem:[#allocation2 + $0x138] sm:$0xff]  ;;  %v9383_v6 = vld [vmem:[#allocation20_spill] sm:$0xff]  ;;  %v2129_v29 = vmul.f32 %v6759_v15, %v1270_v63 }
 0x139   : > { %1144 = vst [vmem:[#allocation2 + $0x128] sm:$0xff] %v1013_v16  ;;  %v1598_v16 = vadd.f32 %v1494_v33, %v1352_v22  ;;  %v9380_v62 = vrot.slane %v9379_v2, 1  ;;  %v9381_v22 = vld [vmem:[#allocation23_spill] sm:$0xff]  ;;  %v1985_v50 = vsel %vm1972_vm1, %v1983_v36, %v1984_v38  ;;  %v9384_v10 = vrot.slane %v9383_v6, 2  ;;  %v9385_v2 = vld [vmem:[#allocation22_spill] sm:$0xff]  ;;  %v6786_v36 = vld [vmem:[#allocation2 + $0x90] sm:$0xff] }
 0x13a   : > { %9377 = vst [vmem:[#allocation8_spill] sm:$0xff] %v6751_v17  ;;  %v9382_v51 = vrot.slane %v9381_v22, 1  ;;  %v2228_v17 = vrot.slane %v2128_v56, 2  ;;  %v2371_v22 = vld [vmem:[#allocation2 + $0xf0] sm:$0x3] }
 0x13b   : > { %9378 = vst [vmem:[#allocation11_spill] sm:$0xff] %v6754_v53  ;;  %v1987_v39 = vsel %vm1972_vm1, %v1984_v38, %v9384_v10 }
 0x13c   : > { %1145 = vst [vmem:[#allocation2 + $0x118] sm:$0x3] %v1113_v40  ;;  %v1739_v40 = vsel %vm1481_vm0, %v9380_v62, %v1738_v0  ;;  %v1741_v33 = vsel %vm1481_vm0, %v1738_v0, %v9382_v51  ;;  %v2130_v62 = vmul.f32 %v6759_v15, %v9385_v2  ;;  %v6822_v2 = vld [vmem:[%s9209_s3 + $0x9] ss:$0 sm:$0xff] }
 0x13d   : > { %v1843_v7 = vadd.f32 %v1739_v40, %v1598_v16  ;;  %v1844_v34 = vadd.f32 %v1741_v33, %v1599_v1  ;;  %v6781_v16 = vld [vmem:[%s9209_s3 + $0x6] ss:$0 sm:$0xff]  ;;  %v6797_v40 = vld [vmem:[%s9209_s3 + $0x7] ss:$0 sm:$0xff] }
 0x13e   : > { %v2420_v1 = vmul.f32 %v6781_v16, %v6625_v13  ;;  %v2421_v10 = vmul.f32 %v6781_v16, %v2370_v21  ;;  %v2538_v33 = vmul.f32 %v6797_v40, %v6635_v49  ;;  %v2539_v53 = vmul.f32 %v6797_v40, %v6786_v36 }
 0x13f   : > { %v1199_v60 = vld [vmem:[#allocation2 + $0x2d0] sm:$0x3]  ;;  %v2089_v0 = vadd.f32 %v1985_v50, %v1843_v7  ;;  %v2090_v51 = vadd.f32 %v1987_v39, %v1844_v34  ;;  %v2229_v50 = vrot.slane %v2129_v29, 2  ;;  %v2231_v39 = vrot.slane %v2130_v62, 2  ;;  %v6804_v7 = vld [vmem:[%s9209_s3 + $0x8] ss:$0 sm:$0xff] }
 0x140   : > { %v6789_v63 = vmul.f32 %v6593_v42, %v1199_v60  ;;  %v6792_v38 = vmul.f32 %v6745_v55, %v1199_v60  ;;  %v2609_v60 = vmul.f32 %v6804_v7, %v6625_v13  ;;  %v2610_v29 = vmul.f32 %v6804_v7, %v2370_v21 }
 0x141   : > { %v2611_v34 = vmul.f32 %v6804_v7, %v2371_v22  ;;  %v2230_v62 = vsel %vm1972_vm1, %v2228_v17, %v2229_v50  ;;  %v2232_v47 = vsel %vm1972_vm1, %v2229_v50, %v2231_v39  ;;  %v2854_v17 = vmul.f32 %v6822_v2, %v6635_v49 }
 0x142   : > { %9386 = vst [vmem:[#allocation12_spill] sm:$0xff] %v6789_v63  ;;  %v2334_v32 = vadd.f32 %v2230_v62, %v2089_v0  ;;  %v2709_v61 = vrot.slane %v2609_v60, 1  ;;  %v2710_v23 = vrot.slane %v2610_v29, 1  ;;  %v2335_v28 = vadd.f32 %v2232_v47, %v2090_v51 }
 0x143   : > { %9387 = vst [vmem:[#allocation9_spill] sm:$0xff] %v6792_v38  ;;  %v1283_v56 = vld [vmem:[#allocation2 + $0x118] sm:$0x3]  ;;  %v2712_v59 = vrot.slane %v2611_v34, 1  ;;  %v2855_v0 = vmul.f32 %v6822_v2, %v6786_v36  ;;  %v2856_v50 = vmul.f32 %v6822_v2, %v2489_v37  ;;  %v2954_v51 = vrot.slane %v2854_v17, 1 }
 0x144   : > { %v6817_v52 = vmul.f32 %v6609_v5, %v1283_v56  ;;  %v2452_v6 = vadd.f32 %v2420_v1, %v2334_v32  ;;  %v2711_v38 = vsel %vm1481_vm0, %v2709_v61, %v2710_v23  ;;  %v2453_v39 = vadd.f32 %v2421_v10, %v2335_v28  ;;  %v6834_v56 = vld [vmem:[%s9209_s3 + $0xa] ss:$0 sm:$0xff]  ;;  %v6847_v10 = vld [vmem:[#allocation2 + $0x18] sm:$0xff] }
 0x145   : > { %v2713_v47 = vsel %vm1481_vm0, %v2710_v23, %v2712_v59  ;;  %v3099_v60 = vmul.f32 %v6834_v56, %v6625_v13  ;;  %v2955_v1 = vrot.slane %v2855_v0, 1  ;;  %v2957_v61 = vrot.slane %v2856_v50, 1  ;;  %v6843_v59 = vld [vmem:[%s9209_s3 + $0xb] ss:$0 sm:$0xff] }
 0x146   : > { %v2570_v32 = vadd.f32 %v2538_v33, %v2452_v6  ;;  %v3100_v29 = vmul.f32 %v6834_v56, %v2370_v21  ;;  %v2571_v34 = vadd.f32 %v2539_v53, %v2453_v39  ;;  %v3101_v62 = vmul.f32 %v6834_v56, %v2371_v22  ;;  %v6854_v50 = vld [vmem:[#allocation2 + $0x2c8] sm:$0xff]  ;;  %v6856_v39 = vld [vmem:[#allocation2 + $0x218] sm:$0xff] }
 0x147   : > { %v3199_v28 = vrot.slane %v3099_v60, 2  ;;  %v3344_v23 = vmul.f32 %v6843_v59, %v6635_v49  ;;  %v2956_v33 = vsel %vm1481_vm0, %v2954_v51, %v2955_v1  ;;  %v2958_v6 = vsel %vm1481_vm0, %v2955_v1, %v2957_v61  ;;  %v6858_v49 = vld [vmem:[#allocation2 + $0x338] sm:$0xff] }
 0x148   : > { %v2815_v13 = vadd.f32 %v2711_v38, %v2570_v32  ;;  %v3200_v21 = vrot.slane %v3100_v29, 2  ;;  %v2816_v53 = vadd.f32 %v2713_v47, %v2571_v34  ;;  %v3202_v17 = vrot.slane %v3101_v62, 2  ;;  %v6864_v47 = vld [vmem:[%s9209_s3 + $0xc] ss:$0 sm:$0xff]  ;;  %v3587_v34 = vld [vmem:[#allocation2 + $0x318] sm:$0x3] }
 0x149   : > { %v3345_v22 = vmul.f32 %v6843_v59, %v6786_v36  ;;  %v3346_v0 = vmul.f32 %v6843_v59, %v2489_v37  ;;  %v3444_v51 = vrot.slane %v3344_v23, 2  ;;  %v3636_v32 = vmul.f32 %v6864_v47, %v6847_v10 }
 0x14a   : > { %v3060_v60 = vadd.f32 %v2956_v33, %v2815_v13  ;;  %v3201_v38 = vsel %vm1972_vm1, %v3199_v28, %v3200_v21  ;;  %v3061_v1 = vadd.f32 %v2958_v6, %v2816_v53  ;;  %v3203_v37 = vsel %vm1972_vm1, %v3200_v21, %v3202_v17  ;;  %v3705_v28 = vld [vmem:[#allocation2 + $0x358] sm:$0x3]  ;;  %v593_v53 = vpop.f32.mrf.mxu3 }
 0x14b   : > { %v3445_v61 = vrot.slane %v3345_v22, 2  ;;  %v3447_v29 = vrot.slane %v3346_v0, 2  ;;  %v3637_v13 = vmul.f32 %v6864_v47, %v6854_v50  ;;  %v3754_v23 = vmul.f32 %v6323_v35, %v6856_v39 }
 0x14c   : > { %v3305_v62 = vadd.f32 %v3201_v38, %v3060_v60  ;;  %v3755_v33 = vmul.f32 %v6323_v35, %v6858_v49  ;;  %v3306_v63 = vadd.f32 %v3203_v37, %v3061_v1  ;;  %v3825_v21 = vmul.f32 %v9360_v8, %v6847_v10  ;;  %v546_v38 = vpop.f32.mrf.mxu0  ;;  %v635_v35 = vpop.f32.mrf.mxu1 }
 0x14d   : > { %v3446_v46 = vsel %vm1972_vm1, %v3444_v51, %v3445_v61  ;;  %v3448_v6 = vsel %vm1972_vm1, %v3445_v61, %v3447_v29  ;;  %v3826_v22 = vmul.f32 %v9360_v8, %v6854_v50  ;;  %v3827_v0 = vmul.f32 %v9360_v8, %v3587_v34 }
 0x14e   : > { %v3550_v17 = vadd.f32 %v3446_v46, %v3305_v62  ;;  %v4070_v60 = vmul.f32 %v9361_v58, %v6856_v39  ;;  %v3551_v1 = vadd.f32 %v3448_v6, %v3306_v63  ;;  %v3925_v37 = vrot.slane %v3825_v21, 1 }
 0x14f   : > { %v4071_v51 = vmul.f32 %v9361_v58, %v6858_v49  ;;  %v4072_v61 = vmul.f32 %v9361_v58, %v3705_v28  ;;  %v3926_v30 = vrot.slane %v3826_v22, 1  ;;  %v3928_v46 = vrot.slane %v3827_v0, 1 }
 0x150   : > { %v3668_v29 = vadd.f32 %v3636_v32, %v3550_v17  ;;  %v4170_v62 = vrot.slane %v4070_v60, 1  ;;  %v3669_v54 = vadd.f32 %v3637_v13, %v3551_v1  ;;  %v4315_v8 = vmul.f32 %v6397_v18, %v6847_v10 }
 0x151   : > { %v4171_v45 = vrot.slane %v4071_v51, 1  ;;  %v4173_v27 = vrot.slane %v4072_v61, 1  ;;  %v3927_v43 = vsel %vm1481_vm0, %v3925_v37, %v3926_v30  ;;  %v3929_v63 = vsel %vm1481_vm0, %v3926_v30, %v3928_v46 }
 0x152   : > { %v3786_v25 = vadd.f32 %v3754_v23, %v3668_v29  ;;  %v4316_v6 = vmul.f32 %v6397_v18, %v6854_v50  ;;  %v3787_v21 = vadd.f32 %v3755_v33, %v3669_v54  ;;  %v4317_v13 = vmul.f32 %v6397_v18, %v3587_v34  ;;  %v665_v34 = vpop.f32.mrf.mxu3 }
 0x153   : > { %v4172_v58 = vsel %vm1481_vm0, %v4170_v62, %v4171_v45  ;;  %v4174_v32 = vsel %vm1481_vm0, %v4171_v45, %v4173_v27  ;;  %v4415_v22 = vrot.slane %v4315_v8, 2  ;;  %v4560_v23 = vmul.f32 %v6433_v14, %v6856_v39 }
 0x154   : > { %v4031_v17 = vadd.f32 %v3927_v43, %v3786_v25  ;;  %v4416_v0 = vrot.slane %v4316_v6, 2  ;;  %v4032_v60 = vadd.f32 %v3929_v63, %v3787_v21  ;;  %v4418_v1 = vrot.slane %v4317_v13, 2  ;;  %v548_v8 = vpop.f32.mrf.mxu0 }
 0x155   : > { %v4561_v30 = vmul.f32 %v6433_v14, %v6858_v49  ;;  %v4562_v37 = vmul.f32 %v6433_v14, %v3705_v28  ;;  %v4660_v51 = vrot.slane %v4560_v23, 2  ;;  %v594_v45 = vadd.f32 %v593_v53, %v6008_v20  ;;  %v637_v14 = vpop.f32.mrf.mxu1 }
 0x156   : > { %v4276_v54 = vadd.f32 %v4172_v58, %v4031_v17  ;;  %v4417_v33 = vsel %vm1972_vm1, %v4415_v22, %v4416_v0  ;;  %v4277_v18 = vadd.f32 %v4174_v32, %v4032_v60  ;;  %v4419_v43 = vsel %vm1972_vm1, %v4416_v0, %v4418_v1 }
 0x157   : > { %v4661_v27 = vrot.slane %v4561_v30, 2  ;;  %v4663_v25 = vrot.slane %v4562_v37, 2  ;;  %v747_v29 = vmax.f32 %v594_v45, 0.0  ;;  %v547_v46 = vadd.f32 %v546_v38, %v6008_v20 }
 0x158   : > { %v4521_v61 = vadd.f32 %v4417_v33, %v4276_v54  ;;  %v636_v62 = vadd.f32 %v635_v35, %v6012_v24  ;;  %v4522_v28 = vadd.f32 %v4419_v43, %v4277_v18  ;;  %v666_v53 = vadd.f32 %v665_v34, %v6012_v24  ;;  %v5573_v34 = vld [vmem:[#allocation2 + $0x138] sm:$0xff] }
 0x159   : > { %v4662_v63 = vsel %vm1972_vm1, %v4660_v51, %v4661_v27  ;;  %v4664_v6 = vsel %vm1972_vm1, %v4661_v27, %v4663_v25  ;;  %v828_v58 = vrot.slane %v747_v29, 7  ;;  %v709_v32 = vmax.f32 %v547_v46, 0.0 }
 0x15a   : > { %v4766_v21 = vadd.f32 %v4662_v63, %v4521_v61  ;;  %v710_v13 = vmax.f32 %v636_v62, 0.0  ;;  %v4767_v17 = vadd.f32 %v4664_v6, %v4522_v28  ;;  %v734_v22 = vmax.f32 %v666_v53, 0.0 }
 0x15b   : > { %v549_v0 = vadd.f32 %v548_v8, %v6008_v20  ;;  %v638_v38 = vadd.f32 %v637_v14, %v6012_v24  ;;  %v829_v23 = vsel %vm781_vm2, %v6687_v19, %v828_v58  ;;  %v909_v60 = vsel %vm781_vm2, %v828_v58, 0.0 }
 0x15c   : > { %v4802_v35 = vadd.f32 %v6466_v12, %v4766_v21  ;;  %v800_v1 = vrot.slane %v709_v32, 7  ;;  %v4803_v37 = vadd.f32 %v6466_v12, %v4767_v17  ;;  %959 = vst [vmem:[#allocation2 + $0x228] sm:$0xff] %v829_v23  ;;  %v1014_v54 = vrot.slane %v710_v13, 7 }
 0x15d   : > { %v711_v33 = vmax.f32 %v549_v0, 0.0  ;;  %960 = vst [vmem:[#allocation2 + $0x178] sm:$0x3] %v909_v60  ;;  %v6918_v18 = vrot.slane %v734_v22, 7  ;;  %v712_v43 = vmax.f32 %v638_v38, 0.0  ;;  %v1238_v12 = vmul.f32 %v5573_v34, %v6701_v26  ;;  %v9393_v60 = vld [vmem:[#allocation16_spill] sm:$0xff]  ;;  %v640_v30 = vpop.f32.mrf.mxu1 }
 0x15e   : > { %v4834_v51 = vmax.f32 %v4802_v35, 0.0  ;;  %v884_v45 = vsel %vm781_vm2, 0.0, %v800_v1  ;;  %v4835_v27 = vmax.f32 %v4803_v37, 0.0  ;;  %v1098_v25 = vsel %vm781_vm2, 0.0, %v1014_v54  ;;  %v9391_v35 = vld [vmem:[#allocation28_spill] sm:$0xff] }
 0x15f   : > { %931 = vst [vmem:[#allocation2 + $0x268] sm:$0xff] %v884_v45  ;;  %v6921_v19 = vmul.f32 %v6593_v42, %v884_v45  ;;  %v6926_v61 = vmul.f32 %v6701_v26, %v884_v45  ;;  %v6929_v29 = vmul.f32 %v6609_v5, %v1098_v25  ;;  %v1104_v46 = vsel %vm781_vm2, 0.0, %v6918_v18 }
 0x160   : > { %1146 = vst [vmem:[#allocation2 + $0x98] sm:$0xff] %v1098_v25  ;;  %v801_v62 = vrot.slane %v711_v33, 7  ;;  %v4864_v8 = vpack.c.bf16 %v4835_v27, %v4834_v51  ;;  %v6935_v28 = vmul.f32 %v6713_v48, %v1098_v25  ;;  %v6938_v63 = vmul.f32 %v6609_v5, %v1104_v46  ;;  %v9395_v33 = vld [vmem:[#allocation31_spill] sm:$0xff]  ;;  %v9398_v25 = vld [vmem:[#allocation17_spill] sm:$0xff] }
 0x161   : > { %9388 = vst [vmem:[#allocation19_spill] sm:$0xff] %v6929_v29  ;;  %v6941_v6 = vmul.f32 %v6713_v48, %v1104_v46  ;;  %v1015_v58 = vrot.slane %v712_v43, 7  ;;  %v1323_v22 = vmul.f32 %v6713_v48, %v6786_v36  ;;  %v9392_v23 = vrot.slane %v9391_v35, 1 }
 0x162   : > { %1164 = vst [vmem:[#allocation2 + $0x28] sm:$0xff] %v1104_v46  ;;  %v802_v53 = vsel %vm781_vm2, %v800_v1, %v801_v62  ;;  %v900_v21 = vsel %vm781_vm2, %v801_v62, 0.0  ;;  %4996 = vmatmul.bf16.gmra.mxu2 %v4864_v8  ;;  %v9394_v1 = vrot.slane %v9393_v60, 1  ;;  %v9396_v51 = vrot.slane %v9395_v33, 1  ;;  %v9399_v46 = vld [vmem:[#allocation21_spill] sm:$0xff] }
 0x163   : > { %9389 = vst [vmem:[#allocation10_spill] sm:$0xff] %v6938_v63  ;;  %v6948_v17 = vmul.f32 %v6593_v42, %v802_v53  ;;  %v1016_v0 = vsel %vm781_vm2, %v1014_v54, %v1015_v58  ;;  %v1114_v38 = vsel %vm781_vm2, %v1015_v58, 0.0  ;;  %v9397_v45 = vmov %v9392_v23 }
 0x164   : > { %9390 = vst [vmem:[#allocation23_spill] sm:$0xff] %v6941_v6  ;;  %v1499_v37 = vsel %vm1481_vm0, %v9394_v1, %v9392_v23  ;;  %v1501_v43 = vsel %vm1481_vm0, %v9397_v45, %v9396_v51  ;;  %v1354_v54 = vadd.f32 %v9399_v46, %v9398_v25  ;;  %v1355_v62 = vadd.f32 %v1323_v22, %v1238_v12  ;;  %v5575_v23 = vld [vmem:[#allocation2 + $0x258] sm:$0xff]  ;;  %v9400_v46 = vld [vmem:[#allocation18_spill] sm:$0xff] }
 0x165   : > { %932 = vst [vmem:[#allocation2 + $0x340] sm:$0xff] %v802_v53  ;;  %v1641_v8 = vmul.f32 %v6609_v5, %v6786_v36  ;;  %v5574_v53 = vld [vmem:[#allocation2 + $0x308] sm:$0xff]  ;;  %v1886_v58 = vmul.f32 %v5573_v34, %v6745_v55  ;;  %v2131_v35 = vmul.f32 %v5575_v23, %v6759_v15  ;;  %v2132_v60 = vmul.f32 %v6759_v15, %v6786_v36  ;;  %v5576_v51 = vld [vmem:[#allocation2 + $0x78] sm:$0x3] }
 0x166   : > { %933 = vst [vmem:[#allocation2 + $0x110] sm:$0x3] %v900_v21  ;;  %v1885_v21 = vmul.f32 %v5574_v53, %v6745_v55  ;;  %v1601_v1 = vadd.f32 %v1501_v43, %v1355_v62  ;;  %v2133_v12 = vmul.f32 %v5576_v51, %v6759_v15  ;;  %v2422_v25 = vmul.f32 %v6781_v16, %v6847_v10 }
 0x167   : > { %1147 = vst [vmem:[#allocation2 + $0xd8] sm:$0xff] %v1016_v0  ;;  %v1600_v0 = vadd.f32 %v1499_v37, %v1354_v54  ;;  %v1743_v33 = vrot.slane %v1641_v8, 1  ;;  %v1989_v45 = vrot.slane %v1886_v58, 2  ;;  %v9401_v34 = vrot.slane %v9400_v46, 1 }
 0x168   : > { %1148 = vst [vmem:[#allocation2 + $0x2e0] sm:$0x3] %v1114_v38  ;;  %v1988_v22 = vrot.slane %v1885_v21, 2  ;;  %v2234_v38 = vrot.slane %v2132_v60, 2  ;;  %v9402_v23 = vrot.slane %v6438_v9, 1  ;;  %v2233_v37 = vrot.slane %v2131_v35, 2 }
 0x169   : > { %v1744_v53 = vsel %vm1481_vm0, %v9401_v34, %v1743_v33  ;;  %v2236_v43 = vrot.slane %v2133_v12, 2  ;;  %v2374_v21 = vld [vmem:[#allocation2 + $0x318] sm:$0x3]  ;;  %v2423_v58 = vmul.f32 %v6781_v16, %v6854_v50  ;;  %v9403_v51 = vrot.slane %v6419_v57, 2 }
 0x16a   : > { %v1746_v36 = vsel %vm1481_vm0, %v1743_v33, %v9402_v23  ;;  %v1845_v54 = vadd.f32 %v1744_v53, %v1600_v0  ;;  %v1990_v8 = vsel %vm1972_vm1, %v1988_v22, %v1989_v45  ;;  %v2235_v34 = vsel %vm1972_vm1, %v2233_v37, %v2234_v38  ;;  %v2492_v53 = vld [vmem:[#allocation2 + $0x358] sm:$0x3] }
 0x16b   : > { %v1846_v62 = vadd.f32 %v1746_v36, %v1601_v1  ;;  %v1992_v46 = vsel %vm1972_vm1, %v1989_v45, %v9403_v51  ;;  %v2237_v9 = vsel %vm1972_vm1, %v2234_v38, %v2236_v43  ;;  %v2540_v35 = vmul.f32 %v6797_v40, %v6856_v39 }
 0x16c   : > { %v2091_v33 = vadd.f32 %v1990_v8, %v1845_v54  ;;  %v2612_v57 = vmul.f32 %v6804_v7, %v6847_v10  ;;  %v2613_v45 = vmul.f32 %v6804_v7, %v6854_v50  ;;  %v2614_v38 = vmul.f32 %v6804_v7, %v2374_v21 }
 0x16d   : > { %v1202_v60 = vld [vmem:[#allocation2 + $0x110] sm:$0x3]  ;;  %v2092_v12 = vadd.f32 %v1992_v46, %v1846_v62  ;;  %v2857_v23 = vmul.f32 %v6822_v2, %v6856_v39  ;;  %v2541_v43 = vmul.f32 %v6797_v40, %v6858_v49  ;;  %v2858_v13 = vmul.f32 %v6822_v2, %v6858_v49 }
 0x16e   : > { %v6994_v0 = vmul.f32 %v6593_v42, %v1202_v60  ;;  %v6997_v1 = vmul.f32 %v6745_v55, %v1202_v60  ;;  %v2336_v37 = vadd.f32 %v2235_v34, %v2091_v33  ;;  %v2714_v62 = vrot.slane %v2612_v57, 1 }
 0x16f   : > { %v1286_v22 = vld [vmem:[#allocation2 + $0x2e0] sm:$0x3]  ;;  %v2337_v54 = vadd.f32 %v2237_v9, %v2092_v12  ;;  %v2715_v8 = vrot.slane %v2613_v45, 1  ;;  %v2717_v60 = vrot.slane %v2614_v38, 1  ;;  %v2859_v32 = vmul.f32 %v6822_v2, %v2492_v53 }
 0x170   : > { %9404 = vst [vmem:[#allocation20_spill] sm:$0xff] %v6994_v0  ;;  %v7011_v51 = vmul.f32 %v6609_v5, %v1286_v22  ;;  %v2454_v46 = vadd.f32 %v2422_v25, %v2336_v37  ;;  %v2959_v33 = vrot.slane %v2857_v23, 1  ;;  %v2960_v9 = vrot.slane %v2858_v13, 1  ;;  %v7025_v45 = vld [vmem:[#allocation2 + $0x20] sm:$0xff] }
 0x171   : > { %9405 = vst [vmem:[#allocation22_spill] sm:$0xff] %v6997_v1  ;;  %v2455_v42 = vadd.f32 %v2423_v58, %v2337_v54  ;;  %v2716_v36 = vsel %vm1481_vm0, %v2714_v62, %v2715_v8  ;;  %v2718_v34 = vsel %vm1481_vm0, %v2715_v8, %v2717_v60  ;;  %v2962_v12 = vrot.slane %v2859_v32, 1 }
 0x172   : > { %v2572_v14 = vadd.f32 %v2540_v35, %v2454_v46  ;;  %v3102_v57 = vmul.f32 %v6834_v56, %v6847_v10  ;;  %v3103_v25 = vmul.f32 %v6834_v56, %v6854_v50  ;;  %v3104_v22 = vmul.f32 %v6834_v56, %v2374_v21  ;;  %v7031_v50 = vld [vmem:[#allocation2 + $0x2c0] sm:$0xff]  ;;  %v7033_v21 = vld [vmem:[#allocation2 + $0x58] sm:$0xff] }
 0x173   : > { %v2573_v5 = vadd.f32 %v2541_v43, %v2455_v42  ;;  %v3347_v58 = vmul.f32 %v6843_v59, %v6856_v39  ;;  %v2961_v23 = vsel %vm1481_vm0, %v2959_v33, %v2960_v9  ;;  %v2963_v13 = vsel %vm1481_vm0, %v2960_v9, %v2962_v12 }
 0x174   : > { %v2817_v38 = vadd.f32 %v2716_v36, %v2572_v14  ;;  %v3204_v32 = vrot.slane %v3102_v57, 2  ;;  %v3205_v37 = vrot.slane %v3103_v25, 2  ;;  %v3207_v10 = vrot.slane %v3104_v22, 2  ;;  %v7038_v36 = vld [vmem:[#allocation2 + $0x1f8] sm:$0xff]  ;;  %v3708_v22 = vld [vmem:[#allocation2 + $0x2a8] sm:$0x3] }
 0x175   : > { %v2818_v35 = vadd.f32 %v2718_v34, %v2573_v5  ;;  %v3348_v42 = vmul.f32 %v6843_v59, %v6858_v49  ;;  %v3349_v39 = vmul.f32 %v6843_v59, %v2492_v53  ;;  %v3449_v54 = vrot.slane %v3347_v58, 2  ;;  %v3590_v34 = vld [vmem:[#allocation2 + $0x188] sm:$0x3]  ;;  %v7047_v53 = vld [vmem:[%s9209_s3 + $0xd] ss:$0 sm:$0xff] }
 0x176   : > { %v3062_v43 = vadd.f32 %v2961_v23, %v2817_v38  ;;  %v3638_v14 = vmul.f32 %v6864_v47, %v7025_v45  ;;  %v3206_v8 = vsel %vm1972_vm1, %v3204_v32, %v3205_v37  ;;  %v3208_v60 = vsel %vm1972_vm1, %v3205_v37, %v3207_v10  ;;  %v7057_v38 = vld [vmem:[%s9209_s3 + $0xe] ss:$0 sm:$0xff]  ;;  %v667_v10 = vpop.f32.mrf.mxu3 }
 0x177   : > { %v3063_v62 = vadd.f32 %v2963_v13, %v2818_v35  ;;  %v3450_v46 = vrot.slane %v3348_v42, 2  ;;  %v3452_v9 = vrot.slane %v3349_v39, 2  ;;  %v3639_v12 = vmul.f32 %v6864_v47, %v7031_v50  ;;  %v551_v42 = vpop.f32.mrf.mxu0 }
 0x178   : > { %v3307_v33 = vadd.f32 %v3206_v8, %v3062_v43  ;;  %v3756_v57 = vmul.f32 %v7047_v53, %v7033_v21  ;;  %v3757_v58 = vmul.f32 %v7047_v53, %v7038_v36  ;;  %v3828_v23 = vmul.f32 %v7057_v38, %v7025_v45 }
 0x179   : > { %v3308_v5 = vadd.f32 %v3208_v60, %v3063_v62  ;;  %v3451_v25 = vsel %vm1972_vm1, %v3449_v54, %v3450_v46  ;;  %v3453_v13 = vsel %vm1972_vm1, %v3450_v46, %v3452_v9  ;;  %v3829_v35 = vmul.f32 %v7057_v38, %v7031_v50  ;;  %v7068_v54 = vld [vmem:[%s9209_s3 + $0xf] ss:$0 sm:$0xff] }
 0x17a   : > { %v3552_v32 = vadd.f32 %v3451_v25, %v3307_v33  ;;  %v3830_v37 = vmul.f32 %v7057_v38, %v3590_v34  ;;  %v3930_v39 = vrot.slane %v3828_v23, 1  ;;  %v4073_v62 = vmul.f32 %v7068_v54, %v7033_v21  ;;  %v7078_v23 = vld [vmem:[%s9209_s3 + $0x10] ss:$0 sm:$0xff] }
 0x17b   : > { %v3553_v43 = vadd.f32 %v3453_v13, %v3308_v5  ;;  %v4074_v8 = vmul.f32 %v7068_v54, %v7038_v36  ;;  %v3931_v46 = vrot.slane %v3829_v35, 1  ;;  %v4075_v9 = vmul.f32 %v7068_v54, %v3708_v22 }
 0x17c   : > { %v3670_v60 = vadd.f32 %v3638_v14, %v3552_v32  ;;  %v3933_v33 = vrot.slane %v3830_v37, 1  ;;  %v4175_v27 = vrot.slane %v4073_v62, 1  ;;  %v4318_v13 = vmul.f32 %v7078_v23, %v7025_v45 }
 0x17d   : > { %v3671_v25 = vadd.f32 %v3639_v12, %v3553_v43  ;;  %v4176_v5 = vrot.slane %v4074_v8, 1  ;;  %v3932_v6 = vsel %vm1481_vm0, %v3930_v39, %v3931_v46  ;;  %v4178_v32 = vrot.slane %v4075_v9, 1 }
 0x17e   : > { %v3788_v63 = vadd.f32 %v3756_v57, %v3670_v60  ;;  %v3934_v14 = vsel %vm1481_vm0, %v3931_v46, %v3933_v33  ;;  %v4319_v37 = vmul.f32 %v7078_v23, %v7031_v50  ;;  %v4320_v43 = vmul.f32 %v7078_v23, %v3590_v34  ;;  %v7092_v57 = vld [vmem:[%s9209_s3 + $0x11] ss:$0 sm:$0xff] }
 0x17f   : > { %v3789_v35 = vadd.f32 %v3757_v58, %v3671_v25  ;;  %v4177_v12 = vsel %vm1481_vm0, %v4175_v27, %v4176_v5  ;;  %v4179_v8 = vsel %vm1481_vm0, %v4176_v5, %v4178_v32  ;;  %v4420_v1 = vrot.slane %v4318_v13, 2 }
 0x180   : > { %v4033_v62 = vadd.f32 %v3932_v6, %v3788_v63  ;;  %v4563_v39 = vmul.f32 %v7092_v57, %v7033_v21  ;;  %v4421_v60 = vrot.slane %v4319_v37, 2  ;;  %v4423_v27 = vrot.slane %v4320_v43, 2  ;;  %v670_v37 = vpop.f32.mrf.mxu3  ;;  %v553_v43 = vpop.f32.mrf.mxu0 }
 0x181   : > { %v4034_v58 = vadd.f32 %v3934_v14, %v3789_v35  ;;  %v4564_v46 = vmul.f32 %v7092_v57, %v7038_v36  ;;  %v4565_v63 = vmul.f32 %v7092_v57, %v3708_v22  ;;  %v668_v34 = vadd.f32 %v667_v10, %v6012_v24 }
 0x182   : > { %v4278_v33 = vadd.f32 %v4177_v12, %v4033_v62  ;;  %v4665_v6 = vrot.slane %v4563_v39, 2  ;;  %v4422_v25 = vsel %vm1972_vm1, %v4420_v1, %v4421_v60  ;;  %v4424_v5 = vsel %vm1972_vm1, %v4421_v60, %v4423_v27 }
 0x183   : > { %v4279_v9 = vadd.f32 %v4179_v8, %v4034_v58  ;;  %v4666_v13 = vrot.slane %v4564_v46, 2  ;;  %v4668_v29 = vrot.slane %v4565_v63, 2  ;;  %v736_v14 = vmax.f32 %v668_v34, 0.0 }
 0x184   : > { %v4523_v32 = vadd.f32 %v4422_v25, %v4278_v33  ;;  %v552_v35 = vadd.f32 %v551_v42, %v6008_v20  ;;  %v641_v22 = vadd.f32 %v640_v30, %v6012_v24  ;;  %v671_v10 = vadd.f32 %v670_v37, %v6012_v24  ;;  %v642_v42 = vpop.f32.mrf.mxu1  ;;  %v7111_v33 = vld [vmem:[%s9210_s4] ss:$0 sm:$0xff] }
 0x185   : > { %v4524_v0 = vadd.f32 %v4424_v5, %v4279_v9  ;;  %v4667_v12 = vsel %vm1972_vm1, %v4665_v6, %v4666_v13  ;;  %v4669_v62 = vsel %vm1972_vm1, %v4666_v13, %v4668_v29  ;;  %v1033_v8 = vrot.slane %v736_v14, 7  ;;  %v5586_v5 = vld [vmem:[#allocation2 + $0x18] sm:$0xff] }
 0x186   : > { %v4768_v1 = vadd.f32 %v4667_v12, %v4523_v32  ;;  %v713_v39 = vmax.f32 %v552_v35, 0.0  ;;  %v714_v60 = vmax.f32 %v641_v22, 0.0  ;;  %v738_v27 = vmax.f32 %v671_v10, 0.0  ;;  %v5584_v12 = vld [vmem:[#allocation2 + $0x2c8] sm:$0xff] }
 0x187   : > { %v4769_v58 = vadd.f32 %v4669_v62, %v4524_v0  ;;  %v554_v46 = vadd.f32 %v553_v43, %v6008_v20  ;;  %v1034_v63 = vsel %vm781_vm2, %v6918_v18, %v1033_v8  ;;  %v1120_v29 = vsel %vm781_vm2, %v1033_v8, 0.0  ;;  %v7126_v18 = vld [vmem:[%s9209_s3 + $0x2] ss:$0 sm:$0xff]  ;;  %v7139_v62 = vld [vmem:[%s9209_s3 + $0x3] ss:$0 sm:$0xff] }
 0x188   : > { %v4804_v30 = vadd.f32 %v7111_v33, %v4768_v1  ;;  %v803_v6 = vrot.slane %v713_v39, 7  ;;  %1165 = vst [vmem:[#allocation2 + $0x2a0] sm:$0xff] %v1034_v63  ;;  %v1017_v34 = vrot.slane %v714_v60, 7  ;;  %v7118_v9 = vrot.slane %v738_v27, 7 }
 0x189   : > { %v4805_v0 = vadd.f32 %v7111_v33, %v4769_v58  ;;  %v715_v25 = vmax.f32 %v554_v46, 0.0  ;;  %1166 = vst [vmem:[#allocation2 + $0x278] sm:$0x3] %v1120_v29  ;;  %v643_v14 = vadd.f32 %v642_v42, %v6012_v24  ;;  %v1240_v22 = vmul.f32 %v5584_v12, %v6701_v26 }
 0x18a   : > { %v4836_v13 = vmax.f32 %v4804_v30, 0.0  ;;  %v885_v32 = vsel %vm781_vm2, 0.0, %v803_v6  ;;  %v1099_v43 = vsel %vm781_vm2, 0.0, %v1017_v34  ;;  %v1105_v8 = vsel %vm781_vm2, 0.0, %v7118_v9 }
 0x18b   : > { %v4837_v35 = vmax.f32 %v4805_v0, 0.0  ;;  %934 = vst [vmem:[#allocation2 + $0x190] sm:$0xff] %v885_v32  ;;  %v7129_v37 = vmul.f32 %v7126_v18, %v885_v32  ;;  %v7134_v10 = vmul.f32 %v6701_v26, %v885_v32  ;;  %v7142_v1 = vmul.f32 %v7139_v62, %v1099_v43 }
 0x18c   : > { %1149 = vst [vmem:[#allocation2 + $0x1e8] sm:$0xff] %v1099_v43  ;;  %v804_v39 = vrot.slane %v715_v25, 7  ;;  %v7148_v27 = vmul.f32 %v6713_v48, %v1099_v43  ;;  %v7151_v26 = vmul.f32 %v7139_v62, %v1105_v8  ;;  %v7154_v46 = vmul.f32 %v6713_v48, %v1105_v8 }
 0x18d   : > { %9406 = vst [vmem:[#allocation28_spill] sm:$0xff] %v7129_v37  ;;  %v4865_v58 = vpack.c.bf16 %v4837_v35, %v4836_v13  ;;  %v716_v63 = vmax.f32 %v643_v14, 0.0  ;;  %v1325_v13 = vmul.f32 %v6713_v48, %v6858_v49  ;;  %v9410_v35 = vrot.slane %v6458_v41, 1 }
 0x18e   : > { %9407 = vst [vmem:[#allocation16_spill] sm:$0xff] %v7142_v1  ;;  %v805_v42 = vsel %vm781_vm2, %v803_v6, %v804_v39  ;;  %v901_v30 = vsel %vm781_vm2, %v804_v39, 0.0  ;;  %v9411_v6 = vld [vmem:[#allocation30_spill] sm:$0xff]  ;;  %v1889_v48 = vmul.f32 %v5584_v12, %v6745_v55  ;;  %v5588_v12 = vld [vmem:[#allocation2 + $0x358] sm:$0x3] }
 0x18f   : > { %1167 = vst [vmem:[#allocation2 + $0xe8] sm:$0xff] %v1105_v8  ;;  %5001 = vmatmul.bf16.gmra.mxu2 %v4865_v58  ;;  %v7161_v25 = vmul.f32 %v7126_v18, %v805_v42  ;;  %v1018_v32 = vrot.slane %v716_v63, 7  ;;  %v9412_v43 = vrot.slane %v9411_v6, 1  ;;  %v9413_v8 = vrot.slane %v6494_v11, 1  ;;  %v9416_v63 = vld [vmem:[#allocation32_spill] sm:$0xff] }
 0x190   : > { %9408 = vst [vmem:[#allocation31_spill] sm:$0xff] %v7151_v26  ;;  %v9414_v39 = vmov %v9410_v35  ;;  %v1304_v0 = vld [vmem:[#allocation2 + $0x278] sm:$0x3]  ;;  %v1357_v60 = vadd.f32 %v1325_v13, %v1240_v22  ;;  %v1888_v6 = vmul.f32 %v5586_v5, %v6745_v55  ;;  %v9418_v22 = vrot.slane %v6422_v31, 1 }
 0x191   : > { %9409 = vst [vmem:[#allocation17_spill] sm:$0xff] %v7154_v46  ;;  %v1504_v14 = vsel %vm1481_vm0, %v9412_v43, %v9410_v35  ;;  %v1506_v58 = vsel %vm1481_vm0, %v9414_v39, %v9413_v8  ;;  %v7182_v35 = vmul.f32 %v7139_v62, %v1304_v0  ;;  %v1019_v41 = vsel %vm781_vm2, %v1017_v34, %v1018_v32  ;;  %v5587_v26 = vld [vmem:[#allocation2 + $0x218] sm:$0xff] }
 0x192   : > { %935 = vst [vmem:[#allocation2 + $0x250] sm:$0xff] %v805_v42  ;;  %v1644_v42 = vmul.f32 %v7139_v62, %v6858_v49  ;;  %v1115_v11 = vsel %vm781_vm2, %v1018_v32, 0.0  ;;  %v1603_v39 = vadd.f32 %v1506_v58, %v1357_v60  ;;  %v9419_v0 = vrot.slane %v6508_v3, 1 }
 0x193   : > { %936 = vst [vmem:[#allocation2 + $0x8] sm:$0x3] %v901_v30  ;;  %v9415_v30 = vld [vmem:[#allocation29_spill] sm:$0xff]  ;;  %v1993_v13 = vrot.slane %v1888_v6, 2  ;;  %v2135_v32 = vmul.f32 %v6759_v15, %v6858_v49  ;;  %v2136_v58 = vmul.f32 %v5588_v12, %v6759_v15  ;;  %v9420_v6 = vrot.slane %v6497_v4, 2 }
 0x194   : > { %v1356_v29 = vadd.f32 %v9416_v63, %v9415_v30  ;;  %9417 = vst [vmem:[#allocation21_spill] sm:$0xff] %v7182_v35  ;;  %v1748_v43 = vrot.slane %v1644_v42, 1  ;;  %v2134_v30 = vmul.f32 %v5587_v26, %v6759_v15  ;;  %v2424_v63 = vmul.f32 %v6781_v16, %v7025_v45 }
 0x195   : > { %1150 = vst [vmem:[#allocation2 + $0x350] sm:$0xff] %v1019_v41  ;;  %v2239_v31 = vrot.slane %v2135_v32, 2  ;;  %v2542_v4 = vmul.f32 %v6797_v40, %v7033_v21  ;;  %v2495_v32 = vld [vmem:[#allocation2 + $0x2a8] sm:$0x3] }
 0x196   : > { %v1602_v8 = vadd.f32 %v1504_v14, %v1356_v29  ;;  %1151 = vst [vmem:[#allocation2 + $0x70] sm:$0x3] %v1115_v11  ;;  %v1749_v5 = vsel %vm1481_vm0, %v9418_v22, %v1748_v43  ;;  %v1751_v34 = vsel %vm1481_vm0, %v1748_v43, %v9419_v0  ;;  %v1994_v14 = vrot.slane %v1889_v48, 2 }
 0x197   : > { %v1848_v60 = vadd.f32 %v1751_v34, %v1603_v39  ;;  %v2238_v42 = vrot.slane %v2134_v30, 2  ;;  %v2241_v11 = vrot.slane %v2136_v58, 2  ;;  %v2425_v48 = vmul.f32 %v6781_v16, %v7031_v50  ;;  %v2377_v30 = vld [vmem:[#allocation2 + $0x188] sm:$0x3] }
 0x198   : > { %v1847_v29 = vadd.f32 %v1749_v5, %v1602_v8  ;;  %v1995_v41 = vsel %vm1972_vm1, %v1993_v13, %v1994_v14  ;;  %v1997_v49 = vsel %vm1972_vm1, %v1994_v14, %v9420_v6  ;;  %v2615_v0 = vmul.f32 %v6804_v7, %v7025_v45 }
 0x199   : > { %v2094_v39 = vadd.f32 %v1997_v49, %v1848_v60  ;;  %v2240_v22 = vsel %vm1972_vm1, %v2238_v42, %v2239_v31  ;;  %v2242_v5 = vsel %vm1972_vm1, %v2239_v31, %v2241_v11  ;;  %v2616_v14 = vmul.f32 %v6804_v7, %v7031_v50 }
 0x19a   : > { %v1205_v3 = vld [vmem:[#allocation2 + $0x8] sm:$0x3]  ;;  %v2093_v8 = vadd.f32 %v1995_v41, %v1847_v29  ;;  %v2617_v12 = vmul.f32 %v6804_v7, %v2377_v30  ;;  %v2860_v58 = vmul.f32 %v6822_v2, %v7033_v21  ;;  %v2861_v41 = vmul.f32 %v6822_v2, %v7038_v36 }
 0x19b   : > { %v7207_v15 = vmul.f32 %v7126_v18, %v1205_v3  ;;  %v7210_v43 = vmul.f32 %v6745_v55, %v1205_v3  ;;  %v2339_v13 = vadd.f32 %v2242_v5, %v2094_v39  ;;  %v2543_v55 = vmul.f32 %v6797_v40, %v7038_v36 }
 0x19c   : > { %v2338_v34 = vadd.f32 %v2240_v22, %v2093_v8  ;;  %v2719_v3 = vrot.slane %v2615_v0, 1  ;;  %v2720_v40 = vrot.slane %v2616_v14, 1  ;;  %v2722_v49 = vrot.slane %v2617_v12, 1 }
 0x19d   : > { %9421 = vst [vmem:[#allocation18_spill] sm:$0xff] %v7207_v15  ;;  %v1289_v60 = vld [vmem:[#allocation2 + $0x70] sm:$0x3]  ;;  %v2457_v31 = vadd.f32 %v2425_v48, %v2339_v13  ;;  %v2862_v11 = vmul.f32 %v6822_v2, %v2495_v32  ;;  %v2964_v22 = vrot.slane %v2860_v58, 1  ;;  %v2965_v7 = vrot.slane %v2861_v41, 1  ;;  %v7240_v2 = vld [vmem:[#allocation2 + $0x198] sm:$0xff] }
 0x19e   : > { %9422 = vst [vmem:[#allocation30_spill] sm:$0xff] %v7210_v43  ;;  %v2456_v42 = vadd.f32 %v2424_v63, %v2338_v34  ;;  %v7230_v6 = vmul.f32 %v7139_v62, %v1289_v60  ;;  %v2721_v5 = vsel %vm1481_vm0, %v2719_v3, %v2720_v40  ;;  %v2723_v63 = vsel %vm1481_vm0, %v2720_v40, %v2722_v49  ;;  %v7252_v40 = vld [vmem:[#allocation2 + $0x128] sm:$0xff] }
 0x19f   : > { %v2575_v39 = vadd.f32 %v2543_v55, %v2457_v31  ;;  %v2967_v48 = vrot.slane %v2862_v11, 1  ;;  %v3105_v0 = vmul.f32 %v6834_v56, %v7025_v45  ;;  %v2966_v60 = vsel %vm1481_vm0, %v2964_v22, %v2965_v7  ;;  %v7248_v45 = vld [vmem:[#allocation2 + $0x108] sm:$0xff] }
 0x1a0   : > { %9423 = vst [vmem:[#allocation29_spill] sm:$0xff] %v7230_v6  ;;  %v2574_v8 = vadd.f32 %v2542_v4, %v2456_v42  ;;  %v3106_v14 = vmul.f32 %v6834_v56, %v7031_v50  ;;  %v3107_v55 = vmul.f32 %v6834_v56, %v2377_v30  ;;  %v3350_v58 = vmul.f32 %v6843_v59, %v7033_v21  ;;  %v7246_v42 = vld [vmem:[#allocation2 + $0x148] sm:$0xff] }
 0x1a1   : > { %v2820_v13 = vadd.f32 %v2723_v63, %v2575_v39  ;;  %v2968_v4 = vsel %vm1481_vm0, %v2965_v7, %v2967_v48  ;;  %v3209_v12 = vrot.slane %v3105_v0, 2  ;;  %v3351_v50 = vmul.f32 %v6843_v59, %v7038_v36  ;;  %v3593_v39 = vld [vmem:[#allocation2 + $0x2d0] sm:$0x3] }
 0x1a2   : > { %v2819_v34 = vadd.f32 %v2721_v5, %v2574_v8  ;;  %v3210_v41 = vrot.slane %v3106_v14, 2  ;;  %v3212_v49 = vrot.slane %v3107_v55, 2  ;;  %v3352_v11 = vmul.f32 %v6843_v59, %v2495_v32 }
 0x1a3   : > { %v3065_v3 = vadd.f32 %v2968_v4, %v2820_v13  ;;  %v3454_v56 = vrot.slane %v3350_v58, 2  ;;  %v3640_v30 = vmul.f32 %v6864_v47, %v7240_v2  ;;  %v3455_v8 = vrot.slane %v3351_v50, 2  ;;  %v556_v58 = vpop.f32.mrf.mxu0 }
 0x1a4   : > { %v3064_v31 = vadd.f32 %v2966_v60, %v2819_v34  ;;  %v3211_v21 = vsel %vm1972_vm1, %v3209_v12, %v3210_v41  ;;  %v3641_v22 = vmul.f32 %v6864_v47, %v7246_v42  ;;  %v3758_v7 = vmul.f32 %v7047_v53, %v7248_v45  ;;  %v3711_v34 = vld [vmem:[#allocation2 + $0x118] sm:$0x3]  ;;  %v672_v60 = vpop.f32.mrf.mxu3 }
 0x1a5   : > { %v3213_v5 = vsel %vm1972_vm1, %v3210_v41, %v3212_v49  ;;  %v3457_v48 = vrot.slane %v3352_v11, 2  ;;  %v3759_v59 = vmul.f32 %v7047_v53, %v7252_v40  ;;  %v3456_v0 = vsel %vm1972_vm1, %v3454_v56, %v3455_v8 }
 0x1a6   : > { %v3309_v63 = vadd.f32 %v3211_v21, %v3064_v31  ;;  %v3310_v32 = vadd.f32 %v3213_v5, %v3065_v3  ;;  %v3831_v13 = vmul.f32 %v7057_v38, %v7240_v2  ;;  %v3832_v47 = vmul.f32 %v7057_v38, %v7246_v42  ;;  %v645_v31 = vpop.f32.mrf.mxu1 }
 0x1a7   : > { %v3458_v14 = vsel %vm1972_vm1, %v3455_v8, %v3457_v48  ;;  %v3833_v55 = vmul.f32 %v7057_v38, %v3593_v39  ;;  %v4076_v12 = vmul.f32 %v7068_v54, %v7248_v45  ;;  %v4077_v49 = vmul.f32 %v7068_v54, %v7252_v40 }
 0x1a8   : > { %v3554_v4 = vadd.f32 %v3456_v0, %v3309_v63  ;;  %v3555_v3 = vadd.f32 %v3458_v14, %v3310_v32  ;;  %v3935_v41 = vrot.slane %v3831_v13, 1  ;;  %v3936_v50 = vrot.slane %v3832_v47, 1 }
 0x1a9   : > { %v3938_v56 = vrot.slane %v3833_v55, 1  ;;  %v4078_v21 = vmul.f32 %v7068_v54, %v3711_v34  ;;  %v4180_v5 = vrot.slane %v4076_v12, 1  ;;  %v4181_v48 = vrot.slane %v4077_v49, 1 }
 0x1aa   : > { %v3672_v11 = vadd.f32 %v3640_v30, %v3554_v4  ;;  %v3673_v8 = vadd.f32 %v3641_v22, %v3555_v3  ;;  %v3937_v63 = vsel %vm1481_vm0, %v3935_v41, %v3936_v50  ;;  %v4321_v0 = vmul.f32 %v7078_v23, %v7240_v2 }
 0x1ab   : > { %v3939_v32 = vsel %vm1481_vm0, %v3936_v50, %v3938_v56  ;;  %v4183_v13 = vrot.slane %v4078_v21, 1  ;;  %v4322_v47 = vmul.f32 %v7078_v23, %v7246_v42  ;;  %v4182_v30 = vsel %vm1481_vm0, %v4180_v5, %v4181_v48 }
 0x1ac   : > { %v3790_v26 = vadd.f32 %v3758_v7, %v3672_v11  ;;  %v3791_v14 = vadd.f32 %v3759_v59, %v3673_v8  ;;  %v4323_v4 = vmul.f32 %v7078_v23, %v3593_v39  ;;  %v4425_v55 = vrot.slane %v4321_v0, 2 }
 0x1ad   : > { %v4184_v12 = vsel %vm1481_vm0, %v4181_v48, %v4183_v13  ;;  %v4426_v3 = vrot.slane %v4322_v47, 2  ;;  %v4566_v41 = vmul.f32 %v7092_v57, %v7248_v45  ;;  %v4567_v50 = vmul.f32 %v7092_v57, %v7252_v40  ;;  %v675_v48 = vpop.f32.mrf.mxu3 }
 0x1ae   : > { %v4035_v22 = vadd.f32 %v3937_v63, %v3790_v26  ;;  %v4036_v7 = vadd.f32 %v3939_v32, %v3791_v14  ;;  %v4428_v49 = vrot.slane %v4323_v4, 2  ;;  %v4568_v11 = vmul.f32 %v7092_v57, %v3711_v34  ;;  %v558_v14 = vpop.f32.mrf.mxu0  ;;  %v647_v34 = vpop.f32.mrf.mxu1 }
 0x1af   : > { %v4427_v56 = vsel %vm1972_vm1, %v4425_v55, %v4426_v3  ;;  %v4670_v21 = vrot.slane %v4566_v41, 2  ;;  %v673_v39 = vadd.f32 %v672_v60, %v6012_v24  ;;  %v4671_v8 = vrot.slane %v4567_v50, 2 }
 0x1b0   : > { %v4280_v59 = vadd.f32 %v4182_v30, %v4035_v22  ;;  %v4281_v26 = vadd.f32 %v4184_v12, %v4036_v7  ;;  %v4429_v5 = vsel %vm1972_vm1, %v4426_v3, %v4428_v49  ;;  %v4673_v63 = vrot.slane %v4568_v11, 2 }
 0x1b1   : > { %v740_v32 = vmax.f32 %v673_v39, 0.0  ;;  %v557_v13 = vadd.f32 %v556_v58, %v6008_v20  ;;  %v646_v47 = vadd.f32 %v645_v31, %v6012_v24  ;;  %v4672_v4 = vsel %vm1972_vm1, %v4670_v21, %v4671_v8 }
 0x1b2   : > { %v4525_v0 = vadd.f32 %v4427_v56, %v4280_v59  ;;  %v4526_v30 = vadd.f32 %v4429_v5, %v4281_v26  ;;  %v4674_v55 = vsel %vm1972_vm1, %v4671_v8, %v4673_v63  ;;  %v676_v60 = vadd.f32 %v675_v48, %v6012_v24  ;;  %v9440_v8 = vld [vmem:[#allocation36_spill] sm:$0xff] }
 0x1b3   : > { %v1036_v12 = vrot.slane %v740_v32, 7  ;;  %v717_v3 = vmax.f32 %v557_v13, 0.0  ;;  %v718_v41 = vmax.f32 %v646_v47, 0.0  ;;  %v559_v50 = vadd.f32 %v558_v14, %v6008_v20  ;;  %v7317_v47 = vld [vmem:[%s9209_s3] ss:$0 sm:$0xff] }
 0x1b4   : > { %v4770_v22 = vadd.f32 %v4672_v4, %v4525_v0  ;;  %v4771_v7 = vadd.f32 %v4674_v55, %v4526_v30  ;;  %v742_v49 = vmax.f32 %v676_v60, 0.0  ;;  %v648_v58 = vadd.f32 %v647_v34, %v6012_v24  ;;  %v5590_v14 = vld [vmem:[#allocation2 + $0x2c0] sm:$0xff] }
 0x1b5   : > { %v1037_v11 = vsel %vm781_vm2, %v7118_v9, %v1036_v12  ;;  %v1121_v59 = vsel %vm781_vm2, %v1036_v12, 0.0  ;;  %v806_v56 = vrot.slane %v717_v3, 7  ;;  %v1020_v39 = vrot.slane %v718_v41, 7  ;;  %v7332_v3 = vld [vmem:[%s9209_s3 + $0x1] ss:$0 sm:$0xff] }
 0x1b6   : > { %v4806_v31 = vadd.f32 %v7111_v33, %v4770_v22  ;;  %v4807_v21 = vadd.f32 %v7111_v33, %v4771_v7  ;;  %1168 = vst [vmem:[#allocation2 + $0x240] sm:$0xff] %v1037_v11  ;;  %v7306_v26 = vrot.slane %v742_v49, 7  ;;  %v719_v5 = vmax.f32 %v559_v50, 0.0  ;;  %v9437_v12 = vld [vmem:[#allocation34_spill] sm:$0xff] }
 0x1b7   : > { %1169 = vst [vmem:[#allocation2 + $0x1b0] sm:$0x3] %v1121_v59  ;;  %v886_v48 = vsel %vm781_vm2, 0.0, %v806_v56  ;;  %v720_v0 = vmax.f32 %v648_v58, 0.0  ;;  %v1100_v13 = vsel %vm781_vm2, 0.0, %v1020_v39  ;;  %v1242_v34 = vmul.f32 %v5590_v14, %v7317_v47 }
 0x1b8   : > { %v4838_v63 = vmax.f32 %v4806_v31, 0.0  ;;  %v4839_v32 = vmax.f32 %v4807_v21, 0.0  ;;  %937 = vst [vmem:[#allocation2 + $0x120] sm:$0xff] %v886_v48  ;;  %v7311_v9 = vmul.f32 %v7126_v18, %v886_v48  ;;  %v7321_v30 = vmul.f32 %v7317_v47, %v886_v48  ;;  %v9431_v48 = vld [vmem:[#allocation35_spill] sm:$0xff] }
 0x1b9   : > { %1152 = vst [vmem:[#allocation2 + $0x68] sm:$0xff] %v1100_v13  ;;  %v7324_v4 = vmul.f32 %v7139_v62, %v1100_v13  ;;  %v1106_v55 = vsel %vm781_vm2, 0.0, %v7306_v26  ;;  %v807_v60 = vrot.slane %v719_v5, 7  ;;  %v7335_v41 = vmul.f32 %v7332_v3, %v1100_v13 }
 0x1ba   : > { %9424 = vst [vmem:[#allocation32_spill] sm:$0xff] %v7311_v9  ;;  %v4866_v22 = vpack.c.bf16 %v4839_v32, %v4838_v63  ;;  %v7338_v7 = vmul.f32 %v7139_v62, %v1106_v55  ;;  %v7341_v49 = vmul.f32 %v7332_v3, %v1106_v55  ;;  %v1021_v31 = vrot.slane %v720_v0, 7  ;;  %v9432_v32 = vld [vmem:[#allocation42_spill] sm:$0xff] }
 0x1bb   : > { %9425 = vst [vmem:[#allocation49_spill] sm:$0xff] %v7321_v30  ;;  %v808_v50 = vsel %vm781_vm2, %v806_v56, %v807_v60  ;;  %v902_v58 = vsel %vm781_vm2, %v807_v60, 0.0  ;;  %v1327_v5 = vmul.f32 %v7332_v3, %v7038_v36  ;;  %v1358_v0 = vadd.f32 %v9431_v48, %v6511_v44 }
 0x1bc   : > { %9426 = vst [vmem:[#allocation50_spill] sm:$0xff] %v7324_v4  ;;  %5006 = vmatmul.bf16.gmra.mxu2 %v4866_v22  ;;  %v7348_v21 = vmul.f32 %v7126_v18, %v808_v50  ;;  %v1022_v63 = vsel %vm781_vm2, %v1020_v39, %v1021_v31  ;;  %v1116_v56 = vsel %vm781_vm2, %v1021_v31, 0.0  ;;  %v9433_v13 = vrot.slane %v9432_v32, 1  ;;  %v7375_v32 = vld [vmem:[%s9209_s3 + $0x4] ss:$0 sm:$0xff] }
 0x1bd   : > { %9427 = vst [vmem:[#allocation51_spill] sm:$0xff] %v7335_v41  ;;  %v1359_v11 = vadd.f32 %v1327_v5, %v1242_v34  ;;  %v9438_v39 = vrot.slane %v9437_v12, 1  ;;  %v1647_v44 = vmul.f32 %v7139_v62, %v7038_v36  ;;  %v1892_v5 = vmul.f32 %v7375_v32, %v5590_v14  ;;  %v7382_v12 = vld [vmem:[%s9209_s3 + $0x5] ss:$0 sm:$0xff] }
 0x1be   : > { %1170 = vst [vmem:[#allocation2 + $0x170] sm:$0xff] %v1106_v55  ;;  %v9434_v55 = vld [vmem:[#allocation41_spill] sm:$0xff]  ;;  %v1307_v59 = vld [vmem:[#allocation2 + $0x1b0] sm:$0x3]  ;;  %v9441_v16 = vrot.slane %v9440_v8, 1 }
 0x1bf   : > { %9428 = vst [vmem:[#allocation52_spill] sm:$0xff] %v7338_v7  ;;  %v9435_v60 = vrot.slane %v9434_v55, 1  ;;  %v7370_v48 = vmul.f32 %v7139_v62, %v1307_v59  ;;  %v1999_v29 = vrot.slane %v1892_v5, 2 }
 0x1c0   : > { %9429 = vst [vmem:[#allocation53_spill] sm:$0xff] %v7341_v49  ;;  %v9442_v49 = vld [vmem:[#allocation44_spill] sm:$0xff] }
 0x1c1   : > { %938 = vst [vmem:[#allocation2 + $0x1d8] sm:$0xff] %v808_v50  ;;  %v1511_v22 = vsel %vm1481_vm0, %v9435_v60, %v9433_v13  ;;  %v5595_v13 = vld [vmem:[#allocation2 + $0x58] sm:$0xff]  ;;  %v9443_v46 = vrot.slane %v9442_v49, 1 }
 0x1c2   : > { %9430 = vst [vmem:[#allocation54_spill] sm:$0xff] %v7348_v21  ;;  %v2137_v59 = vmul.f32 %v5595_v13, %v7382_v12  ;;  %v1605_v55 = vadd.f32 %v1511_v22, %v1359_v11 }
 0x1c3   : > { %939 = vst [vmem:[#allocation2 + $0x248] sm:$0x3] %v902_v58  ;;  %v9436_v58 = vmov %v9435_v60  ;;  %v2138_v60 = vmul.f32 %v7382_v12, %v7038_v36 }
 0x1c4   : > { %1153 = vst [vmem:[#allocation2 + $0x50] sm:$0xff] %v1022_v63  ;;  %v1509_v31 = vsel %vm1481_vm0, %v9438_v39, %v9436_v58  ;;  %v5593_v63 = vld [vmem:[#allocation2 + $0x20] sm:$0xff]  ;;  %v5596_v58 = vld [vmem:[#allocation2 + $0x2a8] sm:$0x3]  ;;  %v2243_v14 = vrot.slane %v2137_v59, 2 }
 0x1c5   : > { %9439 = vst [vmem:[#allocation35_spill] sm:$0xff] %v7370_v48  ;;  %v1891_v34 = vmul.f32 %v5593_v63, %v7375_v32  ;;  %v2139_v39 = vmul.f32 %v5596_v58, %v7382_v12  ;;  %v1604_v50 = vadd.f32 %v1509_v31, %v1358_v0  ;;  %v2244_v11 = vrot.slane %v2138_v60, 2  ;;  %v9444_v31 = vld [vmem:[#allocation43_spill] sm:$0xff] }
 0x1c6   : > { %1154 = vst [vmem:[#allocation2 + $0x30] sm:$0x3] %v1116_v56  ;;  %v1753_v56 = vrot.slane %v1647_v44, 1 }
 0x1c7   : > { %v1998_v63 = vrot.slane %v1891_v34, 2  ;;  %v2246_v22 = vrot.slane %v2139_v39, 2  ;;  %v9445_v34 = vrot.slane %v9444_v31, 2  ;;  %v2245_v8 = vsel %vm1972_vm1, %v2243_v14, %v2244_v11  ;;  %v7419_v39 = vld [vmem:[%s9209_s3 + $0x7] ss:$0 sm:$0xff] }
 0x1c8   : > { %v1754_v7 = vsel %vm1481_vm0, %v9441_v16, %v1753_v56  ;;  %v1756_v13 = vsel %vm1481_vm0, %v1753_v56, %v9443_v46  ;;  %v7404_v46 = vld [vmem:[%s9209_s3 + $0x6] ss:$0 sm:$0xff]  ;;  %v7426_v14 = vld [vmem:[%s9209_s3 + $0x8] ss:$0 sm:$0xff] }
 0x1c9   : > { %v1849_v36 = vadd.f32 %v1754_v7, %v1604_v50  ;;  %v1850_v35 = vadd.f32 %v1756_v13, %v1605_v55  ;;  %v2000_v58 = vsel %vm1972_vm1, %v1998_v63, %v1999_v29  ;;  %v2002_v5 = vsel %vm1972_vm1, %v1999_v29, %v9445_v34  ;;  %v2380_v55 = vld [vmem:[#allocation2 + $0x2d0] sm:$0x3] }
 0x1ca   : > { %v1208_v0 = vld [vmem:[#allocation2 + $0x248] sm:$0x3]  ;;  %v2247_v16 = vsel %vm1972_vm1, %v2244_v11, %v2246_v22  ;;  %v2426_v7 = vmul.f32 %v7404_v46, %v7240_v2  ;;  %v2427_v60 = vmul.f32 %v7404_v46, %v7246_v42  ;;  %v2544_v63 = vmul.f32 %v7419_v39, %v7248_v45 }
 0x1cb   : > { %v7409_v49 = vmul.f32 %v7126_v18, %v1208_v0  ;;  %v7412_v50 = vmul.f32 %v7375_v32, %v1208_v0  ;;  %v2095_v59 = vadd.f32 %v2000_v58, %v1849_v36  ;;  %v2096_v29 = vadd.f32 %v2002_v5, %v1850_v35  ;;  %v2498_v58 = vld [vmem:[#allocation2 + $0x118] sm:$0x3]  ;;  %v7443_v11 = vld [vmem:[%s9209_s3 + $0x9] ss:$0 sm:$0xff] }
 0x1cc   : > { %v2618_v35 = vmul.f32 %v7426_v14, %v7240_v2  ;;  %v2619_v13 = vmul.f32 %v7426_v14, %v7246_v42  ;;  %v2545_v0 = vmul.f32 %v7419_v39, %v7252_v40  ;;  %v2620_v34 = vmul.f32 %v7426_v14, %v2380_v55 }
 0x1cd   : > { %9446 = vst [vmem:[#allocation42_spill] sm:$0xff] %v7409_v49  ;;  %v1292_v56 = vld [vmem:[#allocation2 + $0x30] sm:$0x3]  ;;  %v2340_v36 = vadd.f32 %v2245_v8, %v2095_v59  ;;  %v2341_v31 = vadd.f32 %v2247_v16, %v2096_v29  ;;  %v2863_v8 = vmul.f32 %v7443_v11, %v7248_v45  ;;  %v2864_v59 = vmul.f32 %v7443_v11, %v7252_v40 }
 0x1ce   : > { %9447 = vst [vmem:[#allocation41_spill] sm:$0xff] %v7412_v50  ;;  %v2724_v5 = vrot.slane %v2618_v35, 1  ;;  %v2725_v44 = vrot.slane %v2619_v13, 1  ;;  %v7438_v48 = vmul.f32 %v7139_v62, %v1292_v56  ;;  %v2727_v35 = vrot.slane %v2620_v34, 1 }
 0x1cf   : > { %v2458_v4 = vadd.f32 %v2426_v7, %v2340_v36  ;;  %v2459_v16 = vadd.f32 %v2427_v60, %v2341_v31  ;;  %v2865_v13 = vmul.f32 %v7443_v11, %v2498_v58  ;;  %v2969_v22 = vrot.slane %v2863_v8, 1  ;;  %v7454_v36 = vld [vmem:[%s9209_s3 + $0xa] ss:$0 sm:$0xff] }
 0x1d0   : > { %v2726_v29 = vsel %vm1481_vm0, %v2724_v5, %v2725_v44  ;;  %v2970_v7 = vrot.slane %v2864_v59, 1  ;;  %v3108_v50 = vmul.f32 %v7454_v36, %v7240_v2  ;;  %v2728_v9 = vsel %vm1481_vm0, %v2725_v44, %v2727_v35  ;;  %v7463_v8 = vld [vmem:[#allocation2 + $0x268] sm:$0xff] }
 0x1d1   : > { %v2576_v56 = vadd.f32 %v2544_v63, %v2458_v4  ;;  %v2577_v49 = vadd.f32 %v2545_v0, %v2459_v16  ;;  %v2972_v60 = vrot.slane %v2865_v13, 1  ;;  %v3109_v31 = vmul.f32 %v7454_v36, %v7246_v42  ;;  %v7469_v2 = vld [vmem:[%s9209_s3 + $0xb] ss:$0 sm:$0xff] }
 0x1d2   : > { %v2971_v4 = vsel %vm1481_vm0, %v2969_v22, %v2970_v7  ;;  %v3110_v63 = vmul.f32 %v7454_v36, %v2380_v55  ;;  %v3214_v5 = vrot.slane %v3108_v50, 2  ;;  %v3353_v42 = vmul.f32 %v7469_v2, %v7248_v45  ;;  %v7476_v22 = vld [vmem:[#allocation2 + $0x340] sm:$0xff]  ;;  %v7486_v45 = vld [vmem:[%s9209_s3 + $0xc] ss:$0 sm:$0xff] }
 0x1d3   : > { %v2821_v34 = vadd.f32 %v2726_v29, %v2576_v56  ;;  %v2822_v59 = vadd.f32 %v2728_v9, %v2577_v49  ;;  %v2973_v21 = vsel %vm1481_vm0, %v2970_v7, %v2972_v60  ;;  %v3215_v41 = vrot.slane %v3109_v31, 2  ;;  %v7478_v9 = vld [vmem:[#allocation2 + $0x98] sm:$0xff]  ;;  %v3596_v31 = vld [vmem:[#allocation2 + $0x110] sm:$0x3] }
 0x1d4   : > { %v3217_v0 = vrot.slane %v3110_v63, 2  ;;  %v3354_v55 = vmul.f32 %v7469_v2, %v7252_v40  ;;  %v3355_v50 = vmul.f32 %v7469_v2, %v2498_v58  ;;  %v7480_v49 = vld [vmem:[#allocation2 + $0xd8] sm:$0xff]  ;;  %v3459_v35 = vrot.slane %v3353_v42, 2 }
 0x1d5   : > { %v3066_v44 = vadd.f32 %v2971_v4, %v2821_v34  ;;  %v3067_v16 = vadd.f32 %v2973_v21, %v2822_v59  ;;  %v3216_v29 = vsel %vm1972_vm1, %v3214_v5, %v3215_v41  ;;  %v3642_v13 = vmul.f32 %v7486_v45, %v7463_v8  ;;  %v3714_v4 = vld [vmem:[#allocation2 + $0x2e0] sm:$0x3] }
 0x1d6   : > { %v3218_v58 = vsel %vm1972_vm1, %v3215_v41, %v3217_v0  ;;  %v3460_v7 = vrot.slane %v3354_v55, 2  ;;  %v3462_v60 = vrot.slane %v3355_v50, 2  ;;  %v3643_v21 = vmul.f32 %v7486_v45, %v7476_v22 }
 0x1d7   : > { %v3311_v56 = vadd.f32 %v3216_v29, %v3066_v44  ;;  %v3312_v34 = vadd.f32 %v3218_v58, %v3067_v16  ;;  %v3760_v63 = vmul.f32 %v7047_v53, %v7478_v9  ;;  %v3761_v5 = vmul.f32 %v7047_v53, %v7480_v49  ;;  %v677_v29 = vpop.f32.mrf.mxu3  ;;  %v561_v58 = vpop.f32.mrf.mxu0 }
 0x1d8   : > { %v3461_v59 = vsel %vm1972_vm1, %v3459_v35, %v3460_v7  ;;  %v3463_v42 = vsel %vm1972_vm1, %v3460_v7, %v3462_v60  ;;  %v3834_v41 = vmul.f32 %v7057_v38, %v7463_v8  ;;  %v3835_v44 = vmul.f32 %v7057_v38, %v7476_v22 }
 0x1d9   : > { %v3556_v0 = vadd.f32 %v3461_v59, %v3311_v56  ;;  %v3557_v55 = vadd.f32 %v3463_v42, %v3312_v34  ;;  %v3836_v50 = vmul.f32 %v7057_v38, %v3596_v31  ;;  %v4079_v16 = vmul.f32 %v7068_v54, %v7478_v9  ;;  %v650_v56 = vpop.f32.mrf.mxu1 }
 0x1da   : > { %v3940_v53 = vrot.slane %v3834_v41, 1  ;;  %v3941_v30 = vrot.slane %v3835_v44, 1  ;;  %v4080_v35 = vmul.f32 %v7068_v54, %v7480_v49  ;;  %v4081_v7 = vmul.f32 %v7068_v54, %v3714_v4 }
 0x1db   : > { %v3674_v60 = vadd.f32 %v3642_v13, %v3556_v0  ;;  %v3675_v43 = vadd.f32 %v3643_v21, %v3557_v55  ;;  %v3943_v6 = vrot.slane %v3836_v50, 1  ;;  %v4185_v1 = vrot.slane %v4079_v16, 1 }
 0x1dc   : > { %v3942_v34 = vsel %vm1481_vm0, %v3940_v53, %v3941_v30  ;;  %v4186_v38 = vrot.slane %v4080_v35, 1  ;;  %v4188_v59 = vrot.slane %v4081_v7, 1  ;;  %v4324_v42 = vmul.f32 %v7078_v23, %v7463_v8 }
 0x1dd   : > { %v3792_v15 = vadd.f32 %v3760_v63, %v3674_v60  ;;  %v3793_v41 = vadd.f32 %v3761_v5, %v3675_v43  ;;  %v3944_v44 = vsel %vm1481_vm0, %v3941_v30, %v3943_v6  ;;  %v4325_v37 = vmul.f32 %v7078_v23, %v7476_v22 }
 0x1de   : > { %v4187_v54 = vsel %vm1481_vm0, %v4185_v1, %v4186_v38  ;;  %v4189_v13 = vsel %vm1481_vm0, %v4186_v38, %v4188_v59  ;;  %v4326_v21 = vmul.f32 %v7078_v23, %v3596_v31  ;;  %v4430_v0 = vrot.slane %v4324_v42, 2 }
 0x1df   : > { %v4037_v55 = vadd.f32 %v3942_v34, %v3792_v15  ;;  %v4038_v50 = vadd.f32 %v3944_v44, %v3793_v41  ;;  %v4431_v16 = vrot.slane %v4325_v37, 2  ;;  %v4569_v53 = vmul.f32 %v7092_v57, %v7478_v9  ;;  %v680_v42 = vpop.f32.mrf.mxu3 }
 0x1e0   : > { %v4433_v63 = vrot.slane %v4326_v21, 2  ;;  %v4570_v43 = vmul.f32 %v7092_v57, %v7480_v49  ;;  %v4571_v6 = vmul.f32 %v7092_v57, %v3714_v4  ;;  %v678_v30 = vadd.f32 %v677_v29, %v6012_v24  ;;  %v563_v57 = vpop.f32.mrf.mxu0 }
 0x1e1   : > { %v4282_v1 = vadd.f32 %v4187_v54, %v4037_v55  ;;  %v4283_v5 = vadd.f32 %v4189_v13, %v4038_v50  ;;  %v4432_v35 = vsel %vm1972_vm1, %v4430_v0, %v4431_v16  ;;  %v4675_v23 = vrot.slane %v4569_v53, 2  ;;  %v652_v55 = vpop.f32.mrf.mxu1 }
 0x1e2   : > { %v4434_v15 = vsel %vm1972_vm1, %v4431_v16, %v4433_v63  ;;  %v4676_v31 = vrot.slane %v4570_v43, 2  ;;  %v4678_v37 = vrot.slane %v4571_v6, 2  ;;  %v744_v7 = vmax.f32 %v678_v30, 0.0 }
 0x1e3   : > { %v4527_v60 = vadd.f32 %v4432_v35, %v4282_v1  ;;  %v4528_v34 = vadd.f32 %v4434_v15, %v4283_v5  ;;  %v562_v38 = vadd.f32 %v561_v58, %v6008_v20  ;;  %v651_v59 = vadd.f32 %v650_v56, %v6012_v24 }
 0x1e4   : > { %v4677_v4 = vsel %vm1972_vm1, %v4675_v23, %v4676_v31  ;;  %v4679_v29 = vsel %vm1972_vm1, %v4676_v31, %v4678_v37  ;;  %v1039_v41 = vrot.slane %v744_v7, 7  ;;  %v681_v44 = vadd.f32 %v680_v42, %v6012_v24 }
 0x1e5   : > { %v4772_v54 = vadd.f32 %v4677_v4, %v4527_v60  ;;  %v4773_v13 = vadd.f32 %v4679_v29, %v4528_v34  ;;  %v721_v21 = vmax.f32 %v562_v38, 0.0  ;;  %v722_v0 = vmax.f32 %v651_v59, 0.0  ;;  %v5604_v60 = vld [vmem:[#allocation2 + $0x148] sm:$0xff] }
 0x1e6   : > { %v1040_v50 = vsel %vm781_vm2, %v7306_v26, %v1039_v41  ;;  %v1122_v58 = vsel %vm781_vm2, %v1039_v41, 0.0  ;;  %v746_v56 = vmax.f32 %v681_v44, 0.0  ;;  %v564_v16 = vadd.f32 %v563_v57, %v6008_v20 }
 0x1e7   : > { %v4808_v53 = vadd.f32 %v7111_v33, %v4772_v54  ;;  %v4809_v63 = vadd.f32 %v7111_v33, %v4773_v13  ;;  %1171 = vst [vmem:[#allocation2 + $0x2f0] sm:$0xff] %v1040_v50  ;;  %v809_v43 = vrot.slane %v721_v21, 7  ;;  %v1023_v6 = vrot.slane %v722_v0, 7  ;;  %v9451_v0 = vld [vmem:[#allocation48_spill] sm:$0xff]  ;;  %v9453_v50 = vld [vmem:[#allocation27_spill] sm:$0xff] }
 0x1e8   : > { %1172 = vst [vmem:[#allocation2 + $0x88] sm:$0x3] %v1122_v58  ;;  %v7538_v1 = vrot.slane %v746_v56, 7  ;;  %v723_v5 = vmax.f32 %v564_v16, 0.0  ;;  %v653_v26 = vadd.f32 %v652_v55, %v6012_v24  ;;  %v1244_v34 = vmul.f32 %v5604_v60, %v7317_v47 }
 0x1e9   : > { %v4840_v35 = vmax.f32 %v4808_v53, 0.0  ;;  %v4841_v23 = vmax.f32 %v4809_v63, 0.0  ;;  %v887_v15 = vsel %vm781_vm2, 0.0, %v809_v43  ;;  %v1101_v31 = vsel %vm781_vm2, 0.0, %v1023_v6  ;;  %v9456_v53 = vld [vmem:[#allocation45_spill] sm:$0xff]  ;;  %v9457_v63 = vld [vmem:[#allocation47_spill] sm:$0xff] }
 0x1ea   : > { %940 = vst [vmem:[#allocation2 + $0x280] sm:$0xff] %v887_v15  ;;  %v7544_v33 = vmul.f32 %v7317_v47, %v887_v15  ;;  %v7547_v37 = vmul.f32 %v7126_v18, %v887_v15  ;;  %v7550_v7 = vmul.f32 %v7139_v62, %v1101_v31  ;;  %v1107_v59 = vsel %vm781_vm2, 0.0, %v7538_v1 }
 0x1eb   : > { %v4867_v38 = vpack.c.bf16 %v4841_v23, %v4840_v35  ;;  %1155 = vst [vmem:[#allocation2 + $0x300] sm:$0xff] %v1101_v31  ;;  %v810_v42 = vrot.slane %v723_v5, 7  ;;  %v724_v57 = vmax.f32 %v653_v26, 0.0  ;;  %v7557_v29 = vmul.f32 %v7332_v3, %v1101_v31  ;;  %v9458_v35 = vld [vmem:[#allocation12_spill] sm:$0xff] }
 0x1ec   : > { %9448 = vst [vmem:[#allocation34_spill] sm:$0xff] %v7547_v37  ;;  %v1329_v44 = vmul.f32 %v7332_v3, %v7252_v40  ;;  %v9452_v55 = vrot.slane %v9451_v0, 1  ;;  %v9454_v58 = vrot.slane %v9453_v50, 1  ;;  %v1360_v5 = vadd.f32 %v9457_v63, %v9456_v53  ;;  %v5606_v50 = vld [vmem:[#allocation2 + $0x108] sm:$0xff] }
 0x1ed   : > { %9449 = vst [vmem:[#allocation36_spill] sm:$0xff] %v7550_v7  ;;  %5011 = vmatmul.bf16.gmra.mxu2 %v4867_v38  ;;  %v811_v54 = vsel %vm781_vm2, %v809_v43, %v810_v42  ;;  %v903_v13 = vsel %vm781_vm2, %v810_v42, 0.0  ;;  %v1024_v21 = vrot.slane %v724_v57, 7  ;;  %v9459_v23 = vrot.slane %v9458_v35, 1  ;;  %v5605_v57 = vld [vmem:[#allocation2 + $0x198] sm:$0xff] }
 0x1ee   : > { %9450 = vst [vmem:[#allocation44_spill] sm:$0xff] %v7557_v29  ;;  %v1514_v56 = vsel %vm1481_vm0, %v9454_v58, %v9452_v55  ;;  %v7570_v16 = vmul.f32 %v7126_v18, %v811_v54  ;;  %v1361_v26 = vadd.f32 %v1329_v44, %v1244_v34  ;;  %v9460_v43 = vmov %v9452_v55 }
 0x1ef   : > { %1173 = vst [vmem:[#allocation2 + $0x288] sm:$0xff] %v1107_v59  ;;  %v1516_v15 = vsel %vm1481_vm0, %v9460_v43, %v9459_v23  ;;  %v1310_v31 = vld [vmem:[#allocation2 + $0x88] sm:$0x3]  ;;  %v1025_v38 = vsel %vm781_vm2, %v1023_v6, %v1024_v21  ;;  %v1117_v59 = vsel %vm781_vm2, %v1024_v21, 0.0  ;;  %v1650_v42 = vmul.f32 %v7139_v62, %v7252_v40  ;;  %v5607_v23 = vld [vmem:[#allocation2 + $0x118] sm:$0x3] }
 0x1f0   : > { %941 = vst [vmem:[#allocation2 + $0x260] sm:$0xff] %v811_v54  ;;  %v1894_v54 = vmul.f32 %v5605_v57, %v7375_v32  ;;  %v7585_v34 = vmul.f32 %v7139_v62, %v1310_v31  ;;  %v1606_v44 = vadd.f32 %v1514_v56, %v1360_v5  ;;  %v1607_v0 = vadd.f32 %v1516_v15, %v1361_v26  ;;  %v9462_v5 = vld [vmem:[#allocation46_spill] sm:$0xff] }
 0x1f1   : > { %9455 = vst [vmem:[#allocation43_spill] sm:$0xff] %v7570_v16  ;;  %v1895_v55 = vmul.f32 %v5604_v60, %v7375_v32  ;;  %v1758_v6 = vrot.slane %v1650_v42, 1  ;;  %v2140_v21 = vmul.f32 %v5606_v50, %v7382_v12  ;;  %v2141_v58 = vmul.f32 %v7382_v12, %v7252_v40 }
 0x1f2   : > { %942 = vst [vmem:[#allocation2 + $0x158] sm:$0x3] %v903_v13  ;;  %v2003_v63 = vrot.slane %v1894_v54, 2  ;;  %v2142_v56 = vmul.f32 %v5607_v23, %v7382_v12  ;;  %v9463_v26 = vrot.slane %v9462_v5, 1  ;;  %v9464_v43 = vrot.slane %v6817_v52, 1  ;;  %v9465_v54 = vld [vmem:[#allocation9_spill] sm:$0xff] }
 0x1f3   : > { %9461 = vst [vmem:[#allocation48_spill] sm:$0xff] %v7585_v34  ;;  %v2004_v35 = vrot.slane %v1895_v55, 2  ;;  %v2248_v31 = vrot.slane %v2140_v21, 2  ;;  %v2428_v57 = vmul.f32 %v7404_v46, %v7463_v8  ;;  %v9466_v55 = vrot.slane %v9465_v54, 2 }
 0x1f4   : > { %1156 = vst [vmem:[#allocation2 + $0x330] sm:$0xff] %v1025_v38  ;;  %v1759_v60 = vsel %vm1481_vm0, %v9463_v26, %v1758_v6  ;;  %v1761_v15 = vsel %vm1481_vm0, %v1758_v6, %v9464_v43  ;;  %v2249_v38 = vrot.slane %v2141_v58, 2  ;;  %v2251_v5 = vrot.slane %v2142_v56, 2  ;;  %v2383_v26 = vld [vmem:[#allocation2 + $0x110] sm:$0x3] }
 0x1f5   : > { %1157 = vst [vmem:[#allocation2 + $0x150] sm:$0x3] %v1117_v59  ;;  %v1851_v59 = vadd.f32 %v1759_v60, %v1606_v44  ;;  %v1852_v42 = vadd.f32 %v1761_v15, %v1607_v0  ;;  %v2005_v40 = vsel %vm1972_vm1, %v2003_v63, %v2004_v35  ;;  %v2007_v50 = vsel %vm1972_vm1, %v2004_v35, %v9466_v55 }
 0x1f6   : > { %v2250_v23 = vsel %vm1972_vm1, %v2248_v31, %v2249_v38  ;;  %v2429_v52 = vmul.f32 %v7404_v46, %v7476_v22  ;;  %v2546_v0 = vmul.f32 %v7419_v39, %v7478_v9  ;;  %v2621_v58 = vmul.f32 %v7426_v14, %v7463_v8 }
 0x1f7   : > { %v2097_v21 = vadd.f32 %v2005_v40, %v1851_v59  ;;  %v2098_v44 = vadd.f32 %v2007_v50, %v1852_v42  ;;  %v2252_v56 = vsel %vm1972_vm1, %v2249_v38, %v2251_v5  ;;  %v2622_v60 = vmul.f32 %v7426_v14, %v7476_v22  ;;  %v2501_v59 = vld [vmem:[#allocation2 + $0x2e0] sm:$0x3] }
 0x1f8   : > { %v2547_v42 = vmul.f32 %v7419_v39, %v7480_v49  ;;  %v2623_v40 = vmul.f32 %v7426_v14, %v2383_v26  ;;  %v2729_v55 = vrot.slane %v2621_v58, 1  ;;  %v2866_v53 = vmul.f32 %v7443_v11, %v7478_v9 }
 0x1f9   : > { %v1211_v6 = vld [vmem:[#allocation2 + $0x158] sm:$0x3]  ;;  %v2342_v15 = vadd.f32 %v2250_v23, %v2097_v21  ;;  %v2343_v31 = vadd.f32 %v2252_v56, %v2098_v44  ;;  %v2730_v50 = vrot.slane %v2622_v60, 1  ;;  %v2867_v44 = vmul.f32 %v7443_v11, %v7480_v49 }
 0x1fa   : > { %v7614_v63 = vmul.f32 %v7126_v18, %v1211_v6  ;;  %v7617_v35 = vmul.f32 %v7375_v32, %v1211_v6  ;;  %v2732_v5 = vrot.slane %v2623_v40, 1  ;;  %v2868_v56 = vmul.f32 %v7443_v11, %v2501_v59 }
 0x1fb   : > { %v2460_v6 = vadd.f32 %v2428_v57, %v2342_v15  ;;  %v2461_v38 = vadd.f32 %v2429_v52, %v2343_v31  ;;  %v2731_v21 = vsel %vm1481_vm0, %v2729_v55, %v2730_v50  ;;  %v2974_v57 = vrot.slane %v2866_v53, 1 }
 0x1fc   : > { %9467 = vst [vmem:[#allocation27_spill] sm:$0xff] %v7614_v63  ;;  %v1295_v43 = vld [vmem:[#allocation2 + $0x150] sm:$0x3]  ;;  %v2733_v58 = vsel %vm1481_vm0, %v2730_v50, %v2732_v5  ;;  %v2975_v52 = vrot.slane %v2867_v44, 1  ;;  %v2977_v60 = vrot.slane %v2868_v56, 1  ;;  %v3111_v15 = vmul.f32 %v7454_v36, %v7463_v8 }
 0x1fd   : > { %9468 = vst [vmem:[#allocation45_spill] sm:$0xff] %v7617_v35  ;;  %v7630_v23 = vmul.f32 %v7139_v62, %v1295_v43  ;;  %v2578_v41 = vadd.f32 %v2546_v0, %v2460_v6  ;;  %v2579_v54 = vadd.f32 %v2547_v42, %v2461_v38  ;;  %v3112_v62 = vmul.f32 %v7454_v36, %v7476_v22  ;;  %v7644_v0 = vld [vmem:[#allocation2 + $0x190] sm:$0xff]  ;;  %v3599_v56 = vld [vmem:[#allocation2 + $0x8] sm:$0x3] }
 0x1fe   : > { %v3113_v40 = vmul.f32 %v7454_v36, %v2383_v26  ;;  %v3356_v55 = vmul.f32 %v7469_v2, %v7478_v9  ;;  %v2976_v42 = vsel %vm1481_vm0, %v2974_v57, %v2975_v52  ;;  %v2978_v53 = vsel %vm1481_vm0, %v2975_v52, %v2977_v60  ;;  %v7648_v38 = vld [vmem:[#allocation2 + $0x250] sm:$0xff]  ;;  %v7652_v26 = vld [vmem:[#allocation2 + $0x1e8] sm:$0xff] }
 0x1ff   : > { %v2823_v43 = vadd.f32 %v2731_v21, %v2578_v41  ;;  %v2824_v31 = vadd.f32 %v2733_v58, %v2579_v54  ;;  %v3219_v50 = vrot.slane %v3111_v15, 2  ;;  %v3220_v6 = vrot.slane %v3112_v62, 2  ;;  %v7654_v54 = vld [vmem:[#allocation2 + $0x350] sm:$0xff] }
 0x200   : > { %v3222_v22 = vrot.slane %v3113_v40, 2  ;;  %v3357_v41 = vmul.f32 %v7469_v2, %v7480_v49  ;;  %v3358_v21 = vmul.f32 %v7469_v2, %v2501_v59  ;;  %v3464_v44 = vrot.slane %v3356_v55, 2  ;;  %v566_v55 = vpop.f32.mrf.mxu0  ;;  %v7699_v63 = vld [vmem:[%s9209_s3 + $0x10] ss:$0 sm:$0xff] }
 0x201   : > { %v3068_v8 = vadd.f32 %v2976_v42, %v2823_v43  ;;  %v3069_v5 = vadd.f32 %v2978_v53, %v2824_v31  ;;  %v3221_v9 = vsel %vm1972_vm1, %v3219_v50, %v3220_v6  ;;  %v3644_v58 = vmul.f32 %v7486_v45, %v7644_v0  ;;  %v7666_v31 = vld [vmem:[%s9209_s3 + $0xd] ss:$0 sm:$0xff]  ;;  %v3717_v53 = vld [vmem:[#allocation2 + $0x70] sm:$0x3]  ;;  %v7676_v50 = vld [vmem:[%s9209_s3 + $0xe] ss:$0 sm:$0xff] }
 0x202   : > { %v3223_v57 = vsel %vm1972_vm1, %v3220_v6, %v3222_v22  ;;  %v3465_v60 = vrot.slane %v3357_v41, 2  ;;  %v3645_v15 = vmul.f32 %v7486_v45, %v7648_v38  ;;  %v3467_v43 = vrot.slane %v3358_v21, 2  ;;  %v655_v22 = vpop.f32.mrf.mxu1  ;;  %v7687_v21 = vld [vmem:[%s9209_s3 + $0xf] ss:$0 sm:$0xff] }
 0x203   : > { %v3313_v52 = vadd.f32 %v3221_v9, %v3068_v8  ;;  %v3314_v62 = vadd.f32 %v3223_v57, %v3069_v5  ;;  %v3762_v59 = vmul.f32 %v7666_v31, %v7652_v26  ;;  %v3763_v40 = vmul.f32 %v7666_v31, %v7654_v54 }
 0x204   : > { %v3466_v42 = vsel %vm1972_vm1, %v3464_v44, %v3465_v60  ;;  %v3837_v6 = vmul.f32 %v7676_v50, %v7644_v0  ;;  %v3838_v8 = vmul.f32 %v7676_v50, %v7648_v38  ;;  %v3839_v5 = vmul.f32 %v7676_v50, %v3599_v56 }
 0x205   : > { %v3468_v41 = vsel %vm1972_vm1, %v3465_v60, %v3467_v43  ;;  %v3558_v9 = vadd.f32 %v3466_v42, %v3313_v52  ;;  %v4082_v44 = vmul.f32 %v7687_v21, %v7652_v26  ;;  %v4083_v57 = vmul.f32 %v7687_v21, %v7654_v54 }
 0x206   : > { %v3559_v18 = vadd.f32 %v3468_v41, %v3314_v62  ;;  %v3945_v4 = vrot.slane %v3837_v6, 1  ;;  %v3946_v13 = vrot.slane %v3838_v8, 1  ;;  %v3948_v30 = vrot.slane %v3839_v5, 1  ;;  %v682_v41 = vpop.f32.mrf.mxu3 }
 0x207   : > { %v3676_v34 = vadd.f32 %v3644_v58, %v3558_v9  ;;  %v4084_v35 = vmul.f32 %v7687_v21, %v3717_v53  ;;  %v4190_v60 = vrot.slane %v4082_v44, 1  ;;  %v4191_v52 = vrot.slane %v4083_v57, 1 }
 0x208   : > { %v3677_v43 = vadd.f32 %v3645_v15, %v3559_v18  ;;  %v3947_v42 = vsel %vm1481_vm0, %v3945_v4, %v3946_v13  ;;  %v3949_v7 = vsel %vm1481_vm0, %v3946_v13, %v3948_v30  ;;  %v4327_v62 = vmul.f32 %v7699_v63, %v7644_v0  ;;  %v7710_v30 = vld [vmem:[%s9209_s3 + $0x11] ss:$0 sm:$0xff]  ;;  %v568_v16 = vpop.f32.mrf.mxu0 }
 0x209   : > { %v3794_v6 = vadd.f32 %v3762_v59, %v3676_v34  ;;  %v4192_v58 = vsel %vm1481_vm0, %v4190_v60, %v4191_v52  ;;  %v4193_v8 = vrot.slane %v4084_v35, 1  ;;  %v4328_v5 = vmul.f32 %v7699_v63, %v7648_v38 }
 0x20a   : > { %v3795_v18 = vadd.f32 %v3763_v40, %v3677_v43  ;;  %v4329_v4 = vmul.f32 %v7699_v63, %v3599_v56  ;;  %v4435_v15 = vrot.slane %v4327_v62, 2  ;;  %v4572_v13 = vmul.f32 %v7710_v30, %v7652_v26 }
 0x20b   : > { %v4039_v34 = vadd.f32 %v3947_v42, %v3794_v6  ;;  %v4194_v59 = vsel %vm1481_vm0, %v4191_v52, %v4193_v8  ;;  %v4436_v35 = vrot.slane %v4328_v5, 2  ;;  %v4573_v9 = vmul.f32 %v7710_v30, %v7654_v54  ;;  %v657_v8 = vpop.f32.mrf.mxu1 }
 0x20c   : > { %v4040_v40 = vadd.f32 %v3949_v7, %v3795_v18  ;;  %v4438_v44 = vrot.slane %v4329_v4, 2  ;;  %v4574_v56 = vmul.f32 %v7710_v30, %v3717_v53  ;;  %v4680_v57 = vrot.slane %v4572_v13, 2 }
 0x20d   : > { %v4284_v60 = vadd.f32 %v4192_v58, %v4039_v34  ;;  %v4437_v43 = vsel %vm1972_vm1, %v4435_v15, %v4436_v35  ;;  %v4681_v62 = vrot.slane %v4573_v9, 2  ;;  %v683_v37 = vadd.f32 %v682_v41, %v6012_v24 }
 0x20e   : > { %v4285_v29 = vadd.f32 %v4194_v59, %v4040_v40  ;;  %v4439_v42 = vsel %vm1972_vm1, %v4436_v35, %v4438_v44  ;;  %v4683_v52 = vrot.slane %v4574_v56, 2  ;;  %v567_v6 = vadd.f32 %v566_v55, %v6008_v20 }
 0x20f   : > { %v4529_v5 = vadd.f32 %v4437_v43, %v4284_v60  ;;  %v4682_v7 = vsel %vm1972_vm1, %v4680_v57, %v4681_v62  ;;  %v748_v18 = vmax.f32 %v683_v37, 0.0  ;;  %v656_v53 = vadd.f32 %v655_v22, %v6012_v24  ;;  %v7731_v37 = vld [vmem:[%s9210_s4] ss:$0 sm:$0xff] }
 0x210   : > { %v4530_v58 = vadd.f32 %v4439_v42, %v4285_v29  ;;  %v4684_v4 = vsel %vm1972_vm1, %v4681_v62, %v4683_v52  ;;  %v725_v15 = vmax.f32 %v567_v6, 0.0  ;;  %v569_v13 = vadd.f32 %v568_v16, %v6008_v20  ;;  %v7744_v52 = vld [vmem:[%s9209_s3 + $0x2] ss:$0 sm:$0xff] }
 0x211   : > { %v4774_v41 = vadd.f32 %v4682_v7, %v4529_v5  ;;  %v1042_v34 = vrot.slane %v748_v18, 7  ;;  %v726_v59 = vmax.f32 %v656_v53, 0.0  ;;  %v658_v35 = vadd.f32 %v657_v8, %v6012_v24  ;;  %v5615_v8 = vld [vmem:[#allocation2 + $0x340] sm:$0xff] }
 0x212   : > { %v4775_v9 = vadd.f32 %v4684_v4, %v4530_v58  ;;  %v812_v40 = vrot.slane %v725_v15, 7  ;;  %v727_v44 = vmax.f32 %v569_v13, 0.0  ;;  %v1246_v5 = vmul.f32 %v5615_v8, %v7317_v47  ;;  %v7762_v53 = vld [vmem:[%s9209_s3 + $0x3] ss:$0 sm:$0xff] }
 0x213   : > { %v4810_v29 = vadd.f32 %v7731_v37, %v4774_v41  ;;  %v1043_v16 = vsel %vm781_vm2, %v7538_v1, %v1042_v34  ;;  %v1123_v22 = vsel %vm781_vm2, %v1042_v34, 0.0  ;;  %v1026_v56 = vrot.slane %v726_v59, 7 }
 0x214   : > { %v4811_v57 = vadd.f32 %v7731_v37, %v4775_v9  ;;  %1174 = vst [vmem:[#allocation2 + $0x168] sm:$0xff] %v1043_v16  ;;  %v7739_v60 = vsel %vm781_vm2, 0.0, %v812_v40  ;;  %v813_v43 = vrot.slane %v727_v44, 7  ;;  %v728_v62 = vmax.f32 %v658_v35, 0.0 }
 0x215   : > { %v4842_v42 = vmax.f32 %v4810_v29, 0.0  ;;  %1175 = vst [vmem:[#allocation2 + $0x1f0] sm:$0x3] %v1123_v22  ;;  %v7748_v1 = vmul.f32 %v7744_v52, %v7739_v60  ;;  %v7751_v6 = vsel %vm781_vm2, 0.0, %v1026_v56  ;;  %v7757_v18 = vmul.f32 %v7317_v47, %v7739_v60 }
 0x216   : > { %v4843_v7 = vmax.f32 %v4811_v57, 0.0  ;;  %943 = vst [vmem:[#allocation2 + $0x180] sm:$0xff] %v7739_v60  ;;  %v7766_v58 = vmul.f32 %v7762_v53, %v7751_v6  ;;  %v7769_v4 = vsel %vm781_vm2, %v812_v40, %v813_v43  ;;  %v7774_v15 = vmul.f32 %v7332_v3, %v7751_v6 }
 0x217   : > { %1158 = vst [vmem:[#allocation2 + $0x348] sm:$0xff] %v7751_v6  ;;  %v904_v47 = vsel %vm781_vm2, %v813_v43, 0.0  ;;  %v7779_v13 = vmul.f32 %v7744_v52, %v7769_v4  ;;  %v1027_v41 = vrot.slane %v728_v62, 7  ;;  %v1331_v35 = vmul.f32 %v7332_v3, %v7480_v49 }
 0x218   : > { %9469 = vst [vmem:[#allocation47_spill] sm:$0xff] %v7766_v58  ;;  %v4868_v34 = vpack.c.bf16 %v4843_v7, %v4842_v42  ;;  %v1362_v9 = vadd.f32 %v6935_v28, %v6926_v61  ;;  %v9470_v16 = vrot.slane %v6948_v17, 1  ;;  %v9471_v22 = vrot.slane %v6921_v19, 1  ;;  %v9472_v28 = vld [vmem:[#allocation20_spill] sm:$0xff]  ;;  %v5617_v19 = vld [vmem:[#allocation2 + $0x268] sm:$0xff] }
 0x219   : > { %944 = vst [vmem:[#allocation2 + $0xc0] sm:$0xff] %v7769_v4  ;;  %v7789_v44 = vsel %vm781_vm2, %v1026_v56, %v1027_v41  ;;  %v1118_v29 = vsel %vm781_vm2, %v1027_v41, 0.0  ;;  %v1363_v61 = vadd.f32 %v1331_v35, %v1246_v5  ;;  %v9473_v43 = vrot.slane %v9472_v28, 1  ;;  %v5619_v17 = vld [vmem:[#allocation2 + $0x2e0] sm:$0x3] }
 0x21a   : > { %945 = vst [vmem:[#allocation2 + $0x60] sm:$0x3] %v904_v47  ;;  %v1519_v57 = vsel %vm1481_vm0, %v9471_v22, %v9470_v16  ;;  %5016 = vmatmul.bf16.gmra.mxu2 %v4868_v34  ;;  %v9474_v62 = vmov %v9470_v16  ;;  %v1653_v7 = vmul.f32 %v7762_v53, %v7480_v49  ;;  %v1897_v47 = vmul.f32 %v5617_v19, %v7375_v32  ;;  %v5618_v34 = vld [vmem:[#allocation2 + $0x98] sm:$0xff] }
 0x21b   : > { %1159 = vst [vmem:[#allocation2 + $0x40] sm:$0xff] %v7789_v44  ;;  %v1521_v56 = vsel %vm1481_vm0, %v9474_v62, %v9473_v43  ;;  %v1608_v42 = vadd.f32 %v1519_v57, %v1362_v9  ;;  %v1898_v41 = vmul.f32 %v5615_v8, %v7375_v32  ;;  %v2143_v16 = vmul.f32 %v5618_v34, %v7382_v12 }
 0x21c   : > { %1160 = vst [vmem:[#allocation2 + $0x1b8] sm:$0x3] %v1118_v29  ;;  %v1609_v5 = vadd.f32 %v1521_v56, %v1363_v61  ;;  %v2144_v35 = vmul.f32 %v7382_v12, %v7480_v49  ;;  %v2145_v22 = vmul.f32 %v5619_v17, %v7382_v12  ;;  %v2430_v9 = vmul.f32 %v7404_v46, %v7644_v0  ;;  %v9475_v56 = vld [vmem:[#allocation19_spill] sm:$0xff] }
 0x21d   : > { %v1763_v29 = vrot.slane %v1653_v7, 1  ;;  %v2008_v57 = vrot.slane %v1897_v47, 2  ;;  %v2009_v28 = vrot.slane %v1898_v41, 2  ;;  %v2253_v43 = vrot.slane %v2143_v16, 2  ;;  %v9478_v47 = vld [vmem:[#allocation22_spill] sm:$0xff] }
 0x21e   : > { %v2254_v62 = vrot.slane %v2144_v35, 2  ;;  %v2256_v19 = vrot.slane %v2145_v22, 2  ;;  %v2431_v8 = vmul.f32 %v7404_v46, %v7648_v38  ;;  %v2548_v61 = vmul.f32 %v7419_v39, %v7652_v26  ;;  %v2386_v35 = vld [vmem:[#allocation2 + $0x8] sm:$0x3] }
 0x21f   : > { %v9476_v49 = vrot.slane %v9475_v56, 1  ;;  %v9477_v12 = vrot.slane %v7011_v51, 1  ;;  %v2010_v7 = vsel %vm1972_vm1, %v2008_v57, %v2009_v28  ;;  %v9479_v41 = vrot.slane %v9478_v47, 2 }
 0x220   : > { %v2255_v59 = vsel %vm1972_vm1, %v2253_v43, %v2254_v62  ;;  %v2257_v56 = vsel %vm1972_vm1, %v2254_v62, %v2256_v19  ;;  %v2624_v57 = vmul.f32 %v7426_v14, %v7644_v0  ;;  %v2625_v43 = vmul.f32 %v7426_v14, %v7648_v38 }
 0x221   : > { %v1764_v34 = vsel %vm1481_vm0, %v9476_v49, %v1763_v29  ;;  %v1766_v17 = vsel %vm1481_vm0, %v1763_v29, %v9477_v12  ;;  %v2012_v16 = vsel %vm1972_vm1, %v2009_v28, %v9479_v41  ;;  %v1214_v22 = vld [vmem:[#allocation2 + $0x60] sm:$0x3]  ;;  %v2549_v29 = vmul.f32 %v7419_v39, %v7654_v54 }
 0x222   : > { %v1853_v46 = vadd.f32 %v1764_v34, %v1608_v42  ;;  %v1854_v40 = vadd.f32 %v1766_v17, %v1609_v5  ;;  %v7831_v49 = vmul.f32 %v7744_v52, %v1214_v22  ;;  %v7834_v51 = vmul.f32 %v7375_v32, %v1214_v22  ;;  %v2504_v5 = vld [vmem:[#allocation2 + $0x70] sm:$0x3] }
 0x223   : > { %v1298_v28 = vld [vmem:[#allocation2 + $0x1b8] sm:$0x3]  ;;  %v2626_v62 = vmul.f32 %v7426_v14, %v2386_v35  ;;  %v2734_v39 = vrot.slane %v2624_v57, 1  ;;  %v2735_v41 = vrot.slane %v2625_v43, 1  ;;  %v2870_v14 = vmul.f32 %v7443_v11, %v7654_v54 }
 0x224   : > { %9480 = vst [vmem:[#allocation12_spill] sm:$0xff] %v7834_v51  ;;  %v2099_v12 = vadd.f32 %v2010_v7, %v1853_v46  ;;  %v2100_v42 = vadd.f32 %v2012_v16, %v1854_v40  ;;  %v7846_v34 = vmul.f32 %v7762_v53, %v1298_v28  ;;  %v2869_v7 = vmul.f32 %v7443_v11, %v7652_v26 }
 0x225   : > { %v2737_v22 = vrot.slane %v2626_v62, 1  ;;  %v2871_v16 = vmul.f32 %v7443_v11, %v2504_v5  ;;  %v2736_v28 = vsel %vm1481_vm0, %v2734_v39, %v2735_v41  ;;  %v3115_v40 = vmul.f32 %v7454_v36, %v7648_v38  ;;  %v7861_v11 = vld [vmem:[#allocation2 + $0x120] sm:$0xff] }
 0x226   : > { %9481 = vst [vmem:[#allocation46_spill] sm:$0xff] %v7846_v34  ;;  %v2344_v17 = vadd.f32 %v2255_v59, %v2099_v12  ;;  %v2345_v47 = vadd.f32 %v2257_v56, %v2100_v42  ;;  %v2979_v59 = vrot.slane %v2869_v7, 1  ;;  %v2980_v56 = vrot.slane %v2870_v14, 1  ;;  %v7876_v7 = vld [vmem:[#allocation2 + $0x50] sm:$0xff] }
 0x227   : > { %v2738_v57 = vsel %vm1481_vm0, %v2735_v41, %v2737_v22  ;;  %v2982_v12 = vrot.slane %v2871_v16, 1  ;;  %v3114_v42 = vmul.f32 %v7454_v36, %v7644_v0  ;;  %v3116_v19 = vmul.f32 %v7454_v36, %v2386_v35  ;;  %v3602_v16 = vld [vmem:[#allocation2 + $0x248] sm:$0x3] }
 0x228   : > { %v2462_v46 = vadd.f32 %v2430_v9, %v2344_v17  ;;  %v2463_v32 = vadd.f32 %v2431_v8, %v2345_v47  ;;  %v2981_v9 = vsel %vm1481_vm0, %v2979_v59, %v2980_v56  ;;  %v3359_v17 = vmul.f32 %v7469_v2, %v7652_v26  ;;  %v660_v59 = vpop.f32.mrf.mxu1 }
 0x229   : > { %v2983_v8 = vsel %vm1481_vm0, %v2980_v56, %v2982_v12  ;;  %v3224_v39 = vrot.slane %v3114_v42, 2  ;;  %v3225_v0 = vrot.slane %v3115_v40, 2  ;;  %v3360_v36 = vmul.f32 %v7469_v2, %v7654_v54  ;;  %v3720_v42 = vld [vmem:[#allocation2 + $0x30] sm:$0x3] }
 0x22a   : > { %v2580_v43 = vadd.f32 %v2548_v61, %v2462_v46  ;;  %v2581_v62 = vadd.f32 %v2549_v29, %v2463_v32  ;;  %v3227_v61 = vrot.slane %v3116_v19, 2  ;;  %v7867_v29 = vld [vmem:[#allocation2 + $0x1d8] sm:$0xff]  ;;  %v7869_v32 = vld [vmem:[#allocation2 + $0x68] sm:$0xff]  ;;  %v3361_v38 = vmul.f32 %v7469_v2, %v2504_v5  ;;  %v571_v5 = vpop.f32.mrf.mxu0 }
 0x22b   : > { %v3469_v35 = vrot.slane %v3359_v17, 2  ;;  %v3646_v22 = vmul.f32 %v7486_v45, %v7861_v11  ;;  %v3226_v40 = vsel %vm1972_vm1, %v3224_v39, %v3225_v0  ;;  %v3470_v46 = vrot.slane %v3360_v36, 2 }
 0x22c   : > { %v2825_v47 = vadd.f32 %v2736_v28, %v2580_v43  ;;  %v2826_v41 = vadd.f32 %v2738_v57, %v2581_v62  ;;  %v3228_v19 = vsel %vm1972_vm1, %v3225_v0, %v3227_v61  ;;  %v3472_v28 = vrot.slane %v3361_v38, 2 }
 0x22d   : > { %v3647_v57 = vmul.f32 %v7486_v45, %v7867_v29  ;;  %v3764_v2 = vmul.f32 %v7666_v31, %v7869_v32  ;;  %v3765_v43 = vmul.f32 %v7666_v31, %v7876_v7  ;;  %v3840_v62 = vmul.f32 %v7676_v50, %v7861_v11 }
 0x22e   : > { %v3070_v26 = vadd.f32 %v2981_v9, %v2825_v47  ;;  %v3071_v14 = vadd.f32 %v2983_v8, %v2826_v41  ;;  %v3471_v9 = vsel %vm1972_vm1, %v3469_v35, %v3470_v46  ;;  %v3473_v8 = vsel %vm1972_vm1, %v3470_v46, %v3472_v28 }
 0x22f   : > { %v3841_v45 = vmul.f32 %v7676_v50, %v7867_v29  ;;  %v3842_v39 = vmul.f32 %v7676_v50, %v3602_v16  ;;  %v3950_v41 = vrot.slane %v3840_v62, 1  ;;  %v4085_v0 = vmul.f32 %v7687_v21, %v7869_v32 }
 0x230   : > { %v3315_v56 = vadd.f32 %v3226_v40, %v3070_v26  ;;  %v3316_v12 = vadd.f32 %v3228_v19, %v3071_v14  ;;  %v4086_v38 = vmul.f32 %v7687_v21, %v7876_v7  ;;  %v4087_v35 = vmul.f32 %v7687_v21, %v3720_v42 }
 0x231   : > { %v3951_v61 = vrot.slane %v3841_v45, 1  ;;  %v3953_v36 = vrot.slane %v3842_v39, 1  ;;  %v4195_v40 = vrot.slane %v4085_v0, 1  ;;  %v4330_v19 = vmul.f32 %v7699_v63, %v7861_v11 }
 0x232   : > { %v3560_v17 = vadd.f32 %v3471_v9, %v3315_v56  ;;  %v3561_v47 = vadd.f32 %v3473_v8, %v3316_v12  ;;  %v4196_v56 = vrot.slane %v4086_v38, 1  ;;  %v4198_v12 = vrot.slane %v4087_v35, 1  ;;  %v573_v38 = vpop.f32.mrf.mxu0  ;;  %v662_v35 = vpop.f32.mrf.mxu1 }
 0x233   : > { %v3952_v46 = vsel %vm1481_vm0, %v3950_v41, %v3951_v61  ;;  %v3954_v28 = vsel %vm1481_vm0, %v3951_v61, %v3953_v36  ;;  %v4331_v8 = vmul.f32 %v7699_v63, %v7867_v29  ;;  %v4332_v45 = vmul.f32 %v7699_v63, %v3602_v16 }
 0x234   : > { %v3678_v26 = vadd.f32 %v3646_v22, %v3560_v17  ;;  %v3679_v14 = vadd.f32 %v3647_v57, %v3561_v47  ;;  %v4197_v22 = vsel %vm1481_vm0, %v4195_v40, %v4196_v56  ;;  %v4199_v57 = vsel %vm1481_vm0, %v4196_v56, %v4198_v12 }
 0x235   : > { %v4440_v39 = vrot.slane %v4330_v19, 2  ;;  %v4575_v17 = vmul.f32 %v7710_v30, %v7869_v32  ;;  %v4441_v0 = vrot.slane %v4331_v8, 2  ;;  %v4443_v61 = vrot.slane %v4332_v45, 2 }
 0x236   : > { %v3796_v62 = vadd.f32 %v3764_v2, %v3678_v26  ;;  %v3797_v9 = vadd.f32 %v3765_v43, %v3679_v14  ;;  %v4576_v2 = vmul.f32 %v7710_v30, %v7876_v7  ;;  %v4577_v43 = vmul.f32 %v7710_v30, %v3720_v42 }
 0x237   : > { %v4685_v36 = vrot.slane %v4575_v17, 2  ;;  %v572_v16 = vadd.f32 %v571_v5, %v6008_v20  ;;  %v4442_v40 = vsel %vm1972_vm1, %v4440_v39, %v4441_v0  ;;  %v4444_v19 = vsel %vm1972_vm1, %v4441_v0, %v4443_v61 }
 0x238   : > { %v4041_v47 = vadd.f32 %v3952_v46, %v3796_v62  ;;  %v4042_v41 = vadd.f32 %v3954_v28, %v3797_v9  ;;  %v4686_v46 = vrot.slane %v4576_v2, 2  ;;  %v4688_v28 = vrot.slane %v4577_v43, 2  ;;  %v7932_v2 = vld [vmem:[%s9209_s3 + $0x1] ss:$0 sm:$0xff] }
 0x239   : > { %v729_v56 = vmax.f32 %v572_v16, 0.0  ;;  %v661_v12 = vadd.f32 %v660_v59, %v6012_v24  ;;  %v574_v42 = vadd.f32 %v573_v38, %v6008_v20  ;;  %v663_v8 = vadd.f32 %v662_v35, %v6012_v24  ;;  %v7926_v20 = vld [vmem:[%s9209_s3] ss:$0 sm:$0xff]  ;;  %v5621_v24 = vld [vmem:[#allocation2 + $0x250] sm:$0xff] }
 0x23a   : > { %v4286_v26 = vadd.f32 %v4197_v22, %v4041_v47  ;;  %v4287_v14 = vadd.f32 %v4199_v57, %v4042_v41  ;;  %v4687_v5 = vsel %vm1972_vm1, %v4685_v36, %v4686_v46  ;;  %v4689_v45 = vsel %vm1972_vm1, %v4686_v46, %v4688_v28 }
 0x23b   : > { %v815_v22 = vrot.slane %v729_v56, 7  ;;  %v730_v57 = vmax.f32 %v661_v12, 0.0  ;;  %v731_v47 = vmax.f32 %v574_v42, 0.0  ;;  %v732_v41 = vmax.f32 %v663_v8, 0.0  ;;  %v7969_v8 = vld [vmem:[%s9209_s3 + $0x5] ss:$0 sm:$0xff] }
 0x23c   : > { %v4531_v62 = vadd.f32 %v4442_v40, %v4286_v26  ;;  %v4532_v9 = vadd.f32 %v4444_v19, %v4287_v14  ;;  %v1248_v61 = vmul.f32 %v5621_v24, %v7926_v20  ;;  %v1333_v43 = vmul.f32 %v7932_v2, %v7654_v54  ;;  %v7948_v26 = vld [vmem:[%s9209_s3 + $0x4] ss:$0 sm:$0xff] }
 0x23d   : > { %v7921_v0 = vsel %vm781_vm2, 0.0, %v815_v22  ;;  %v1029_v59 = vrot.slane %v730_v57, 7  ;;  %v816_v19 = vrot.slane %v731_v47, 7  ;;  %v1030_v46 = vrot.slane %v732_v41, 7 }
 0x23e   : > { %v4776_v39 = vadd.f32 %v4687_v5, %v4531_v62  ;;  %v4777_v17 = vadd.f32 %v4689_v45, %v4532_v9  ;;  %946 = vst [vmem:[#allocation2 + $0x1d0] sm:$0xff] %v7921_v0  ;;  %v1255_v38 = vmul.f32 %v7926_v20, %v7921_v0  ;;  %v7943_v35 = vmul.f32 %v7744_v52, %v7921_v0 }
 0x23f   : > { %v7952_v14 = vmul.f32 %v7948_v26, %v7921_v0  ;;  %v7955_v40 = vsel %vm781_vm2, 0.0, %v1029_v59  ;;  %v7976_v45 = vsel %vm781_vm2, %v815_v22, %v816_v19  ;;  %v1656_v12 = vmul.f32 %v7762_v53, %v7654_v54 }
 0x240   : > { %v4812_v36 = vadd.f32 %v7731_v37, %v4776_v39  ;;  %v4813_v16 = vadd.f32 %v7731_v37, %v4777_v17  ;;  %9482 = vst [vmem:[#allocation9_spill] sm:$0xff] %v7943_v35  ;;  %v1340_v62 = vmul.f32 %v7932_v2, %v7955_v40  ;;  %v7964_v42 = vmul.f32 %v7762_v53, %v7955_v40 }
 0x241   : > { %9483 = vst [vmem:[#allocation20_spill] sm:$0xff] %v7952_v14  ;;  %v7973_v5 = vmul.f32 %v7969_v8, %v7955_v40  ;;  %v905_v17 = vsel %vm781_vm2, %v816_v19, 0.0  ;;  %v1256_v47 = vmul.f32 %v7926_v20, %v7976_v45  ;;  %v7992_v22 = vmul.f32 %v7948_v26, %v7976_v45  ;;  %v5625_v14 = vld [vmem:[#allocation2 + $0x190] sm:$0xff] }
 0x242   : > { %v4844_v28 = vmax.f32 %v4812_v36, 0.0  ;;  %v4845_v56 = vmax.f32 %v4813_v16, 0.0  ;;  %1161 = vst [vmem:[#allocation2 + $0x1a0] sm:$0xff] %v7955_v40  ;;  %v7978_v39 = vadd.f32 %v1340_v62, %v1255_v38  ;;  %v7988_v16 = vmul.f32 %v7744_v52, %v7976_v45 }
 0x243   : > { %9484 = vst [vmem:[#allocation19_spill] sm:$0xff] %v7964_v42  ;;  %v7995_v38 = vsel %vm781_vm2, %v1029_v59, %v1030_v46  ;;  %v1119_v19 = vsel %vm781_vm2, %v1030_v46, 0.0  ;;  %v9494_v46 = vld [vmem:[#allocation18_spill] sm:$0xff] }
 0x244   : > { %9485 = vst [vmem:[#allocation22_spill] sm:$0xff] %v7973_v5  ;;  %v4869_v57 = vpack.c.bf16 %v4845_v56, %v4844_v28  ;;  %v1364_v28 = vadd.f32 %v7148_v27, %v7134_v10  ;;  %v1365_v56 = vadd.f32 %v1333_v43, %v1248_v61  ;;  %v1341_v36 = vmul.f32 %v7932_v2, %v7995_v38  ;;  %v9492_v27 = vld [vmem:[#allocation28_spill] sm:$0xff]  ;;  %v9503_v42 = vld [vmem:[#allocation30_spill] sm:$0xff] }
 0x245   : > { %9486 = vst [vmem:[#allocation55_spill] sm:$0xff] %v7978_v39  ;;  %v8011_v59 = vmul.f32 %v7969_v8, %v7995_v38  ;;  %v9491_v10 = vrot.slane %v7161_v25, 1  ;;  %v9493_v61 = vrot.slane %v9492_v27, 1  ;;  %v9495_v9 = vrot.slane %v9494_v46, 1  ;;  %v5626_v25 = vld [vmem:[#allocation2 + $0x1e8] sm:$0xff] }
 0x246   : > { %947 = vst [vmem:[#allocation2 + $0x1e0] sm:$0xff] %v7976_v45  ;;  %5021 = vmatmul.bf16.gmra.mxu2 %v4869_v57  ;;  %v8007_v57 = vmul.f32 %v7762_v53, %v7995_v38  ;;  %v1768_v27 = vrot.slane %v1656_v12, 1 }
 0x247   : > { %948 = vst [vmem:[#allocation2 + $0x2d8] sm:$0x3] %v905_v17  ;;  %v1524_v43 = vsel %vm1481_vm0, %v9493_v61, %v9491_v10  ;;  %v9496_v17 = vmov %v9491_v10  ;;  %v1900_v10 = vmul.f32 %v5625_v14, %v7948_v26  ;;  %v1901_v61 = vmul.f32 %v7948_v26, %v5621_v24 }
 0x248   : > { %9487 = vst [vmem:[#allocation56_spill] sm:$0xff] %v7988_v16  ;;  %v1526_v41 = vsel %vm1481_vm0, %v9496_v17, %v9495_v9  ;;  %v1610_v55 = vadd.f32 %v1524_v43, %v1364_v28  ;;  %v2146_v9 = vmul.f32 %v5626_v25, %v7969_v8  ;;  %v2147_v17 = vmul.f32 %v7969_v8, %v7654_v54  ;;  %v9498_v28 = vld [vmem:[#allocation16_spill] sm:$0xff]  ;;  %v9500_v43 = vld [vmem:[#allocation29_spill] sm:$0xff] }
 0x249   : > { %9488 = vst [vmem:[#allocation57_spill] sm:$0xff] %v7992_v22  ;;  %v1611_v62 = vadd.f32 %v1526_v41, %v1365_v56  ;;  %v8038_v41 = vld [vmem:[%s9209_s3 + $0x6] ss:$0 sm:$0xff]  ;;  %v9499_v24 = vrot.slane %v9498_v28, 1  ;;  %v9501_v46 = vrot.slane %v9500_v43, 1  ;;  %v2013_v25 = vrot.slane %v1900_v10, 2 }
 0x24a   : > { %1162 = vst [vmem:[#allocation2 + $0xc8] sm:$0xff] %v7995_v38  ;;  %v2432_v12 = vmul.f32 %v8038_v41, %v7861_v11  ;;  %v2014_v5 = vrot.slane %v1901_v61, 2 }
 0x24b   : > { %9489 = vst [vmem:[#allocation58_spill] sm:$0xff] %v8007_v57  ;;  %v1769_v56 = vsel %vm1481_vm0, %v9499_v24, %v1768_v27  ;;  %v1771_v54 = vsel %vm1481_vm0, %v1768_v27, %v9501_v46  ;;  %v9504_v57 = vrot.slane %v9503_v42, 2  ;;  %v2258_v24 = vrot.slane %v2146_v9, 2  ;;  %v2389_v9 = vld [vmem:[#allocation2 + $0x248] sm:$0x3] }
 0x24c   : > { %1163 = vst [vmem:[#allocation2 + $0x220] sm:$0x3] %v1119_v19  ;;  %v8025_v19 = vadd.f32 %v1341_v36, %v1256_v47  ;;  %v5627_v47 = vld [vmem:[#allocation2 + $0x70] sm:$0x3]  ;;  %v1856_v22 = vadd.f32 %v1771_v54, %v1611_v62  ;;  %v2015_v39 = vsel %vm1972_vm1, %v2013_v25, %v2014_v5  ;;  %v9507_v42 = vrot.slane %v7988_v16, 1 }
 0x24d   : > { %9490 = vst [vmem:[#allocation59_spill] sm:$0xff] %v8011_v59  ;;  %v2148_v36 = vmul.f32 %v5627_v47, %v7969_v8  ;;  %v1855_v59 = vadd.f32 %v1769_v56, %v1610_v55  ;;  %v2017_v28 = vsel %vm1972_vm1, %v2014_v5, %v9504_v57 }
 0x24e   : > { %9497 = vst [vmem:[#allocation28_spill] sm:$0xff] %v8025_v19  ;;  %v1217_v14 = vld [vmem:[#allocation2 + $0x2d8] sm:$0x3]  ;;  %v2259_v19 = vrot.slane %v2147_v17, 2  ;;  %v2102_v46 = vadd.f32 %v2017_v28, %v1856_v22  ;;  %v2507_v22 = vld [vmem:[#allocation2 + $0x30] sm:$0x3] }
 0x24f   : > { %v1423_v47 = vmul.f32 %v7744_v52, %v1217_v14  ;;  %v8050_v3 = vmul.f32 %v7948_v26, %v1217_v14  ;;  %v2101_v61 = vadd.f32 %v2015_v39, %v1855_v59  ;;  %v2261_v14 = vrot.slane %v2148_v36, 2  ;;  %v8074_v59 = vld [vmem:[%s9209_s3 + $0x7] ss:$0 sm:$0xff] }
 0x250   : > { %v2260_v62 = vsel %vm1972_vm1, %v2258_v24, %v2259_v19  ;;  %v2433_v39 = vmul.f32 %v8038_v41, %v7867_v29  ;;  %v2550_v17 = vmul.f32 %v8074_v59, %v7869_v32  ;;  %v2551_v25 = vmul.f32 %v8074_v59, %v7876_v7  ;;  %v8086_v24 = vld [vmem:[%s9209_s3 + $0x8] ss:$0 sm:$0xff] }
 0x251   : > { %9502 = vst [vmem:[#allocation18_spill] sm:$0xff] %v8050_v3  ;;  %v1545_v43 = vrot.slane %v1423_v47, 1  ;;  %v2346_v57 = vadd.f32 %v2260_v62, %v2101_v61  ;;  %v2262_v54 = vsel %vm1972_vm1, %v2259_v19, %v2261_v14  ;;  %v2629_v61 = vmul.f32 %v8086_v24, %v2389_v9  ;;  %v8096_v19 = vld [vmem:[%s9209_s3 + $0x9] ss:$0 sm:$0xff] }
 0x252   : > { %v2347_v47 = vadd.f32 %v2262_v54, %v2102_v46  ;;  %v2873_v46 = vmul.f32 %v8096_v19, %v7876_v7  ;;  %v2874_v62 = vmul.f32 %v8096_v19, %v2507_v22 }
 0x253   : > { %v1301_v10 = vld [vmem:[#allocation2 + $0x220] sm:$0x3]  ;;  %v8067_v5 = vsel %vm1481_vm0, %v9507_v42, %v1545_v43  ;;  %v2464_v28 = vadd.f32 %v2432_v12, %v2346_v57  ;;  %v2627_v43 = vmul.f32 %v8086_v24, %v7861_v11  ;;  %v2872_v12 = vmul.f32 %v8096_v19, %v7869_v32 }
 0x254   : > { %v8058_v52 = vmul.f32 %v7762_v53, %v1301_v10  ;;  %v8061_v55 = vmul.f32 %v7969_v8, %v1301_v10  ;;  %9508 = vst [vmem:[#allocation30_spill] sm:$0xff] %v8067_v5  ;;  %v2628_v10 = vmul.f32 %v8086_v24, %v7867_v29  ;;  %v2465_v14 = vadd.f32 %v2433_v39, %v2347_v47  ;;  %v8107_v5 = vld [vmem:[%s9209_s3 + $0xa] ss:$0 sm:$0xff] }
 0x255   : > { %v2582_v42 = vadd.f32 %v2550_v17, %v2464_v28  ;;  %v2739_v57 = vrot.slane %v2627_v43, 1  ;;  %v2742_v56 = vrot.slane %v2629_v61, 1  ;;  %v2984_v27 = vrot.slane %v2872_v12, 1  ;;  %v8116_v43 = vld [vmem:[#allocation2 + $0x280] sm:$0xff] }
 0x256   : > { %9505 = vst [vmem:[#allocation16_spill] sm:$0xff] %v8058_v52  ;;  %v2740_v54 = vrot.slane %v2628_v10, 1  ;;  %v2985_v36 = vrot.slane %v2873_v46, 1  ;;  %v2583_v3 = vadd.f32 %v2551_v25, %v2465_v14  ;;  %v3117_v35 = vmul.f32 %v8107_v5, %v7861_v11  ;;  %v8122_v11 = vld [vmem:[%s9209_s3 + $0xb] ss:$0 sm:$0xff] }
 0x257   : > { %9506 = vst [vmem:[#allocation29_spill] sm:$0xff] %v8061_v55  ;;  %v2987_v55 = vrot.slane %v2874_v62, 1  ;;  %v3118_v39 = vmul.f32 %v8107_v5, %v7867_v29  ;;  %v3119_v61 = vmul.f32 %v8107_v5, %v2389_v9  ;;  %v3362_v29 = vmul.f32 %v8122_v11, %v7869_v32  ;;  %v8139_v14 = vld [vmem:[%s9209_s3 + $0xc] ss:$0 sm:$0xff] }
 0x258   : > { %v2741_v52 = vsel %vm1481_vm0, %v2739_v57, %v2740_v54  ;;  %v2743_v17 = vsel %vm1481_vm0, %v2740_v54, %v2742_v56  ;;  %v2986_v28 = vsel %vm1481_vm0, %v2984_v27, %v2985_v36  ;;  %v3229_v12 = vrot.slane %v3117_v35, 2  ;;  %v8133_v35 = vld [vmem:[#allocation2 + $0x330] sm:$0xff] }
 0x259   : > { %v2827_v47 = vadd.f32 %v2741_v52, %v2582_v42  ;;  %v2988_v25 = vsel %vm1481_vm0, %v2985_v36, %v2987_v55  ;;  %v2828_v10 = vadd.f32 %v2743_v17, %v2583_v3  ;;  %v3230_v46 = vrot.slane %v3118_v39, 2  ;;  %v8129_v55 = vld [vmem:[#allocation2 + $0x260] sm:$0xff]  ;;  %v3605_v39 = vld [vmem:[#allocation2 + $0x158] sm:$0x3]  ;;  %v4987_v17 = vpop.f32.mrf.mxu2 }
 0x25a   : > { %v3363_v27 = vmul.f32 %v8122_v11, %v7876_v7  ;;  %v3364_v52 = vmul.f32 %v8122_v11, %v2507_v22  ;;  %v8131_v3 = vld [vmem:[#allocation2 + $0x300] sm:$0xff]  ;;  %v3232_v56 = vrot.slane %v3119_v61, 2  ;;  %v3648_v32 = vmul.f32 %v8139_v14, %v8116_v43 }
 0x25b   : > { %v3072_v62 = vadd.f32 %v2986_v28, %v2827_v47  ;;  %v3073_v9 = vadd.f32 %v2988_v25, %v2828_v10  ;;  %v3231_v36 = vsel %vm1972_vm1, %v3229_v12, %v3230_v46  ;;  %v3474_v22 = vrot.slane %v3362_v29, 2  ;;  %v3723_v25 = vld [vmem:[#allocation2 + $0x150] sm:$0x3] }
 0x25c   : > { %v3475_v57 = vrot.slane %v3363_v27, 2  ;;  %v3477_v54 = vrot.slane %v3364_v52, 2  ;;  %v3233_v47 = vsel %vm1972_vm1, %v3230_v46, %v3232_v56  ;;  %v3649_v28 = vmul.f32 %v8139_v14, %v8129_v55 }
 0x25d   : > { %v3317_v42 = vadd.f32 %v3231_v36, %v3072_v62  ;;  %v3766_v10 = vmul.f32 %v7666_v31, %v8131_v3  ;;  %v3767_v61 = vmul.f32 %v7666_v31, %v8133_v35  ;;  %v3318_v12 = vadd.f32 %v3233_v47, %v3073_v9 }
 0x25e   : > { %v3476_v62 = vsel %vm1972_vm1, %v3474_v22, %v3475_v57  ;;  %v3478_v29 = vsel %vm1972_vm1, %v3475_v57, %v3477_v54  ;;  %v3843_v27 = vmul.f32 %v7676_v50, %v8116_v43  ;;  %v3844_v46 = vmul.f32 %v7676_v50, %v8129_v55 }
 0x25f   : > { %v3562_v52 = vadd.f32 %v3476_v62, %v3317_v42  ;;  %v3845_v36 = vmul.f32 %v7676_v50, %v3605_v39  ;;  %v4088_v56 = vmul.f32 %v7687_v21, %v8131_v3  ;;  %v3563_v16 = vadd.f32 %v3478_v29, %v3318_v12 }
 0x260   : > { %v3955_v51 = vrot.slane %v3843_v27, 1  ;;  %v4089_v31 = vmul.f32 %v7687_v21, %v8133_v35  ;;  %v4090_v9 = vmul.f32 %v7687_v21, %v3723_v25  ;;  %v3956_v57 = vrot.slane %v3844_v46, 1 }
 0x261   : > { %v3680_v22 = vadd.f32 %v3648_v32, %v3562_v52  ;;  %v3958_v54 = vrot.slane %v3845_v36, 1  ;;  %v4200_v42 = vrot.slane %v4088_v56, 1  ;;  %v3681_v47 = vadd.f32 %v3649_v28, %v3563_v16  ;;  %v277_v28 = vld [vmem:[%s5951_s9] sm:$0xff]  }
 0x262   : > { %v4201_v62 = vrot.slane %v4089_v31, 1  ;;  %v4203_v34 = vrot.slane %v4090_v9, 1  ;;  %v4333_v50 = vmul.f32 %v7699_v63, %v8116_v43  ;;  %v3957_v12 = vsel %vm1481_vm0, %v3955_v51, %v3956_v57 }
 0x263   : > { %v3798_v58 = vadd.f32 %v3766_v10, %v3680_v22  ;;  %v3959_v29 = vsel %vm1481_vm0, %v3956_v57, %v3958_v54  ;;  %v4334_v21 = vmul.f32 %v7699_v63, %v8129_v55  ;;  %v3799_v32 = vadd.f32 %v3767_v61, %v3681_v47  ;;  %v8177_v10 = vld [vmem:[%s9212_s6] ss:$0 sm:$0xff] }
 0x264   : > { %v4202_v27 = vsel %vm1481_vm0, %v4200_v42, %v4201_v62  ;;  %v4204_v52 = vsel %vm1481_vm0, %v4201_v62, %v4203_v34  ;;  %v4335_v16 = vmul.f32 %v7699_v63, %v3605_v39  ;;  %v4445_v36 = vrot.slane %v4333_v50, 2 }
 0x265   : > { %v4043_v46 = vadd.f32 %v3957_v12, %v3798_v58  ;;  %v4446_v56 = vrot.slane %v4334_v21, 2  ;;  %v4578_v51 = vmul.f32 %v7710_v30, %v8131_v3  ;;  %v4044_v61 = vadd.f32 %v3959_v29, %v3799_v32  ;;  %v4989_v58 = vpop.f32.mrf.mxu2 }
 0x266   : > { %v4448_v31 = vrot.slane %v4335_v16, 2  ;;  %v4579_v34 = vmul.f32 %v7710_v30, %v8133_v35  ;;  %v4580_v63 = vmul.f32 %v7710_v30, %v3723_v25  ;;  %v4894_v57 = vunpack.c.l.bf16 %v277_v28 }
 0x267   : > { %v4288_v39 = vadd.f32 %v4202_v27, %v4043_v46  ;;  %v4447_v9 = vsel %vm1972_vm1, %v4445_v36, %v4446_v56  ;;  %v4690_v22 = vrot.slane %v4578_v51, 2  ;;  %v4289_v54 = vadd.f32 %v4204_v52, %v4044_v61  ;;  %v5635_v27 = vld [vmem:[#allocation2 + $0x1d8] sm:$0xff] }
 0x268   : > { %v4449_v42 = vsel %vm1972_vm1, %v4446_v56, %v4448_v31  ;;  %v4691_v47 = vrot.slane %v4579_v34, 2  ;;  %v4693_v62 = vrot.slane %v4580_v63, 2  ;;  %v4988_v12 = vadd.f32 %v8177_v10, %v4987_v17  ;;  %v9509_v61 = vld [vmem:[#allocation49_spill] sm:$0xff]  ;;  %v9510_v17 = vld [vmem:[#allocation51_spill] sm:$0xff]  ;;  %v9511_v31 = vld [vmem:[#allocation54_spill] sm:$0xff] }
 0x269   : > { %v4533_v50 = vadd.f32 %v4447_v9, %v4288_v39  ;;  %v4895_v29 = vunpack.c.h.bf16 %v277_v28  ;;  %v4990_v30 = vadd.f32 %v8177_v10, %v4989_v58  ;;  %v4534_v25 = vadd.f32 %v4449_v42, %v4289_v54  ;;  %v9513_v63 = vld [vmem:[#allocation32_spill] sm:$0xff]  ;;  %v9515_v9 = vld [vmem:[#allocation42_spill] sm:$0xff] }
 0x26a   : > { %v4692_v21 = vsel %vm1972_vm1, %v4690_v22, %v4691_v47  ;;  %v4694_v32 = vsel %vm1972_vm1, %v4691_v47, %v4693_v62  ;;  %v1250_v52 = vmul.f32 %v5635_v27, %v7926_v20  ;;  %v5067_v46 = vadd.f32 %v4988_v12, %v4894_v57 }
 0x26b   : > { %v4778_v16 = vadd.f32 %v4692_v21, %v4533_v50  ;;  %v5068_v36 = vadd.f32 %v4990_v30, %v4895_v29  ;;  %v1335_v56 = vmul.f32 %v7932_v2, %v7876_v7  ;;  %v4779_v51 = vadd.f32 %v4694_v32, %v4534_v25  ;;  %v5636_v25 = vld [vmem:[#allocation2 + $0x120] sm:$0xff] }
 0x26c   : > { %v1366_v28 = vadd.f32 %v9510_v17, %v9509_v61  ;;  %v9512_v34 = vrot.slane %v9511_v31, 1  ;;  %v9514_v58 = vrot.slane %v9513_v63, 1  ;;  %v9516_v22 = vrot.slane %v9515_v9, 1  ;;  %v5638_v17 = vld [vmem:[#allocation2 + $0x30] sm:$0x3] }
 0x26d   : > { %v4814_v42 = vadd.f32 %v7731_v37, %v4778_v16  ;;  %v5099_v47 = vmax.f32 %v5067_v46, 0.0  ;;  %v5100_v62 = vmax.f32 %v5068_v36, 0.0  ;;  %v1367_v50 = vadd.f32 %v1335_v56, %v1250_v52  ;;  %v5637_v46 = vld [vmem:[#allocation2 + $0x68] sm:$0xff] }
 0x26e   : > { %v1529_v39 = vsel %vm1481_vm0, %v9514_v58, %v9512_v34  ;;  %v9517_v54 = vmov %v9512_v34  ;;  %v4815_v12 = vadd.f32 %v7731_v37, %v4779_v51  ;;  %v1659_v30 = vmul.f32 %v7762_v53, %v7876_v7 }
 0x26f   : > { %v1531_v57 = vsel %vm1481_vm0, %v9517_v54, %v9516_v22  ;;  %v1612_v29 = vadd.f32 %v1529_v39, %v1366_v28  ;;  %v1903_v21 = vmul.f32 %v5636_v25, %v7948_v26  ;;  %v4846_v32 = vmax.f32 %v4814_v42, 0.0  ;;  %5131 = vst [vmem:[%s8211_s18] sm:$0xff] %v5099_v47  ;;  %v9521_v47 = vld [vmem:[#allocation41_spill] sm:$0xff] }
 0x270   : > { %v1613_v61 = vadd.f32 %v1531_v57, %v1367_v50  ;;  %v1904_v16 = vmul.f32 %v5635_v27, %v7948_v26  ;;  %v2149_v52 = vmul.f32 %v5637_v46, %v7969_v8  ;;  %v4847_v37 = vmax.f32 %v4815_v12, 0.0  ;;  %5132 = vst [vmem:[%s8211_s18 + $0x8] sm:$0xff] %v5100_v62  ;;  %v9518_v27 = vld [vmem:[#allocation50_spill] sm:$0xff]  ;;  %v2392_v12 = vld [vmem:[#allocation2 + $0x158] sm:$0x3] }
 0x271   : > { %v1773_v36 = vrot.slane %v1659_v30, 1  ;;  %v2018_v56 = vrot.slane %v1903_v21, 2  ;;  %v2150_v53 = vmul.f32 %v7969_v8, %v7876_v7  ;;  %v2151_v28 = vmul.f32 %v5638_v17, %v7969_v8 }
 0x272   : > { %v2019_v51 = vrot.slane %v1904_v16, 2  ;;  %v2263_v31 = vrot.slane %v2149_v52, 2  ;;  %v2434_v34 = vmul.f32 %v8038_v41, %v8116_v43  ;;  %v4870_v63 = vpack.c.bf16 %v4847_v37, %v4846_v32 }
 0x273   : > { %v9519_v58 = vrot.slane %v9518_v27, 1  ;;  %v9520_v9 = vrot.slane %v7438_v48, 1  ;;  %v2264_v54 = vrot.slane %v2150_v53, 2  ;;  %v9522_v62 = vrot.slane %v9521_v47, 2 }
 0x274   : > { %v2020_v42 = vsel %vm1972_vm1, %v2018_v56, %v2019_v51  ;;  %5026 = vmatmul.bf16.gmra.mxu2 %v4870_v63  ;;  %v2266_v25 = vrot.slane %v2151_v28, 2  ;;  %v2435_v21 = vmul.f32 %v8038_v41, %v8129_v55  ;;  %v2552_v48 = vmul.f32 %v8074_v59, %v8131_v3 }
 0x275   : > { %v1774_v39 = vsel %vm1481_vm0, %v9519_v58, %v1773_v36  ;;  %v1776_v22 = vsel %vm1481_vm0, %v1773_v36, %v9520_v9  ;;  %v2022_v50 = vsel %vm1972_vm1, %v2019_v51, %v9522_v62  ;;  %v2265_v30 = vsel %vm1972_vm1, %v2263_v31, %v2264_v54 }
 0x276   : > { %v1857_v57 = vadd.f32 %v1774_v39, %v1612_v29  ;;  %v1858_v7 = vadd.f32 %v1776_v22, %v1613_v61  ;;  %v2510_v61 = vld [vmem:[#allocation2 + $0x150] sm:$0x3]  ;;  %v2553_v16 = vmul.f32 %v8074_v59, %v8133_v35  ;;  %v2630_v46 = vmul.f32 %v8086_v24, %v8116_v43 }
 0x277   : > { %v2267_v52 = vsel %vm1972_vm1, %v2264_v54, %v2266_v25  ;;  %v2631_v37 = vmul.f32 %v8086_v24, %v8129_v55  ;;  %v2632_v36 = vmul.f32 %v8086_v24, %v2392_v12  ;;  %v2875_v56 = vmul.f32 %v8096_v19, %v8131_v3 }
 0x278   : > { %v2103_v32 = vadd.f32 %v2020_v42, %v1857_v57  ;;  %v2104_v29 = vadd.f32 %v2022_v50, %v1858_v7  ;;  %v2744_v17 = vrot.slane %v2630_v46, 1  ;;  %v2876_v28 = vmul.f32 %v8096_v19, %v8133_v35 }
 0x279   : > { %v2745_v31 = vrot.slane %v2631_v37, 1  ;;  %v2747_v63 = vrot.slane %v2632_v36, 1  ;;  %v2877_v27 = vmul.f32 %v8096_v19, %v2510_v61  ;;  %v2989_v58 = vrot.slane %v2875_v56, 1 }
 0x27a   : > { %v2348_v53 = vadd.f32 %v2265_v30, %v2103_v32  ;;  %v2349_v51 = vadd.f32 %v2267_v52, %v2104_v29  ;;  %v2990_v22 = vrot.slane %v2876_v28, 1  ;;  %v3120_v54 = vmul.f32 %v8107_v5, %v8116_v43 }
 0x27b   : > { %v2746_v57 = vsel %vm1481_vm0, %v2744_v17, %v2745_v31  ;;  %v2748_v7 = vsel %vm1481_vm0, %v2745_v31, %v2747_v63  ;;  %v2992_v42 = vrot.slane %v2877_v27, 1  ;;  %v3121_v47 = vmul.f32 %v8107_v5, %v8129_v55  ;;  %v4992_v17 = vpop.f32.mrf.mxu2  ;;  %v8273_v63 = vld [vmem:[%s9209_s3 + $0xd] ss:$0 sm:$0xff] }
 0x27c   : > { %v2466_v39 = vadd.f32 %v2434_v34, %v2348_v53  ;;  %v2467_v9 = vadd.f32 %v2435_v21, %v2349_v51  ;;  %v2991_v30 = vsel %vm1481_vm0, %v2989_v58, %v2990_v22  ;;  %v3122_v25 = vmul.f32 %v8107_v5, %v2392_v12 }
 0x27d   : > { %v2993_v34 = vsel %vm1481_vm0, %v2990_v22, %v2992_v42  ;;  %v3234_v21 = vrot.slane %v3120_v54, 2  ;;  %v3235_v32 = vrot.slane %v3121_v47, 2  ;;  %v3365_v43 = vmul.f32 %v8122_v11, %v8131_v3  ;;  %v3608_v3 = vld [vmem:[#allocation2 + $0x60] sm:$0x3]  ;;  %v3726_v22 = vld [vmem:[#allocation2 + $0x1b8] sm:$0x3] }
 0x27e   : > { %v2584_v62 = vadd.f32 %v2552_v48, %v2466_v39  ;;  %v2585_v50 = vadd.f32 %v2553_v16, %v2467_v9  ;;  %v3237_v52 = vrot.slane %v3122_v25, 2  ;;  %v3366_v37 = vmul.f32 %v8122_v11, %v8133_v35  ;;  %v8283_v54 = vld [vmem:[%s9209_s3 + $0xe] ss:$0 sm:$0xff] }
 0x27f   : > { %v3236_v55 = vsel %vm1972_vm1, %v3234_v21, %v3235_v32  ;;  %v3367_v48 = vmul.f32 %v8122_v11, %v2510_v61  ;;  %v3479_v16 = vrot.slane %v3365_v43, 2  ;;  %v3650_v12 = vmul.f32 %v8139_v14, %v7739_v60 }
 0x280   : > { %v2829_v29 = vadd.f32 %v2746_v57, %v2584_v62  ;;  %v2830_v46 = vadd.f32 %v2748_v7, %v2585_v50  ;;  %v3238_v53 = vsel %vm1972_vm1, %v3235_v32, %v3237_v52  ;;  %v3480_v51 = vrot.slane %v3366_v37, 2  ;;  %v8294_v62 = vld [vmem:[%s9209_s3 + $0xf] ss:$0 sm:$0xff] }
 0x281   : > { %v3482_v28 = vrot.slane %v3367_v48, 2  ;;  %v3651_v31 = vmul.f32 %v8139_v14, %v7769_v4  ;;  %v3768_v61 = vmul.f32 %v8273_v63, %v7751_v6  ;;  %v3769_v27 = vmul.f32 %v8273_v63, %v7789_v44  ;;  %v8304_v48 = vld [vmem:[%s9209_s3 + $0x10] ss:$0 sm:$0xff] }
 0x282   : > { %v3074_v36 = vadd.f32 %v2991_v30, %v2829_v29  ;;  %v3075_v56 = vadd.f32 %v2993_v34, %v2830_v46  ;;  %v3481_v9 = vsel %vm1972_vm1, %v3479_v16, %v3480_v51  ;;  %v3846_v57 = vmul.f32 %v8283_v54, %v7739_v60 }
 0x283   : > { %v3483_v7 = vsel %vm1972_vm1, %v3480_v51, %v3482_v28  ;;  %v3847_v42 = vmul.f32 %v8283_v54, %v7769_v4  ;;  %v3848_v47 = vmul.f32 %v8283_v54, %v3608_v3  ;;  %v4091_v50 = vmul.f32 %v8294_v62, %v7751_v6 }
 0x284   : > { %v3319_v58 = vadd.f32 %v3236_v55, %v3074_v36  ;;  %v3320_v39 = vadd.f32 %v3238_v53, %v3075_v56  ;;  %v3960_v34 = vrot.slane %v3846_v57, 1  ;;  %v4092_v21 = vmul.f32 %v8294_v62, %v7789_v44 }
 0x285   : > { %v3961_v32 = vrot.slane %v3847_v42, 1  ;;  %v3963_v43 = vrot.slane %v3848_v47, 1  ;;  %v4093_v29 = vmul.f32 %v8294_v62, %v3726_v22  ;;  %v4205_v46 = vrot.slane %v4091_v50, 1 }
 0x286   : > { %v3564_v30 = vadd.f32 %v3481_v9, %v3319_v58  ;;  %v3565_v25 = vadd.f32 %v3483_v7, %v3320_v39  ;;  %v4206_v55 = vrot.slane %v4092_v21, 1  ;;  %v4336_v16 = vmul.f32 %v8304_v48, %v7739_v60  ;;  %v279_v39 = vld [vmem:[%s5951_s9 + $0x8] sm:$0xff]   ;;  %v8319_v60 = vld [vmem:[%s9209_s3 + $0x11] ss:$0 sm:$0xff] }
 0x287   : > { %v3962_v36 = vsel %vm1481_vm0, %v3960_v34, %v3961_v32  ;;  %v3964_v56 = vsel %vm1481_vm0, %v3961_v32, %v3963_v43  ;;  %v4208_v53 = vrot.slane %v4093_v29, 1  ;;  %v4337_v51 = vmul.f32 %v8304_v48, %v7769_v4 }
 0x288   : > { %v3682_v52 = vadd.f32 %v3650_v12, %v3564_v30  ;;  %v3683_v37 = vadd.f32 %v3651_v31, %v3565_v25  ;;  %v4207_v31 = vsel %vm1481_vm0, %v4205_v46, %v4206_v55  ;;  %v4338_v58 = vmul.f32 %v8304_v48, %v3608_v3  ;;  %v4994_v3 = vpop.f32.mrf.mxu2 }
 0x289   : > { %v4209_v9 = vsel %vm1481_vm0, %v4206_v55, %v4208_v53  ;;  %v4450_v57 = vrot.slane %v4336_v16, 2  ;;  %v4451_v7 = vrot.slane %v4337_v51, 2  ;;  %v4581_v42 = vmul.f32 %v8319_v60, %v7751_v6 }
 0x28a   : > { %v3800_v28 = vadd.f32 %v3768_v61, %v3682_v52  ;;  %v3801_v12 = vadd.f32 %v3769_v27, %v3683_v37  ;;  %v4453_v27 = vrot.slane %v4338_v58, 2  ;;  %v4582_v47 = vmul.f32 %v8319_v60, %v7789_v44 }
 0x28b   : > { %v4452_v50 = vsel %vm1972_vm1, %v4450_v57, %v4451_v7  ;;  %v4583_v30 = vmul.f32 %v8319_v60, %v3726_v22  ;;  %v4695_v25 = vrot.slane %v4581_v42, 2  ;;  %v4896_v34 = vunpack.c.l.bf16 %v279_v39  ;;  %v9526_v57 = vld [vmem:[#allocation34_spill] sm:$0xff] }
 0x28c   : > { %v4045_v4 = vadd.f32 %v3962_v36, %v3800_v28  ;;  %v4046_v61 = vadd.f32 %v3964_v56, %v3801_v12  ;;  %v4454_v43 = vsel %vm1972_vm1, %v4451_v7, %v4453_v27  ;;  %v4696_v29 = vrot.slane %v4582_v47, 2  ;;  %v5644_v36 = vld [vmem:[#allocation2 + $0x260] sm:$0xff]  ;;  %v9528_v47 = vld [vmem:[#allocation27_spill] sm:$0xff] }
 0x28d   : > { %v4698_v46 = vrot.slane %v4583_v30, 2  ;;  %v4993_v6 = vadd.f32 %v8177_v10, %v4992_v17  ;;  %v4897_v52 = vunpack.c.h.bf16 %v279_v39  ;;  %v4995_v37 = vadd.f32 %v8177_v10, %v4994_v3  ;;  %v9524_v39 = vld [vmem:[#allocation43_spill] sm:$0xff] }
 0x28e   : > { %v4290_v21 = vadd.f32 %v4207_v31, %v4045_v4  ;;  %v4291_v32 = vadd.f32 %v4209_v9, %v4046_v61  ;;  %v4697_v16 = vsel %vm1972_vm1, %v4695_v25, %v4696_v29  ;;  %v1252_v22 = vmul.f32 %v5644_v36, %v7926_v20  ;;  %v9523_v31 = vld [vmem:[#allocation44_spill] sm:$0xff] }
 0x28f   : > { %v4699_v56 = vsel %vm1972_vm1, %v4696_v29, %v4698_v46  ;;  %v5069_v53 = vadd.f32 %v4993_v6, %v4896_v34  ;;  %v5070_v51 = vadd.f32 %v4995_v37, %v4897_v52  ;;  %v1337_v28 = vmul.f32 %v7932_v2, %v8133_v35  ;;  %v5647_v46 = vld [vmem:[#allocation2 + $0x280] sm:$0xff] }
 0x290   : > { %v4535_v55 = vadd.f32 %v4452_v50, %v4290_v21  ;;  %v4536_v44 = vadd.f32 %v4454_v43, %v4291_v32  ;;  %v1368_v58 = vadd.f32 %v9523_v31, %v7544_v33  ;;  %v9525_v9 = vrot.slane %v9524_v39, 1  ;;  %v8350_v33 = vld [vmem:[%s9210_s4] ss:$0 sm:$0xff]  ;;  %v8357_v32 = vld [vmem:[%s9209_s3 + $0x3] ss:$0 sm:$0xff] }
 0x291   : > { %v9527_v7 = vrot.slane %v9526_v57, 1  ;;  %v5101_v4 = vmax.f32 %v5069_v53, 0.0  ;;  %v5102_v61 = vmax.f32 %v5070_v51, 0.0  ;;  %v1369_v27 = vadd.f32 %v1337_v28, %v1252_v22  ;;  %v5648_v37 = vld [vmem:[#allocation2 + $0x300] sm:$0xff]  ;;  %v5649_v28 = vld [vmem:[#allocation2 + $0x150] sm:$0x3] }
 0x292   : > { %v4780_v12 = vadd.f32 %v4697_v16, %v4535_v55  ;;  %v4781_v17 = vadd.f32 %v4699_v56, %v4536_v44  ;;  %v9529_v3 = vrot.slane %v9528_v47, 1  ;;  %v9530_v50 = vmov %v9525_v9  ;;  %v2393_v31 = vld [vmem:[#allocation2 + $0x180] sm:$0xff] }
 0x293   : > { %v1534_v42 = vsel %vm1481_vm0, %v9527_v7, %v9525_v9  ;;  %v1662_v43 = vmul.f32 %v8357_v32, %v8133_v35  ;;  %5133 = vst [vmem:[%s8211_s18 + $0x10] sm:$0xff] %v5101_v4  ;;  %v1906_v6 = vmul.f32 %v5647_v46, %v7948_v26  ;;  %v1907_v52 = vmul.f32 %v5644_v36, %v7948_v26  ;;  %v9531_v26 = vld [vmem:[#allocation36_spill] sm:$0xff]  ;;  %v2511_v4 = vld [vmem:[#allocation2 + $0x348] sm:$0xff] }
 0x294   : > { %v1536_v30 = vsel %vm1481_vm0, %v9530_v50, %v9529_v3  ;;  %v4816_v25 = vadd.f32 %v8350_v33, %v4780_v12  ;;  %v4817_v34 = vadd.f32 %v8350_v33, %v4781_v17  ;;  %v1614_v21 = vadd.f32 %v1534_v42, %v1368_v58  ;;  %5134 = vst [vmem:[%s8211_s18 + $0x18] sm:$0xff] %v5102_v61  ;;  %v2394_v58 = vld [vmem:[#allocation2 + $0xc0] sm:$0xff]  ;;  %v9534_v3 = vld [vmem:[#allocation45_spill] sm:$0xff] }
 0x295   : > { %v1615_v29 = vadd.f32 %v1536_v30, %v1369_v27  ;;  %v2152_v55 = vmul.f32 %v5648_v37, %v7969_v8  ;;  %v1778_v22 = vrot.slane %v1662_v43, 1  ;;  %v2153_v56 = vmul.f32 %v7969_v8, %v8133_v35  ;;  %v8375_v35 = vld [vmem:[#allocation2 + $0x40] sm:$0xff]  ;;  %v2513_v37 = vld [vmem:[#allocation2 + $0x1b8] sm:$0x3] }
 0x296   : > { %v4848_v44 = vmax.f32 %v4816_v25, 0.0  ;;  %v4849_v16 = vmax.f32 %v4817_v34, 0.0  ;;  %v2023_v53 = vrot.slane %v1906_v6, 2  ;;  %v2024_v51 = vrot.slane %v1907_v52, 2  ;;  %v2395_v25 = vld [vmem:[#allocation2 + $0x60] sm:$0x3] }
 0x297   : > { %v2154_v12 = vmul.f32 %v5649_v28, %v7969_v8  ;;  %v2268_v17 = vrot.slane %v2152_v55, 2  ;;  %v9532_v36 = vrot.slane %v9531_v26, 1  ;;  %v9533_v57 = vrot.slane %v7630_v23, 1 }
 0x298   : > { %v4871_v39 = vpack.c.bf16 %v4849_v16, %v4848_v44  ;;  %v2269_v42 = vrot.slane %v2153_v56, 2  ;;  %v2025_v47 = vsel %vm1972_vm1, %v2023_v53, %v2024_v51  ;;  %v9535_v50 = vrot.slane %v9534_v3, 2 }
 0x299   : > { %v1779_v9 = vsel %vm1481_vm0, %v9532_v36, %v1778_v22  ;;  %v1781_v7 = vsel %vm1481_vm0, %v1778_v22, %v9533_v57  ;;  %v2271_v43 = vrot.slane %v2154_v12, 2  ;;  %v2436_v23 = vmul.f32 %v8038_v41, %v2393_v31 }
 0x29a   : > { %v1859_v61 = vadd.f32 %v1779_v9, %v1614_v21  ;;  %v1860_v27 = vadd.f32 %v1781_v7, %v1615_v29  ;;  %v2027_v30 = vsel %vm1972_vm1, %v2024_v51, %v9535_v50  ;;  %5031 = vmatmul.bf16.gmra.mxu2 %v4871_v39  ;;  %v2270_v34 = vsel %vm1972_vm1, %v2268_v17, %v2269_v42 }
 0x29b   : > { %v2437_v46 = vmul.f32 %v8038_v41, %v2394_v58  ;;  %v2554_v21 = vmul.f32 %v8074_v59, %v2511_v4  ;;  %v2555_v29 = vmul.f32 %v8074_v59, %v8375_v35  ;;  %v2272_v55 = vsel %vm1972_vm1, %v2269_v42, %v2271_v43 }
 0x29c   : > { %v2105_v6 = vadd.f32 %v2025_v47, %v1859_v61  ;;  %v2106_v52 = vadd.f32 %v2027_v30, %v1860_v27  ;;  %v2633_v44 = vmul.f32 %v8086_v24, %v2393_v31  ;;  %v2634_v16 = vmul.f32 %v8086_v24, %v2394_v58 }
 0x29d   : > { %v2635_v22 = vmul.f32 %v8086_v24, %v2395_v25  ;;  %v2878_v51 = vmul.f32 %v8096_v19, %v2511_v4  ;;  %v2879_v28 = vmul.f32 %v8096_v19, %v8375_v35  ;;  %v2880_v26 = vmul.f32 %v8096_v19, %v2513_v37 }
 0x29e   : > { %v2350_v56 = vadd.f32 %v2270_v34, %v2105_v6  ;;  %v2351_v53 = vadd.f32 %v2272_v55, %v2106_v52  ;;  %v2749_v12 = vrot.slane %v2633_v44, 1  ;;  %v2750_v17 = vrot.slane %v2634_v16, 1 }
 0x29f   : > { %v2752_v39 = vrot.slane %v2635_v22, 1  ;;  %v2994_v57 = vrot.slane %v2878_v51, 1  ;;  %v2995_v7 = vrot.slane %v2879_v28, 1  ;;  %v2997_v27 = vrot.slane %v2880_v26, 1  ;;  %v3611_v51 = vld [vmem:[#allocation2 + $0x2d8] sm:$0x3] }
 0x2a0   : > { %v2468_v36 = vadd.f32 %v2436_v23, %v2350_v56  ;;  %v2469_v9 = vadd.f32 %v2437_v46, %v2351_v53  ;;  %v2751_v42 = vsel %vm1481_vm0, %v2749_v12, %v2750_v17  ;;  %v3123_v47 = vmul.f32 %v8107_v5, %v2393_v31 }
 0x2a1   : > { %v2753_v61 = vsel %vm1481_vm0, %v2750_v17, %v2752_v39  ;;  %v2996_v30 = vsel %vm1481_vm0, %v2994_v57, %v2995_v7  ;;  %v3124_v34 = vmul.f32 %v8107_v5, %v2394_v58  ;;  %v2998_v43 = vsel %vm1481_vm0, %v2995_v7, %v2997_v27 }
 0x2a2   : > { %v2586_v3 = vadd.f32 %v2554_v21, %v2468_v36  ;;  %v2587_v50 = vadd.f32 %v2555_v29, %v2469_v9  ;;  %v3125_v23 = vmul.f32 %v8107_v5, %v2395_v25  ;;  %v3239_v46 = vrot.slane %v3123_v47, 2  ;;  %v3729_v9 = vld [vmem:[#allocation2 + $0x220] sm:$0x3] }
 0x2a3   : > { %v3368_v6 = vmul.f32 %v8122_v11, %v2511_v4  ;;  %v3240_v44 = vrot.slane %v3124_v34, 2  ;;  %v3369_v16 = vmul.f32 %v8122_v11, %v8375_v35  ;;  %v3370_v21 = vmul.f32 %v8122_v11, %v2513_v37  ;;  %v4997_v37 = vpop.f32.mrf.mxu2 }
 0x2a4   : > { %v2831_v52 = vadd.f32 %v2751_v42, %v2586_v3  ;;  %v2832_v55 = vadd.f32 %v2753_v61, %v2587_v50  ;;  %v3242_v31 = vrot.slane %v3125_v23, 2  ;;  %v3652_v58 = vmul.f32 %v8139_v14, %v7921_v0 }
 0x2a5   : > { %v3484_v29 = vrot.slane %v3368_v6, 2  ;;  %v3241_v25 = vsel %vm1972_vm1, %v3239_v46, %v3240_v44  ;;  %v3485_v53 = vrot.slane %v3369_v16, 2  ;;  %v3487_v28 = vrot.slane %v3370_v21, 2 }
 0x2a6   : > { %v3076_v22 = vadd.f32 %v2996_v30, %v2831_v52  ;;  %v3077_v56 = vadd.f32 %v2998_v43, %v2832_v55  ;;  %v3243_v4 = vsel %vm1972_vm1, %v3240_v44, %v3242_v31  ;;  %v3653_v12 = vmul.f32 %v8139_v14, %v7976_v45 }
 0x2a7   : > { %v3770_v17 = vmul.f32 %v8273_v63, %v7955_v40  ;;  %v3486_v36 = vsel %vm1972_vm1, %v3484_v29, %v3485_v53  ;;  %v3771_v57 = vmul.f32 %v8273_v63, %v7995_v38  ;;  %v3488_v7 = vsel %vm1972_vm1, %v3485_v53, %v3487_v28 }
 0x2a8   : > { %v3321_v39 = vadd.f32 %v3241_v25, %v3076_v22  ;;  %v3322_v26 = vadd.f32 %v3243_v4, %v3077_v56  ;;  %v3849_v42 = vmul.f32 %v8283_v54, %v7921_v0  ;;  %v3850_v61 = vmul.f32 %v8283_v54, %v7976_v45  ;;  %v281_v4 = vld [vmem:[%s5951_s9 + $0x10] sm:$0xff]  }
 0x2a9   : > { %v3851_v27 = vmul.f32 %v8283_v54, %v3611_v51  ;;  %v4094_v50 = vmul.f32 %v8294_v62, %v7955_v40  ;;  %v4095_v30 = vmul.f32 %v8294_v62, %v7995_v38  ;;  %v4096_v46 = vmul.f32 %v8294_v62, %v3729_v9 }
 0x2aa   : > { %v3566_v47 = vadd.f32 %v3486_v36, %v3321_v39  ;;  %v3567_v3 = vadd.f32 %v3488_v7, %v3322_v26  ;;  %v3965_v34 = vrot.slane %v3849_v42, 1  ;;  %v3966_v43 = vrot.slane %v3850_v61, 1 }
 0x2ab   : > { %v3968_v23 = vrot.slane %v3851_v27, 1  ;;  %v4210_v55 = vrot.slane %v4094_v50, 1  ;;  %v4211_v44 = vrot.slane %v4095_v30, 1  ;;  %v4213_v21 = vrot.slane %v4096_v46, 1  ;;  %v4999_v61 = vpop.f32.mrf.mxu2 }
 0x2ac   : > { %v3684_v6 = vadd.f32 %v3652_v58, %v3566_v47  ;;  %v3685_v52 = vadd.f32 %v3653_v12, %v3567_v3  ;;  %v3967_v16 = vsel %vm1481_vm0, %v3965_v34, %v3966_v43  ;;  %v4339_v29 = vmul.f32 %v8304_v48, %v7921_v0 }
 0x2ad   : > { %v3969_v31 = vsel %vm1481_vm0, %v3966_v43, %v3968_v23  ;;  %v4212_v25 = vsel %vm1481_vm0, %v4210_v55, %v4211_v44  ;;  %v4340_v53 = vmul.f32 %v8304_v48, %v7976_v45  ;;  %v4214_v58 = vsel %vm1481_vm0, %v4211_v44, %v4213_v21 }
 0x2ae   : > { %v3802_v22 = vadd.f32 %v3770_v17, %v3684_v6  ;;  %v3803_v56 = vadd.f32 %v3771_v57, %v3685_v52  ;;  %v4341_v28 = vmul.f32 %v8304_v48, %v3611_v51  ;;  %v4455_v12 = vrot.slane %v4339_v29, 2  ;;  %v5650_v52 = vld [vmem:[#allocation2 + $0xc0] sm:$0xff] }
 0x2af   : > { %v4584_v39 = vmul.f32 %v8319_v60, %v7955_v40  ;;  %v4456_v7 = vrot.slane %v4340_v53, 2  ;;  %v4585_v0 = vmul.f32 %v8319_v60, %v7995_v38  ;;  %v4586_v57 = vmul.f32 %v8319_v60, %v3729_v9 }
 0x2b0   : > { %v4047_v26 = vadd.f32 %v3967_v16, %v3802_v22  ;;  %v4048_v36 = vadd.f32 %v3969_v31, %v3803_v56  ;;  %v4458_v17 = vrot.slane %v4341_v28, 2  ;;  %v4898_v45 = vunpack.c.l.bf16 %v281_v4 }
 0x2b1   : > { %v4700_v42 = vrot.slane %v4584_v39, 2  ;;  %v4457_v51 = vsel %vm1972_vm1, %v4455_v12, %v4456_v7  ;;  %v4701_v3 = vrot.slane %v4585_v0, 2  ;;  %v4703_v40 = vrot.slane %v4586_v57, 2 }
 0x2b2   : > { %v4292_v27 = vadd.f32 %v4212_v25, %v4047_v26  ;;  %v4293_v47 = vadd.f32 %v4214_v58, %v4048_v36  ;;  %v4459_v50 = vsel %vm1972_vm1, %v4456_v7, %v4458_v17  ;;  %v4998_v30 = vadd.f32 %v8177_v10, %v4997_v37  ;;  %v2396_v36 = vld [vmem:[#allocation2 + $0x1d0] sm:$0xff]  ;;  %v5653_v17 = vld [vmem:[#allocation2 + $0x348] sm:$0xff] }
 0x2b3   : > { %v4899_v34 = vunpack.c.h.bf16 %v281_v4  ;;  %v4702_v38 = vsel %vm1972_vm1, %v4700_v42, %v4701_v3  ;;  %v5000_v9 = vadd.f32 %v8177_v10, %v4999_v61  ;;  %v4704_v46 = vsel %vm1972_vm1, %v4701_v3, %v4703_v40 }
 0x2b4   : > { %v4537_v43 = vadd.f32 %v4457_v51, %v4292_v27  ;;  %v4538_v23 = vadd.f32 %v4459_v50, %v4293_v47  ;;  %v5071_v6 = vadd.f32 %v4998_v30, %v4898_v45  ;;  %v1254_v55 = vmul.f32 %v5650_v52, %v7926_v20  ;;  %v8483_v47 = vld [vmem:[%s9209_s3 + $0x5] ss:$0 sm:$0xff]  ;;  %v5655_v51 = vld [vmem:[#allocation2 + $0x1b8] sm:$0x3] }
 0x2b5   : > { %v1339_v44 = vmul.f32 %v7932_v2, %v8375_v35  ;;  %v5072_v37 = vadd.f32 %v5000_v9, %v4899_v34  ;;  %v1370_v21 = vadd.f32 %v7774_v15, %v7757_v18  ;;  %v9536_v56 = vrot.slane %v7779_v13, 1  ;;  %v5652_v13 = vld [vmem:[#allocation2 + $0x180] sm:$0xff] }
 0x2b6   : > { %v4782_v16 = vadd.f32 %v4702_v38, %v4537_v43  ;;  %v4783_v31 = vadd.f32 %v4704_v46, %v4538_v23  ;;  %v5103_v29 = vmax.f32 %v5071_v6, 0.0  ;;  %v9537_v25 = vrot.slane %v7748_v1, 1  ;;  %v2397_v34 = vld [vmem:[#allocation2 + $0x1e0] sm:$0xff]  ;;  %v2515_v38 = vld [vmem:[#allocation2 + $0xc8] sm:$0xff] }
 0x2b7   : > { %v1371_v22 = vadd.f32 %v1339_v44, %v1254_v55  ;;  %v9538_v4 = vrot.slane %v7831_v49, 1  ;;  %v9539_v20 = vmov %v9536_v56  ;;  %v5104_v18 = vmax.f32 %v5072_v37, 0.0  ;;  %v8472_v49 = vld [vmem:[%s9209_s3 + $0x4] ss:$0 sm:$0xff]  ;;  %v9544_v44 = vld [vmem:[#allocation12_spill] sm:$0xff] }
 0x2b8   : > { %v1539_v53 = vsel %vm1481_vm0, %v9537_v25, %v9536_v56  ;;  %v4818_v58 = vadd.f32 %v8350_v33, %v4782_v16  ;;  %v4819_v28 = vadd.f32 %v8350_v33, %v4783_v31  ;;  %5135 = vst [vmem:[%s8211_s18 + $0x20] sm:$0xff] %v5103_v29  ;;  %v1665_v1 = vmul.f32 %v8357_v32, %v8375_v35  ;;  %v2514_v23 = vld [vmem:[#allocation2 + $0x1a0] sm:$0xff]  ;;  %v2398_v56 = vld [vmem:[#allocation2 + $0x2d8] sm:$0x3] }
 0x2b9   : > { %v1541_v2 = vsel %vm1481_vm0, %v9539_v20, %v9538_v4  ;;  %v1616_v15 = vadd.f32 %v1539_v53, %v1370_v21  ;;  %v1909_v39 = vmul.f32 %v5652_v13, %v8472_v49  ;;  %v1910_v26 = vmul.f32 %v8472_v49, %v5650_v52  ;;  %5136 = vst [vmem:[%s8211_s18 + $0x28] sm:$0xff] %v5104_v18  ;;  %v9542_v46 = vld [vmem:[#allocation46_spill] sm:$0xff] }
 0x2ba   : > { %v1617_v12 = vadd.f32 %v1541_v2, %v1371_v22  ;;  %v4850_v7 = vmax.f32 %v4818_v58, 0.0  ;;  %v4851_v0 = vmax.f32 %v4819_v28, 0.0  ;;  %v2155_v57 = vmul.f32 %v5653_v17, %v7969_v8  ;;  %v2516_v53 = vld [vmem:[#allocation2 + $0x220] sm:$0x3] }
 0x2bb   : > { %v2156_v42 = vmul.f32 %v7969_v8, %v8375_v35  ;;  %v1783_v45 = vrot.slane %v1665_v1, 1  ;;  %v2028_v61 = vrot.slane %v1909_v39, 2  ;;  %v2029_v27 = vrot.slane %v1910_v26, 2  ;;  %v9540_v8 = vld [vmem:[#allocation47_spill] sm:$0xff] }
 0x2bc   : > { %v2157_v3 = vmul.f32 %v5655_v51, %v8483_v47  ;;  %v4872_v50 = vpack.c.bf16 %v4851_v0, %v4850_v7  ;;  %v2273_v40 = vrot.slane %v2155_v57, 2  ;;  %v2438_v43 = vmul.f32 %v8038_v41, %v2396_v36 }
 0x2bd   : > { %v2274_v30 = vrot.slane %v2156_v42, 2  ;;  %v9541_v35 = vrot.slane %v9540_v8, 1  ;;  %v9543_v6 = vrot.slane %v9542_v46, 1  ;;  %v2030_v55 = vsel %vm1972_vm1, %v2028_v61, %v2029_v27 }
 0x2be   : > { %v9545_v16 = vrot.slane %v9544_v44, 2  ;;  %5036 = vmatmul.bf16.gmra.mxu2 %v4872_v50  ;;  %v2276_v22 = vrot.slane %v2157_v3, 2  ;;  %v2439_v25 = vmul.f32 %v8038_v41, %v2397_v34  ;;  %v2556_v4 = vmul.f32 %v8074_v59, %v2514_v23 }
 0x2bf   : > { %v1784_v9 = vsel %vm1481_vm0, %v9541_v35, %v1783_v45  ;;  %v1786_v52 = vsel %vm1481_vm0, %v1783_v45, %v9543_v6  ;;  %v2275_v29 = vsel %vm1972_vm1, %v2273_v40, %v2274_v30  ;;  %v2557_v20 = vmul.f32 %v8074_v59, %v2515_v38 }
 0x2c0   : > { %v2032_v31 = vsel %vm1972_vm1, %v2029_v27, %v9545_v16  ;;  %v1861_v37 = vadd.f32 %v1784_v9, %v1616_v15  ;;  %v1862_v21 = vadd.f32 %v1786_v52, %v1617_v12  ;;  %v2636_v2 = vmul.f32 %v8086_v24, %v2396_v36  ;;  %v8519_v52 = vld [vmem:[#allocation2 + $0x1a8] sm:$0xff] }
 0x2c1   : > { %v2277_v18 = vsel %vm1972_vm1, %v2274_v30, %v2276_v22  ;;  %v2637_v15 = vmul.f32 %v8086_v24, %v2397_v34  ;;  %v2638_v12 = vmul.f32 %v8086_v24, %v2398_v56  ;;  %v2881_v13 = vmul.f32 %v8096_v19, %v2514_v23  ;;  %v8514_v30 = vld [vmem:[#allocation2 + $0xb0] sm:$0xff]  ;;  %v8524_v16 = vld [vmem:[#allocation2 + $0x28] sm:$0xff] }
 0x2c2   : > { %v2107_v58 = vadd.f32 %v2030_v55, %v1861_v37  ;;  %v2108_v28 = vadd.f32 %v2032_v31, %v1862_v21  ;;  %v2754_v1 = vrot.slane %v2636_v2, 1  ;;  %v2882_v41 = vmul.f32 %v8096_v19, %v2515_v38 }
 0x2c3   : > { %v2755_v7 = vrot.slane %v2637_v15, 1  ;;  %v2883_v59 = vmul.f32 %v8096_v19, %v2516_v53  ;;  %v2757_v0 = vrot.slane %v2638_v12, 1  ;;  %v2999_v17 = vrot.slane %v2881_v13, 1 }
 0x2c4   : > { %v2352_v39 = vadd.f32 %v2275_v29, %v2107_v58  ;;  %v2353_v26 = vadd.f32 %v2277_v18, %v2108_v28  ;;  %v3000_v57 = vrot.slane %v2882_v41, 1  ;;  %v3126_v42 = vmul.f32 %v8107_v5, %v2396_v36 }
 0x2c5   : > { %v2756_v27 = vsel %vm1481_vm0, %v2754_v1, %v2755_v7  ;;  %v3002_v24 = vrot.slane %v2883_v59, 1  ;;  %v2758_v51 = vsel %vm1481_vm0, %v2755_v7, %v2757_v0  ;;  %v3127_v50 = vmul.f32 %v8107_v5, %v2397_v34 }
 0x2c6   : > { %v2470_v45 = vadd.f32 %v2438_v43, %v2352_v39  ;;  %v2471_v61 = vadd.f32 %v2439_v25, %v2353_v26  ;;  %v3001_v3 = vsel %vm1481_vm0, %v2999_v17, %v3000_v57  ;;  %v3128_v40 = vmul.f32 %v8107_v5, %v2398_v56  ;;  %v3614_v56 = vld [vmem:[#allocation2 + $0x230] sm:$0x3] }
 0x2c7   : > { %v3003_v35 = vsel %vm1481_vm0, %v3000_v57, %v3002_v24  ;;  %v3244_v36 = vrot.slane %v3126_v42, 2  ;;  %v3245_v43 = vrot.slane %v3127_v50, 2  ;;  %v3371_v46 = vmul.f32 %v8122_v11, %v2514_v23 }
 0x2c8   : > { %v2588_v19 = vadd.f32 %v2556_v4, %v2470_v45  ;;  %v2589_v8 = vadd.f32 %v2557_v20, %v2471_v61  ;;  %v3247_v9 = vrot.slane %v3128_v40, 2  ;;  %v3372_v6 = vmul.f32 %v8122_v11, %v2515_v38  ;;  %v8530_v4 = vld [vmem:[#allocation2 + $0x2a0] sm:$0xff] }
 0x2c9   : > { %v3373_v34 = vmul.f32 %v8122_v11, %v2516_v53  ;;  %v3654_v5 = vmul.f32 %v8139_v14, %v8514_v30  ;;  %v3246_v31 = vsel %vm1972_vm1, %v3244_v36, %v3245_v43  ;;  %v3489_v21 = vrot.slane %v3371_v46, 2  ;;  %v3732_v53 = vld [vmem:[#allocation2 + $0x278] sm:$0x3] }
 0x2ca   : > { %v2833_v55 = vadd.f32 %v2756_v27, %v2588_v19  ;;  %v2834_v44 = vadd.f32 %v2758_v51, %v2589_v8  ;;  %v3248_v37 = vsel %vm1972_vm1, %v3245_v43, %v3247_v9  ;;  %v3490_v29 = vrot.slane %v3372_v6, 2  ;;  %v8557_v19 = vld [vmem:[%s5951_s9 + $0x18] sm:$0xff]  }
 0x2cb   : > { %v3492_v38 = vrot.slane %v3373_v34, 2  ;;  %v3655_v25 = vmul.f32 %v8139_v14, %v8519_v52  ;;  %v3772_v20 = vmul.f32 %v8273_v63, %v8524_v16  ;;  %v3773_v2 = vmul.f32 %v8273_v63, %v8530_v4 }
 0x2cc   : > { %v3078_v23 = vadd.f32 %v3001_v3, %v2833_v55  ;;  %v3079_v22 = vadd.f32 %v3003_v35, %v2834_v44  ;;  %v3491_v11 = vsel %vm1972_vm1, %v3489_v21, %v3490_v29  ;;  %v3852_v58 = vmul.f32 %v8283_v54, %v8514_v30  ;;  %v5002_v44 = vpop.f32.mrf.mxu2 }
 0x2cd   : > { %v3493_v15 = vsel %vm1972_vm1, %v3490_v29, %v3492_v38  ;;  %v3853_v14 = vmul.f32 %v8283_v54, %v8519_v52  ;;  %v3854_v12 = vmul.f32 %v8283_v54, %v3614_v56  ;;  %v4097_v13 = vmul.f32 %v8294_v62, %v8524_v16 }
 0x2ce   : > { %v3323_v28 = vadd.f32 %v3246_v31, %v3078_v23  ;;  %v3324_v18 = vadd.f32 %v3248_v37, %v3079_v22  ;;  %v3970_v1 = vrot.slane %v3852_v58, 1  ;;  %v4098_v41 = vmul.f32 %v8294_v62, %v8530_v4 }
 0x2cf   : > { %v3971_v7 = vrot.slane %v3853_v14, 1  ;;  %v4099_v59 = vmul.f32 %v8294_v62, %v3732_v53  ;;  %v3973_v0 = vrot.slane %v3854_v12, 1  ;;  %v4215_v17 = vrot.slane %v4097_v13, 1  ;;  %v9551_v14 = vld [vmem:[#allocation30_spill] sm:$0xff] }
 0x2d0   : > { %v3568_v39 = vadd.f32 %v3491_v11, %v3323_v28  ;;  %v3569_v26 = vadd.f32 %v3493_v15, %v3324_v18  ;;  %v4216_v57 = vrot.slane %v4098_v41, 1  ;;  %v4342_v42 = vmul.f32 %v8304_v48, %v8514_v30  ;;  %v9548_v28 = vld [vmem:[#allocation9_spill] sm:$0xff]  ;;  %v9550_v15 = vld [vmem:[#allocation28_spill] sm:$0xff]  ;;  %v9554_v41 = vld [vmem:[#allocation19_spill] sm:$0xff] }
 0x2d1   : > { %v3972_v27 = vsel %vm1481_vm0, %v3970_v1, %v3971_v7  ;;  %v4218_v24 = vrot.slane %v4099_v59, 1  ;;  %v3974_v51 = vsel %vm1481_vm0, %v3971_v7, %v3973_v0  ;;  %v4343_v50 = vmul.f32 %v8304_v48, %v8519_v52  ;;  %v9552_v1 = vld [vmem:[#allocation58_spill] sm:$0xff] }
 0x2d2   : > { %v3686_v45 = vadd.f32 %v3654_v5, %v3568_v39  ;;  %v3687_v61 = vadd.f32 %v3655_v25, %v3569_v26  ;;  %v4217_v3 = vsel %vm1481_vm0, %v4215_v17, %v4216_v57  ;;  %v4344_v40 = vmul.f32 %v8304_v48, %v3614_v56  ;;  %v9556_v17 = vld [vmem:[#allocation55_spill] sm:$0xff] }
 0x2d3   : > { %v4219_v36 = vsel %vm1481_vm0, %v4216_v57, %v4218_v24  ;;  %v4460_v43 = vrot.slane %v4342_v42, 2  ;;  %v4461_v9 = vrot.slane %v4343_v50, 2  ;;  %v4587_v6 = vmul.f32 %v8319_v60, %v8524_v16  ;;  %v9557_v42 = vld [vmem:[#allocation16_spill] sm:$0xff]  ;;  %v9560_v24 = vld [vmem:[#allocation57_spill] sm:$0xff] }
 0x2d4   : > { %v3804_v8 = vadd.f32 %v3772_v20, %v3686_v45  ;;  %v3805_v35 = vadd.f32 %v3773_v2, %v3687_v61  ;;  %v4463_v46 = vrot.slane %v4344_v40, 2  ;;  %v4588_v55 = vmul.f32 %v8319_v60, %v8530_v4  ;;  %v9546_v2 = vld [vmem:[#allocation56_spill] sm:$0xff] }
 0x2d5   : > { %v4589_v31 = vmul.f32 %v8319_v60, %v3732_v53  ;;  %v4900_v37 = vunpack.c.l.bf16 %v8557_v19  ;;  %v4462_v21 = vsel %vm1972_vm1, %v4460_v43, %v4461_v9  ;;  %v4705_v23 = vrot.slane %v4587_v6, 2 }
 0x2d6   : > { %v4049_v34 = vadd.f32 %v3972_v27, %v3804_v8  ;;  %v4050_v5 = vadd.f32 %v3974_v51, %v3805_v35  ;;  %v4464_v29 = vsel %vm1972_vm1, %v4461_v9, %v4463_v46  ;;  %v4706_v22 = vrot.slane %v4588_v55, 2  ;;  %v9564_v8 = vld [vmem:[#allocation18_spill] sm:$0xff] }
 0x2d7   : > { %v4708_v25 = vrot.slane %v4589_v31, 2  ;;  %v5003_v11 = vadd.f32 %v8177_v10, %v5002_v44  ;;  %v9547_v58 = vrot.slane %v9546_v2, 1  ;;  %v9549_v18 = vrot.slane %v9548_v28, 1  ;;  %v9569_v31 = vld [vmem:[#allocation22_spill] sm:$0xff] }
 0x2d8   : > { %v4294_v38 = vadd.f32 %v4217_v3, %v4049_v34  ;;  %v4295_v56 = vadd.f32 %v4219_v36, %v4050_v5  ;;  %v4707_v20 = vsel %vm1972_vm1, %v4705_v23, %v4706_v22  ;;  %v1619_v12 = vadd.f32 %v9551_v14, %v9550_v15  ;;  %v9562_v3 = vld [vmem:[#allocation20_spill] sm:$0xff]  ;;  %v9567_v34 = vld [vmem:[#allocation59_spill] sm:$0xff] }
 0x2d9   : > { %v1544_v53 = vsel %vm1481_vm0, %v9549_v18, %v9547_v58  ;;  %v9553_v13 = vrot.slane %v9552_v1, 1  ;;  %v9555_v39 = vrot.slane %v9554_v41, 1  ;;  %v4709_v10 = vsel %vm1972_vm1, %v4706_v22, %v4708_v25  ;;  %v2401_v58 = vld [vmem:[#allocation2 + $0x230] sm:$0x3] }
 0x2da   : > { %v4539_v7 = vadd.f32 %v4462_v21, %v4294_v38  ;;  %v4540_v59 = vadd.f32 %v4464_v29, %v4295_v56  ;;  %v5073_v0 = vadd.f32 %v5003_v11, %v4900_v37  ;;  %v1618_v57 = vadd.f32 %v1544_v53, %v9556_v17  ;;  %v9571_v29 = vld [vmem:[#allocation29_spill] sm:$0xff]  ;;  %v8612_v56 = vld [vmem:[%s9209_s3 + $0x6] ss:$0 sm:$0xff]  ;;  %v8624_v53 = vld [vmem:[%s9209_s3 + $0x7] ss:$0 sm:$0xff] }
 0x2db   : > { %v1789_v26 = vsel %vm1481_vm0, %v9555_v39, %v9553_v13  ;;  %v9558_v45 = vrot.slane %v9557_v42, 1  ;;  %v9559_v61 = vmov %v9553_v13  ;;  %v9561_v51 = vrot.slane %v9560_v24, 2  ;;  %v8643_v17 = vld [vmem:[%s9209_s3 + $0x9] ss:$0 sm:$0xff] }
 0x2dc   : > { %v9563_v50 = vrot.slane %v9562_v3, 2  ;;  %v9565_v35 = vrot.slane %v9564_v8, 2  ;;  %v4784_v9 = vadd.f32 %v4707_v20, %v4539_v7  ;;  %v4785_v46 = vadd.f32 %v4709_v10, %v4540_v59 }
 0x2dd   : > { %v1791_v27 = vsel %vm1481_vm0, %v9559_v61, %v9558_v45  ;;  %v9566_v36 = vmov %v9561_v51  ;;  %v5105_v6 = vmax.f32 %v5073_v0, 0.0  ;;  %v1863_v44 = vadd.f32 %v1789_v26, %v1618_v57  ;;  %v2519_v26 = vld [vmem:[#allocation2 + $0x278] sm:$0x3] }
 0x2de   : > { %v2035_v40 = vsel %vm1972_vm1, %v9563_v50, %v9561_v51  ;;  %v2037_v43 = vsel %vm1972_vm1, %v9566_v36, %v9565_v35  ;;  %v1864_v55 = vadd.f32 %v1791_v27, %v1619_v12  ;;  %v9568_v5 = vrot.slane %v9567_v34, 2  ;;  %v8633_v12 = vld [vmem:[%s9209_s3 + $0x8] ss:$0 sm:$0xff]  ;;  %v8654_v36 = vld [vmem:[%s9209_s3 + $0xa] ss:$0 sm:$0xff] }
 0x2df   : > { %v9570_v37 = vrot.slane %v9569_v31, 2  ;;  %v9572_v23 = vrot.slane %v9571_v29, 2  ;;  %v2440_v25 = vmul.f32 %v8612_v56, %v8514_v30  ;;  %v4820_v11 = vadd.f32 %v8350_v33, %v4784_v9  ;;  %5137 = vst [vmem:[%s8211_s18 + $0x30] sm:$0xff] %v5105_v6 }
 0x2e0   : > { %v9573_v22 = vmov %v9568_v5  ;;  %v4821_v20 = vadd.f32 %v8350_v33, %v4785_v46  ;;  %v2110_v2 = vadd.f32 %v2037_v43, %v1864_v55  ;;  %v2441_v28 = vmul.f32 %v8612_v56, %v8519_v52 }
 0x2e1   : > { %v2280_v21 = vsel %vm1972_vm1, %v9570_v37, %v9568_v5  ;;  %v2282_v38 = vsel %vm1972_vm1, %v9573_v22, %v9572_v23  ;;  %v2109_v18 = vadd.f32 %v2035_v40, %v1863_v44  ;;  %v2558_v15 = vmul.f32 %v8624_v53, %v8524_v16 }
 0x2e2   : > { %v2559_v14 = vmul.f32 %v8624_v53, %v8530_v4  ;;  %v2639_v1 = vmul.f32 %v8633_v12, %v8514_v30  ;;  %v4852_v13 = vmax.f32 %v4820_v11, 0.0  ;;  %v4853_v41 = vmax.f32 %v4821_v20, 0.0  ;;  %v8674_v11 = vld [vmem:[#allocation2 + $0x328] sm:$0xff] }
 0x2e3   : > { %v2355_v39 = vadd.f32 %v2282_v38, %v2110_v2  ;;  %v2640_v7 = vmul.f32 %v8633_v12, %v8519_v52  ;;  %v2354_v59 = vadd.f32 %v2280_v21, %v2109_v18  ;;  %v2641_v10 = vmul.f32 %v8633_v12, %v2401_v58  ;;  %v8682_v18 = vld [vmem:[%s9209_s3 + $0xc] ss:$0 sm:$0xff] }
 0x2e4   : > { %v2759_v0 = vrot.slane %v2639_v1, 1  ;;  %v2884_v57 = vmul.f32 %v8643_v17, %v8524_v16  ;;  %v4873_v42 = vpack.c.bf16 %v4853_v41, %v4852_v13  ;;  %v2885_v27 = vmul.f32 %v8643_v17, %v8530_v4  ;;  %v3617_v13 = vld [vmem:[#allocation2 + $0x1c8] sm:$0x3] }
 0x2e5   : > { %v2473_v45 = vadd.f32 %v2441_v28, %v2355_v39  ;;  %v2760_v61 = vrot.slane %v2640_v7, 1  ;;  %v2472_v24 = vadd.f32 %v2440_v25, %v2354_v59  ;;  %v2762_v51 = vrot.slane %v2641_v10, 1  ;;  %v8677_v28 = vld [vmem:[#allocation2 + $0x290] sm:$0xff]  ;;  %v8689_v39 = vld [vmem:[#allocation2 + $0xe8] sm:$0xff]  ;;  %v5004_v7 = vpop.f32.mrf.mxu2 }
 0x2e6   : > { %v2886_v3 = vmul.f32 %v8643_v17, %v2519_v26  ;;  %v3004_v50 = vrot.slane %v2884_v57, 1  ;;  %5041 = vmatmul.bf16.gmra.mxu2 %v4873_v42  ;;  %v3005_v35 = vrot.slane %v2885_v27, 1  ;;  %v3129_v43 = vmul.f32 %v8654_v36, %v8514_v30  ;;  %v8667_v30 = vld [vmem:[%s9209_s3 + $0xb] ss:$0 sm:$0xff] }
 0x2e7   : > { %v2591_v40 = vadd.f32 %v2559_v14, %v2473_v45  ;;  %v2761_v8 = vsel %vm1481_vm0, %v2759_v0, %v2760_v61  ;;  %v2590_v9 = vadd.f32 %v2558_v15, %v2472_v24  ;;  %v2763_v46 = vsel %vm1481_vm0, %v2760_v61, %v2762_v51  ;;  %v3735_v0 = vld [vmem:[#allocation2 + $0x1b0] sm:$0x3] }
 0x2e8   : > { %v3007_v6 = vrot.slane %v2886_v3, 1  ;;  %v3130_v55 = vmul.f32 %v8654_v36, %v8519_v52  ;;  %v3006_v34 = vsel %vm1481_vm0, %v3004_v50, %v3005_v35  ;;  %v3131_v5 = vmul.f32 %v8654_v36, %v2401_v58 }
 0x2e9   : > { %v2836_v44 = vadd.f32 %v2763_v46, %v2591_v40  ;;  %v3249_v31 = vrot.slane %v3129_v43, 2  ;;  %v2835_v37 = vadd.f32 %v2761_v8, %v2590_v9  ;;  %v3374_v23 = vmul.f32 %v8667_v30, %v8524_v16 }
 0x2ea   : > { %v3008_v21 = vsel %vm1481_vm0, %v3005_v35, %v3007_v6  ;;  %v3250_v29 = vrot.slane %v3130_v55, 2  ;;  %v3252_v52 = vrot.slane %v3131_v5, 2  ;;  %v3375_v38 = vmul.f32 %v8667_v30, %v8530_v4 }
 0x2eb   : > { %v3081_v22 = vadd.f32 %v3008_v21, %v2836_v44  ;;  %v3376_v25 = vmul.f32 %v8667_v30, %v2519_v26  ;;  %v3080_v20 = vadd.f32 %v3006_v34, %v2835_v37  ;;  %v3494_v58 = vrot.slane %v3374_v23, 2  ;;  %v8691_v26 = vld [vmem:[#allocation2 + $0x240] sm:$0xff] }
 0x2ec   : > { %v3251_v2 = vsel %vm1972_vm1, %v3249_v31, %v3250_v29  ;;  %v3656_v16 = vmul.f32 %v8682_v18, %v8674_v11  ;;  %v3253_v15 = vsel %vm1972_vm1, %v3250_v29, %v3252_v52  ;;  %v3495_v14 = vrot.slane %v3375_v38, 2 }
 0x2ed   : > { %v3497_v1 = vrot.slane %v3376_v25, 2  ;;  %v3657_v41 = vmul.f32 %v8682_v18, %v8677_v28  ;;  %v3325_v59 = vadd.f32 %v3251_v2, %v3080_v20  ;;  %v3326_v10 = vadd.f32 %v3253_v15, %v3081_v22 }
 0x2ee   : > { %v3774_v57 = vmul.f32 %v8273_v63, %v8689_v39  ;;  %v3775_v42 = vmul.f32 %v8273_v63, %v8691_v26  ;;  %v3496_v45 = vsel %vm1972_vm1, %v3494_v58, %v3495_v14  ;;  %v3855_v27 = vmul.f32 %v8283_v54, %v8674_v11 }
 0x2ef   : > { %v3498_v61 = vsel %vm1972_vm1, %v3495_v14, %v3497_v1  ;;  %v3856_v24 = vmul.f32 %v8283_v54, %v8677_v28  ;;  %v3570_v51 = vadd.f32 %v3496_v45, %v3325_v59  ;;  %v3857_v50 = vmul.f32 %v8283_v54, %v3617_v13  ;;  %v8725_v1 = vld [vmem:[%s5951_s9 + $0x20] sm:$0xff]  }
 0x2f0   : > { %v3571_v3 = vadd.f32 %v3498_v61, %v3326_v10  ;;  %v4100_v40 = vmul.f32 %v8294_v62, %v8689_v39  ;;  %v3975_v8 = vrot.slane %v3855_v27, 1  ;;  %v4101_v63 = vmul.f32 %v8294_v62, %v8691_v26  ;;  %v8732_v61 = vld [vmem:[%s9212_s6] ss:$0 sm:$0xff] }
 0x2f1   : > { %v3976_v35 = vrot.slane %v3856_v24, 1  ;;  %v4102_v43 = vmul.f32 %v8294_v62, %v3735_v0  ;;  %v3688_v9 = vadd.f32 %v3656_v16, %v3570_v51  ;;  %v3978_v6 = vrot.slane %v3857_v50, 1 }
 0x2f2   : > { %v3689_v46 = vadd.f32 %v3657_v41, %v3571_v3  ;;  %v4220_v55 = vrot.slane %v4100_v40, 1  ;;  %v4221_v34 = vrot.slane %v4101_v63, 1  ;;  %v4345_v54 = vmul.f32 %v8304_v48, %v8674_v11  ;;  %v5007_v41 = vpop.f32.mrf.mxu2  ;;  %v8742_v40 = vld [vmem:[%s9209_s3] ss:$0 sm:$0xff] }
 0x2f3   : > { %v3977_v44 = vsel %vm1481_vm0, %v3975_v8, %v3976_v35  ;;  %v4223_v5 = vrot.slane %v4102_v43, 1  ;;  %v3806_v31 = vadd.f32 %v3774_v57, %v3688_v9  ;;  %v3979_v21 = vsel %vm1481_vm0, %v3976_v35, %v3978_v6  ;;  %v5665_v8 = vld [vmem:[#allocation2 + $0x1a8] sm:$0xff]  ;;  %v8748_v9 = vld [vmem:[%s9209_s3 + $0x1] ss:$0 sm:$0xff] }
 0x2f4   : > { %v3807_v37 = vadd.f32 %v3775_v42, %v3689_v46  ;;  %v4346_v29 = vmul.f32 %v8304_v48, %v8677_v28  ;;  %v4222_v62 = vsel %vm1481_vm0, %v4220_v55, %v4221_v34  ;;  %v4347_v22 = vmul.f32 %v8304_v48, %v3617_v13  ;;  %v9574_v55 = vld [vmem:[#allocation6_spill] sm:$0xff] }
 0x2f5   : > { %v4224_v23 = vsel %vm1481_vm0, %v4221_v34, %v4223_v5  ;;  %v4465_v52 = vrot.slane %v4345_v54, 2  ;;  %v4051_v38 = vadd.f32 %v3977_v44, %v3806_v31  ;;  %v4590_v2 = vmul.f32 %v8319_v60, %v8689_v39  ;;  %v9575_v44 = vld [vmem:[#allocation23_spill] sm:$0xff]  ;;  %v9576_v5 = vld [vmem:[#allocation13_spill] sm:$0xff] }
 0x2f6   : > { %v4052_v25 = vadd.f32 %v3979_v21, %v3807_v37  ;;  %v4466_v20 = vrot.slane %v4346_v29, 2  ;;  %v4468_v58 = vrot.slane %v4347_v22, 2  ;;  %v4591_v16 = vmul.f32 %v8319_v60, %v8691_v26  ;;  %v9578_v31 = vld [vmem:[#allocation7_spill] sm:$0xff]  ;;  %v9580_v29 = vld [vmem:[#allocation24_spill] sm:$0xff] }
 0x2f7   : > { %v4592_v15 = vmul.f32 %v8319_v60, %v3735_v0  ;;  %v4901_v14 = vunpack.c.h.bf16 %v8557_v19  ;;  %v4296_v59 = vadd.f32 %v4222_v62, %v4051_v38  ;;  %v4710_v10 = vrot.slane %v4590_v2, 2 }
 0x2f8   : > { %v4297_v48 = vadd.f32 %v4224_v23, %v4052_v25  ;;  %v4467_v13 = vsel %vm1972_vm1, %v4465_v52, %v4466_v20  ;;  %v4469_v57 = vsel %vm1972_vm1, %v4466_v20, %v4468_v58  ;;  %v4711_v42 = vrot.slane %v4591_v16, 2  ;;  %v5667_v16 = vld [vmem:[#allocation2 + $0xb0] sm:$0xff] }
 0x2f9   : > { %v4713_v45 = vrot.slane %v4592_v15, 2  ;;  %v5005_v60 = vadd.f32 %v8732_v61, %v5004_v7  ;;  %v4541_v19 = vadd.f32 %v4467_v13, %v4296_v59  ;;  %v4902_v27 = vunpack.c.l.bf16 %v8725_v1  ;;  %v5668_v13 = vld [vmem:[#allocation2 + $0x28] sm:$0xff] }
 0x2fa   : > { %v4542_v0 = vadd.f32 %v4469_v57, %v4297_v48  ;;  %v5008_v24 = vadd.f32 %v8732_v61, %v5007_v41  ;;  %v4712_v51 = vsel %vm1972_vm1, %v4710_v10, %v4711_v42  ;;  %v1258_v7 = vmul.f32 %v5665_v8, %v8742_v40 }
 0x2fb   : > { %v4714_v3 = vsel %vm1972_vm1, %v4711_v42, %v4713_v45  ;;  %v5074_v50 = vadd.f32 %v5005_v60, %v4901_v14  ;;  %v4786_v35 = vadd.f32 %v4712_v51, %v4541_v19  ;;  %v1343_v46 = vmul.f32 %v8748_v9, %v8530_v4 }
 0x2fc   : > { %v4787_v63 = vadd.f32 %v4714_v3, %v4542_v0  ;;  %v5075_v43 = vadd.f32 %v5008_v24, %v4902_v27  ;;  %v1374_v34 = vadd.f32 %v9575_v44, %v9574_v55  ;;  %v9577_v54 = vrot.slane %v9576_v5, 1  ;;  %v9583_v24 = vld [vmem:[#allocation10_spill] sm:$0xff] }
 0x2fd   : > { %v5106_v6 = vmax.f32 %v5074_v50, 0.0  ;;  %v9579_v37 = vrot.slane %v9578_v31, 1  ;;  %v9581_v62 = vrot.slane %v9580_v29, 1  ;;  %v4822_v52 = vadd.f32 %v8350_v33, %v4786_v35  ;;  %v9585_v50 = vld [vmem:[#allocation21_spill] sm:$0xff] }
 0x2fe   : > { %v9582_v23 = vmov %v9577_v54  ;;  %v4823_v38 = vadd.f32 %v8350_v33, %v4787_v63  ;;  %v5107_v25 = vmax.f32 %v5075_v43, 0.0  ;;  %v1375_v20 = vadd.f32 %v1343_v46, %v1258_v7  ;;  %v9587_v63 = vld [vmem:[#allocation25_spill] sm:$0xff] }
 0x2ff   : > { %v1549_v21 = vsel %vm1481_vm0, %v9579_v37, %v9577_v54  ;;  %v1551_v22 = vsel %vm1481_vm0, %v9582_v23, %v9581_v62  ;;  %5138 = vst [vmem:[%s8211_s18 + $0x38] sm:$0xff] %v5106_v6  ;;  %v1671_v58 = vmul.f32 %v8357_v32, %v8530_v4  ;;  %v1915_v15 = vmul.f32 %v5667_v16, %v8472_v49  ;;  %v5669_v32 = vld [vmem:[#allocation2 + $0x278] sm:$0x3]  ;;  %v2522_v54 = vld [vmem:[#allocation2 + $0x1b0] sm:$0x3] }
 0x300   : > { %v1620_v2 = vadd.f32 %v1549_v21, %v1374_v34  ;;  %v1916_v14 = vmul.f32 %v5665_v8, %v8472_v49  ;;  %v4854_v41 = vmax.f32 %v4822_v52, 0.0  ;;  %v4855_v59 = vmax.f32 %v4823_v38, 0.0  ;;  %5139 = vst [vmem:[%s8211_s18 + $0x40] sm:$0xff] %v5107_v25  ;;  %v2404_v34 = vld [vmem:[#allocation2 + $0x1c8] sm:$0x3] }
 0x301   : > { %v1621_v48 = vadd.f32 %v1551_v22, %v1375_v20  ;;  %v2161_v10 = vmul.f32 %v5668_v13, %v8483_v47  ;;  %v1793_v33 = vrot.slane %v1671_v58, 1  ;;  %v2038_v57 = vrot.slane %v1915_v15, 2 }
 0x302   : > { %v2039_v42 = vrot.slane %v1916_v14, 2  ;;  %v2162_v45 = vmul.f32 %v8483_v47, %v8530_v4  ;;  %v4874_v60 = vpack.c.bf16 %v4855_v59, %v4854_v41  ;;  %v2163_v19 = vmul.f32 %v5669_v32, %v8483_v47 }
 0x303   : > { %v2283_v0 = vrot.slane %v2161_v10, 2  ;;  %v2442_v27 = vmul.f32 %v8612_v56, %v8674_v11  ;;  %v9584_v51 = vrot.slane %v9583_v24, 1  ;;  %v9586_v8 = vrot.slane %v9585_v50, 1 }
 0x304   : > { %v2040_v35 = vsel %vm1972_vm1, %v2038_v57, %v2039_v42  ;;  %v9588_v4 = vrot.slane %v9587_v63, 2  ;;  %5046 = vmatmul.bf16.vlgmr.msra.gmra.mxu3 %v4874_v60  ;;  %v2284_v55 = vrot.slane %v2162_v45, 2  ;;  %v2286_v44 = vrot.slane %v2163_v19, 2 }
 0x305   : > { %v1794_v3 = vsel %vm1481_vm0, %v9584_v51, %v1793_v33  ;;  %v1796_v7 = vsel %vm1481_vm0, %v1793_v33, %v9586_v8  ;;  %v2443_v5 = vmul.f32 %v8612_v56, %v8677_v28  ;;  %v2560_v31 = vmul.f32 %v8624_v53, %v8689_v39 }
 0x306   : > { %v2042_v43 = vsel %vm1972_vm1, %v2039_v42, %v9588_v4  ;;  %v1865_v46 = vadd.f32 %v1794_v3, %v1620_v2  ;;  %v1866_v6 = vadd.f32 %v1796_v7, %v1621_v48  ;;  %v2561_v37 = vmul.f32 %v8624_v53, %v8691_v26  ;;  %v8822_v4 = vld [vmem:[#allocation2 + $0x298] sm:$0xff] }
 0x307   : > { %v2642_v21 = vmul.f32 %v8633_v12, %v8674_v11  ;;  %v2285_v23 = vsel %vm1972_vm1, %v2283_v0, %v2284_v55  ;;  %v2287_v22 = vsel %vm1972_vm1, %v2284_v55, %v2286_v44  ;;  %v2643_v52 = vmul.f32 %v8633_v12, %v8677_v28 }
 0x308   : > { %v2111_v29 = vadd.f32 %v2040_v35, %v1865_v46  ;;  %v2112_v62 = vadd.f32 %v2042_v43, %v1866_v6  ;;  %v2644_v38 = vmul.f32 %v8633_v12, %v2404_v34  ;;  %v2887_v20 = vmul.f32 %v8643_v17, %v8689_v39  ;;  %v8824_v43 = vld [vmem:[#allocation2 + $0x170] sm:$0xff] }
 0x309   : > { %v2764_v25 = vrot.slane %v2642_v21, 1  ;;  %v2888_v16 = vmul.f32 %v8643_v17, %v8691_v26  ;;  %v2889_v15 = vmul.f32 %v8643_v17, %v2522_v54  ;;  %v2765_v14 = vrot.slane %v2643_v52, 1  ;;  %v8826_v46 = vld [vmem:[#allocation2 + $0x2f0] sm:$0xff] }
 0x30a   : > { %v2356_v2 = vadd.f32 %v2285_v23, %v2111_v29  ;;  %v2357_v58 = vadd.f32 %v2287_v22, %v2112_v62  ;;  %v2767_v41 = vrot.slane %v2644_v38, 1  ;;  %v3009_v59 = vrot.slane %v2887_v20, 1  ;;  %v3620_v21 = vld [vmem:[#allocation2 + $0x310] sm:$0x3]  ;;  %v3738_v62 = vld [vmem:[#allocation2 + $0x88] sm:$0x3] }
 0x30b   : > { %v3132_v48 = vmul.f32 %v8654_v36, %v8674_v11  ;;  %v3010_v33 = vrot.slane %v2888_v16, 1  ;;  %v3012_v57 = vrot.slane %v2889_v15, 1  ;;  %v2766_v42 = vsel %vm1481_vm0, %v2764_v25, %v2765_v14  ;;  %v8815_v11 = vld [vmem:[#allocation2 + $0x1c0] sm:$0xff]  ;;  %v8837_v23 = vld [vmem:[%s9209_s3 + $0xd] ss:$0 sm:$0xff] }
 0x30c   : > { %v2474_v13 = vadd.f32 %v2442_v27, %v2356_v2  ;;  %v2475_v10 = vadd.f32 %v2443_v5, %v2357_v58  ;;  %v2768_v45 = vsel %vm1481_vm0, %v2765_v14, %v2767_v41  ;;  %v3133_v60 = vmul.f32 %v8654_v36, %v8677_v28  ;;  %v8846_v38 = vld [vmem:[%s9209_s3 + $0xe] ss:$0 sm:$0xff] }
 0x30d   : > { %v3134_v32 = vmul.f32 %v8654_v36, %v2404_v34  ;;  %v3011_v24 = vsel %vm1481_vm0, %v3009_v59, %v3010_v33  ;;  %v3013_v51 = vsel %vm1481_vm0, %v3010_v33, %v3012_v57  ;;  %v3254_v27 = vrot.slane %v3132_v48, 2  ;;  %v8858_v59 = vld [vmem:[%s9209_s3 + $0xf] ss:$0 sm:$0xff] }
 0x30e   : > { %v2592_v19 = vadd.f32 %v2560_v31, %v2474_v13  ;;  %v2593_v0 = vadd.f32 %v2561_v37, %v2475_v10  ;;  %v3255_v3 = vrot.slane %v3133_v60, 2  ;;  %v3377_v8 = vmul.f32 %v8667_v30, %v8689_v39 }
 0x30f   : > { %v3257_v50 = vrot.slane %v3134_v32, 2  ;;  %v3378_v28 = vmul.f32 %v8667_v30, %v8691_v26  ;;  %v3379_v63 = vmul.f32 %v8667_v30, %v2522_v54  ;;  %v3658_v39 = vmul.f32 %v8682_v18, %v8815_v11  ;;  %v5009_v54 = vpop.f32.mrf.mxu2  ;;  %v8868_v32 = vld [vmem:[%s9209_s3 + $0x10] ss:$0 sm:$0xff] }
 0x310   : > { %v2837_v7 = vadd.f32 %v2766_v42, %v2592_v19  ;;  %v2838_v35 = vadd.f32 %v2768_v45, %v2593_v0  ;;  %v3256_v6 = vsel %vm1972_vm1, %v3254_v27, %v3255_v3  ;;  %v3499_v44 = vrot.slane %v3377_v8, 2 }
 0x311   : > { %v3258_v55 = vsel %vm1972_vm1, %v3255_v3, %v3257_v50  ;;  %v3500_v31 = vrot.slane %v3378_v28, 2  ;;  %v3502_v37 = vrot.slane %v3379_v63, 2  ;;  %v3659_v29 = vmul.f32 %v8682_v18, %v8822_v4 }
 0x312   : > { %v3082_v34 = vadd.f32 %v3011_v24, %v2837_v7  ;;  %v3083_v5 = vadd.f32 %v3013_v51, %v2838_v35  ;;  %v3776_v22 = vmul.f32 %v8837_v23, %v8824_v43  ;;  %v3777_v52 = vmul.f32 %v8837_v23, %v8826_v46 }
 0x313   : > { %v3858_v25 = vmul.f32 %v8846_v38, %v8815_v11  ;;  %v3501_v58 = vsel %vm1972_vm1, %v3499_v44, %v3500_v31  ;;  %v3503_v16 = vsel %vm1972_vm1, %v3500_v31, %v3502_v37  ;;  %v3859_v15 = vmul.f32 %v8846_v38, %v8822_v4 }
 0x314   : > { %v3327_v20 = vadd.f32 %v3256_v6, %v3082_v34  ;;  %v3328_v2 = vadd.f32 %v3258_v55, %v3083_v5  ;;  %v3860_v14 = vmul.f32 %v8846_v38, %v3620_v21  ;;  %v4103_v48 = vmul.f32 %v8858_v59, %v8824_v43  ;;  %v8882_v34 = vld [vmem:[%s9209_s3 + $0x11] ss:$0 sm:$0xff] }
 0x315   : > { %v3980_v41 = vrot.slane %v3858_v25, 1  ;;  %v4104_v33 = vmul.f32 %v8858_v59, %v8826_v46  ;;  %v4105_v57 = vmul.f32 %v8858_v59, %v3738_v62  ;;  %v3981_v42 = vrot.slane %v3859_v15, 1 }
 0x316   : > { %v3572_v13 = vadd.f32 %v3501_v58, %v3327_v20  ;;  %v3573_v10 = vadd.f32 %v3503_v16, %v3328_v2  ;;  %v3983_v45 = vrot.slane %v3860_v14, 1  ;;  %v4225_v60 = vrot.slane %v4103_v48, 1 }
 0x317   : > { %v4348_v19 = vmul.f32 %v8868_v32, %v8815_v11  ;;  %v4226_v51 = vrot.slane %v4104_v33, 1  ;;  %v4228_v27 = vrot.slane %v4105_v57, 1  ;;  %v3982_v3 = vsel %vm1481_vm0, %v3980_v41, %v3981_v42 }
 0x318   : > { %v3690_v0 = vadd.f32 %v3658_v39, %v3572_v13  ;;  %v3691_v24 = vadd.f32 %v3659_v29, %v3573_v10  ;;  %v3984_v50 = vsel %vm1481_vm0, %v3981_v42, %v3983_v45  ;;  %v4349_v8 = vmul.f32 %v8868_v32, %v8822_v4  ;;  %v5675_v10 = vld [vmem:[#allocation2 + $0x290] sm:$0xff] }
 0x319   : > { %v4350_v7 = vmul.f32 %v8868_v32, %v3620_v21  ;;  %v4227_v63 = vsel %vm1481_vm0, %v4225_v60, %v4226_v51  ;;  %v4229_v6 = vsel %vm1481_vm0, %v4226_v51, %v4228_v27  ;;  %v4470_v55 = vrot.slane %v4348_v19, 2 }
 0x31a   : > { %v3808_v35 = vadd.f32 %v3776_v22, %v3690_v0  ;;  %v3809_v28 = vadd.f32 %v3777_v52, %v3691_v24  ;;  %v4471_v44 = vrot.slane %v4349_v8, 2  ;;  %v4593_v5 = vmul.f32 %v8882_v34, %v8824_v43  ;;  %v8890_v22 = vld [vmem:[%s5951_s9 + $0x28] sm:$0xff]   ;;  %v5012_v52 = vpop.f32.mrf.mxu2  ;;  %v9589_v24 = vld [vmem:[#allocation14_spill] sm:$0xff] }
 0x31b   : > { %v4473_v39 = vrot.slane %v4350_v7, 2  ;;  %v4594_v21 = vmul.f32 %v8882_v34, %v8826_v46  ;;  %v4595_v29 = vmul.f32 %v8882_v34, %v3738_v62  ;;  %v4903_v58 = vunpack.c.h.bf16 %v8725_v1  ;;  %v9593_v7 = vld [vmem:[#allocation15_spill] sm:$0xff] }
 0x31c   : > { %v4053_v31 = vadd.f32 %v3982_v3, %v3808_v35  ;;  %v4054_v37 = vadd.f32 %v3984_v50, %v3809_v28  ;;  %v4472_v25 = vsel %vm1972_vm1, %v4470_v55, %v4471_v44  ;;  %v4715_v2 = vrot.slane %v4593_v5, 2  ;;  %v9591_v50 = vld [vmem:[#allocation33_spill] sm:$0xff] }
 0x31d   : > { %v4474_v20 = vsel %vm1972_vm1, %v4471_v44, %v4473_v39  ;;  %v4716_v14 = vrot.slane %v4594_v21, 2  ;;  %v4718_v41 = vrot.slane %v4595_v29, 2  ;;  %v5010_v48 = vadd.f32 %v8732_v61, %v5009_v54  ;;  %v9590_v54 = vld [vmem:[#allocation17_spill] sm:$0xff]  ;;  %v8918_v21 = vld [vmem:[%s9210_s4] ss:$0 sm:$0xff] }
 0x31e   : > { %v4298_v16 = vadd.f32 %v4227_v63, %v4053_v31  ;;  %v4299_v15 = vadd.f32 %v4229_v6, %v4054_v37  ;;  %v4904_v13 = vunpack.c.l.bf16 %v8890_v22  ;;  %v5013_v62 = vadd.f32 %v8732_v61, %v5012_v52  ;;  %v9595_v63 = vld [vmem:[#allocation39_spill] sm:$0xff] }
 0x31f   : > { %v1260_v33 = vmul.f32 %v5675_v10, %v8742_v40  ;;  %v4717_v45 = vsel %vm1972_vm1, %v4715_v2, %v4716_v14  ;;  %v4719_v60 = vsel %vm1972_vm1, %v4716_v14, %v4718_v41  ;;  %v5076_v1 = vadd.f32 %v5010_v48, %v4903_v58  ;;  %v5678_v2 = vld [vmem:[#allocation2 + $0x328] sm:$0xff] }
 0x320   : > { %v4543_v57 = vadd.f32 %v4472_v25, %v4298_v16  ;;  %v4544_v42 = vadd.f32 %v4474_v20, %v4299_v15  ;;  %v5077_v19 = vadd.f32 %v5013_v62, %v4904_v13  ;;  %v1345_v0 = vmul.f32 %v8748_v9, %v8691_v26  ;;  %v8925_v25 = vld [vmem:[%s9209_s3 + $0x3] ss:$0 sm:$0xff]  ;;  %v5679_v14 = vld [vmem:[#allocation2 + $0xe8] sm:$0xff] }
 0x321   : > { %v1376_v51 = vadd.f32 %v9590_v54, %v9589_v24  ;;  %v9592_v8 = vrot.slane %v9591_v50, 1  ;;  %v9594_v35 = vrot.slane %v9593_v7, 1  ;;  %v9596_v6 = vrot.slane %v9595_v63, 1  ;;  %v9598_v24 = vld [vmem:[#allocation31_spill] sm:$0xff]  ;;  %v9602_v7 = vld [vmem:[#allocation40_spill] sm:$0xff] }
 0x322   : > { %v4788_v27 = vadd.f32 %v4717_v45, %v4543_v57  ;;  %v4789_v3 = vadd.f32 %v4719_v60, %v4544_v42  ;;  %v5108_v39 = vmax.f32 %v5076_v1, 0.0  ;;  %v5109_v5 = vmax.f32 %v5077_v19, 0.0  ;;  %v5680_v45 = vld [vmem:[#allocation2 + $0x1b0] sm:$0x3]  ;;  %v9600_v54 = vld [vmem:[#allocation35_spill] sm:$0xff] }
 0x323   : > { %v1554_v28 = vsel %vm1481_vm0, %v9594_v35, %v9592_v8  ;;  %v9597_v55 = vmov %v9592_v8  ;;  %v1377_v31 = vadd.f32 %v1345_v0, %v1260_v33  ;;  %v1674_v20 = vmul.f32 %v8925_v25, %v8691_v26 }
 0x324   : > { %v1556_v44 = vsel %vm1481_vm0, %v9597_v55, %v9596_v6  ;;  %v1622_v37 = vadd.f32 %v1554_v28, %v1376_v51  ;;  %v4824_v29 = vadd.f32 %v8918_v21, %v4788_v27  ;;  %v4825_v52 = vadd.f32 %v8918_v21, %v4789_v3  ;;  %5140 = vst [vmem:[%s8211_s18 + $0x48] sm:$0xff] %v5108_v39  ;;  %v2407_v28 = vld [vmem:[#allocation2 + $0x310] sm:$0x3] }
 0x325   : > { %v1918_v58 = vmul.f32 %v5678_v2, %v8472_v49  ;;  %v1623_v16 = vadd.f32 %v1556_v44, %v1377_v31  ;;  %v1919_v15 = vmul.f32 %v5675_v10, %v8472_v49  ;;  %v2164_v41 = vmul.f32 %v5679_v14, %v8483_v47  ;;  %5141 = vst [vmem:[%s8211_s18 + $0x50] sm:$0xff] %v5109_v5  ;;  %v2525_v31 = vld [vmem:[#allocation2 + $0x88] sm:$0x3] }
 0x326   : > { %v2165_v48 = vmul.f32 %v8483_v47, %v8691_v26  ;;  %v4856_v13 = vmax.f32 %v4824_v29, 0.0  ;;  %v4857_v62 = vmax.f32 %v4825_v52, 0.0  ;;  %v1798_v33 = vrot.slane %v1674_v20, 1 }
 0x327   : > { %v2043_v57 = vrot.slane %v1918_v58, 2  ;;  %v2044_v42 = vrot.slane %v1919_v15, 2  ;;  %v2166_v60 = vmul.f32 %v5680_v45, %v8483_v47  ;;  %v2288_v1 = vrot.slane %v2164_v41, 2 }
 0x328   : > { %v2289_v19 = vrot.slane %v2165_v48, 2  ;;  %v4875_v0 = vpack.c.bf16 %v4857_v62, %v4856_v13  ;;  %v9599_v49 = vrot.slane %v9598_v24, 1  ;;  %v9601_v51 = vrot.slane %v9600_v54, 1 }
 0x329   : > { %v2444_v27 = vmul.f32 %v8612_v56, %v8815_v11  ;;  %v2045_v8 = vsel %vm1972_vm1, %v2043_v57, %v2044_v42  ;;  %v9603_v47 = vrot.slane %v9602_v7, 2  ;;  %v2291_v6 = vrot.slane %v2166_v60, 2 }
 0x32a   : > { %v1799_v10 = vsel %vm1481_vm0, %v9599_v49, %v1798_v33  ;;  %v1801_v26 = vsel %vm1481_vm0, %v1798_v33, %v9601_v51  ;;  %5051 = vmatmul.bf16.gmra.mxu3 %v4875_v0  ;;  %v2290_v63 = vsel %vm1972_vm1, %v2288_v1, %v2289_v19  ;;  %v2445_v55 = vmul.f32 %v8612_v56, %v8822_v4 }
 0x32b   : > { %v1867_v3 = vadd.f32 %v1799_v10, %v1622_v37  ;;  %v1868_v50 = vadd.f32 %v1801_v26, %v1623_v16  ;;  %v2047_v35 = vsel %vm1972_vm1, %v2044_v42, %v9603_v47  ;;  %v2562_v44 = vmul.f32 %v8624_v53, %v8824_v43  ;;  %v8975_v26 = vld [vmem:[#allocation2 + $0x2b8] sm:$0xff] }
 0x32c   : > { %v2563_v37 = vmul.f32 %v8624_v53, %v8826_v46  ;;  %v2645_v29 = vmul.f32 %v8633_v12, %v8815_v11  ;;  %v2292_v52 = vsel %vm1972_vm1, %v2289_v19, %v2291_v6  ;;  %v2646_v20 = vmul.f32 %v8633_v12, %v8822_v4 }
 0x32d   : > { %v2113_v39 = vadd.f32 %v2045_v8, %v1867_v3  ;;  %v2114_v5 = vadd.f32 %v2047_v35, %v1868_v50  ;;  %v2647_v2 = vmul.f32 %v8633_v12, %v2407_v28  ;;  %v2890_v58 = vmul.f32 %v8643_v17, %v8824_v43  ;;  %v8982_v35 = vld [vmem:[#allocation2 + $0x228] sm:$0xff] }
 0x32e   : > { %v2769_v14 = vrot.slane %v2645_v29, 1  ;;  %v2891_v41 = vmul.f32 %v8643_v17, %v8826_v46  ;;  %v2770_v48 = vrot.slane %v2646_v20, 1  ;;  %v2892_v62 = vmul.f32 %v8643_v17, %v2525_v31  ;;  %v5014_v20 = vpop.f32.mrf.mxu2 }
 0x32f   : > { %v2358_v16 = vadd.f32 %v2290_v63, %v2113_v39  ;;  %v2359_v15 = vadd.f32 %v2292_v52, %v2114_v5  ;;  %v2772_v13 = vrot.slane %v2647_v2, 1  ;;  %v3014_v33 = vrot.slane %v2890_v58, 1  ;;  %v8984_v63 = vld [vmem:[#allocation2 + $0x288] sm:$0xff]  ;;  %v3623_v52 = vld [vmem:[#allocation2 + $0x178] sm:$0x3] }
 0x330   : > { %v3015_v45 = vrot.slane %v2891_v41, 1  ;;  %v3135_v60 = vmul.f32 %v8654_v36, %v8815_v11  ;;  %v2771_v1 = vsel %vm1481_vm0, %v2769_v14, %v2770_v48  ;;  %v3017_v0 = vrot.slane %v2892_v62, 1 }
 0x331   : > { %v2476_v57 = vadd.f32 %v2444_v27, %v2358_v16  ;;  %v2477_v42 = vadd.f32 %v2445_v55, %v2359_v15  ;;  %v2773_v19 = vsel %vm1481_vm0, %v2770_v48, %v2772_v13  ;;  %v3136_v24 = vmul.f32 %v8654_v36, %v8822_v4  ;;  %v3741_v48 = vld [vmem:[#allocation2 + $0x1f0] sm:$0x3] }
 0x332   : > { %v3016_v54 = vsel %vm1481_vm0, %v3014_v33, %v3015_v45  ;;  %v3137_v51 = vmul.f32 %v8654_v36, %v2407_v28  ;;  %v3018_v27 = vsel %vm1481_vm0, %v3015_v45, %v3017_v0  ;;  %v3259_v3 = vrot.slane %v3135_v60, 2  ;;  %v8986_v28 = vld [vmem:[#allocation2 + $0x168] sm:$0xff] }
 0x333   : > { %v2594_v49 = vadd.f32 %v2562_v44, %v2476_v57  ;;  %v2595_v10 = vadd.f32 %v2563_v37, %v2477_v42  ;;  %v3260_v11 = vrot.slane %v3136_v24, 2  ;;  %v3380_v50 = vmul.f32 %v8667_v30, %v8824_v43 }
 0x334   : > { %v3262_v47 = vrot.slane %v3137_v51, 2  ;;  %v3381_v4 = vmul.f32 %v8667_v30, %v8826_v46  ;;  %v3382_v55 = vmul.f32 %v8667_v30, %v2525_v31  ;;  %v3660_v43 = vmul.f32 %v8682_v18, %v8975_v26 }
 0x335   : > { %v2839_v8 = vadd.f32 %v2771_v1, %v2594_v49  ;;  %v2840_v7 = vadd.f32 %v2773_v19, %v2595_v10  ;;  %v3261_v6 = vsel %vm1972_vm1, %v3259_v3, %v3260_v11  ;;  %v3504_v44 = vrot.slane %v3380_v50, 2 }
 0x336   : > { %v3263_v37 = vsel %vm1972_vm1, %v3260_v11, %v3262_v47  ;;  %v3505_v29 = vrot.slane %v3381_v4, 2  ;;  %v3507_v2 = vrot.slane %v3382_v55, 2  ;;  %v3661_v58 = vmul.f32 %v8682_v18, %v8982_v35 }
 0x337   : > { %v3084_v39 = vadd.f32 %v3016_v54, %v2839_v8  ;;  %v3085_v5 = vadd.f32 %v3018_v27, %v2840_v7  ;;  %v3778_v16 = vmul.f32 %v8837_v23, %v8984_v63  ;;  %v3779_v31 = vmul.f32 %v8837_v23, %v8986_v28 }
 0x338   : > { %v3506_v41 = vsel %vm1972_vm1, %v3504_v44, %v3505_v29  ;;  %v3861_v13 = vmul.f32 %v8846_v38, %v8975_v26  ;;  %v3508_v62 = vsel %vm1972_vm1, %v3505_v29, %v3507_v2  ;;  %v3862_v33 = vmul.f32 %v8846_v38, %v8982_v35 }
 0x339   : > { %v3329_v15 = vadd.f32 %v3261_v6, %v3084_v39  ;;  %v3330_v14 = vadd.f32 %v3263_v37, %v3085_v5  ;;  %v3863_v57 = vmul.f32 %v8846_v38, %v3623_v52  ;;  %v4106_v42 = vmul.f32 %v8858_v59, %v8984_v63 }
 0x33a   : > { %v3985_v1 = vrot.slane %v3861_v13, 1  ;;  %v4107_v19 = vmul.f32 %v8858_v59, %v8986_v28  ;;  %v3986_v0 = vrot.slane %v3862_v33, 1  ;;  %v4108_v49 = vmul.f32 %v8858_v59, %v3741_v48 }
 0x33b   : > { %v3574_v45 = vadd.f32 %v3506_v41, %v3329_v15  ;;  %v3575_v60 = vadd.f32 %v3508_v62, %v3330_v14  ;;  %v3988_v24 = vrot.slane %v3863_v57, 1  ;;  %v4230_v10 = vrot.slane %v4106_v42, 1  ;;  %v9025_v15 = vld [vmem:[%s5951_s9 + $0x30] sm:$0xff]  }
 0x33c   : > { %v4231_v27 = vrot.slane %v4107_v19, 1  ;;  %v4351_v3 = vmul.f32 %v8868_v32, %v8975_v26  ;;  %v3987_v11 = vsel %vm1481_vm0, %v3985_v1, %v3986_v0  ;;  %v4233_v8 = vrot.slane %v4108_v49, 1 }
 0x33d   : > { %v3692_v54 = vadd.f32 %v3660_v43, %v3574_v45  ;;  %v3693_v51 = vadd.f32 %v3661_v58, %v3575_v60  ;;  %v3989_v50 = vsel %vm1481_vm0, %v3986_v0, %v3988_v24  ;;  %v4352_v7 = vmul.f32 %v8868_v32, %v8982_v35 }
 0x33e   : > { %v4232_v6 = vsel %vm1481_vm0, %v4230_v10, %v4231_v27  ;;  %v4353_v55 = vmul.f32 %v8868_v32, %v3623_v52  ;;  %v4234_v44 = vsel %vm1481_vm0, %v4231_v27, %v4233_v8  ;;  %v4475_v43 = vrot.slane %v4351_v3, 2  ;;  %v9604_v3 = vld [vmem:[#allocation38_spill] sm:$0xff] }
 0x33f   : > { %v3810_v47 = vadd.f32 %v3778_v16, %v3692_v54  ;;  %v3811_v4 = vadd.f32 %v3779_v31, %v3693_v51  ;;  %v4476_v39 = vrot.slane %v4352_v7, 2  ;;  %v4596_v5 = vmul.f32 %v8882_v34, %v8984_v63  ;;  %v5017_v16 = vpop.f32.mrf.mxu2  ;;  %v9606_v8 = vld [vmem:[#allocation26_spill] sm:$0xff] }
 0x340   : > { %v4478_v2 = vrot.slane %v4353_v55, 2  ;;  %v4597_v58 = vmul.f32 %v8882_v34, %v8986_v28  ;;  %v4598_v52 = vmul.f32 %v8882_v34, %v3741_v48  ;;  %v4905_v41 = vunpack.c.h.bf16 %v8890_v22  ;;  %v5681_v48 = vld [vmem:[#allocation2 + $0x298] sm:$0xff] }
 0x341   : > { %v4055_v37 = vadd.f32 %v3987_v11, %v3810_v47  ;;  %v4056_v29 = vadd.f32 %v3989_v50, %v3811_v4  ;;  %v4477_v31 = vsel %vm1972_vm1, %v4475_v43, %v4476_v39  ;;  %v4720_v14 = vrot.slane %v4596_v5, 2  ;;  %v9605_v11 = vld [vmem:[#allocation53_spill] sm:$0xff]  ;;  %v9610_v43 = vld [vmem:[#allocation8_spill] sm:$0xff] }
 0x342   : > { %v4479_v33 = vsel %vm1972_vm1, %v4476_v39, %v4478_v2  ;;  %v4721_v57 = vrot.slane %v4597_v58, 2  ;;  %v4723_v42 = vrot.slane %v4598_v52, 2  ;;  %v5015_v45 = vadd.f32 %v8732_v61, %v5014_v20  ;;  %v9608_v47 = vld [vmem:[#allocation37_spill] sm:$0xff]  ;;  %v5683_v52 = vld [vmem:[#allocation2 + $0x1c0] sm:$0xff] }
 0x343   : > { %v4300_v13 = vadd.f32 %v4232_v6, %v4055_v37  ;;  %v4301_v62 = vadd.f32 %v4234_v44, %v4056_v29  ;;  %v4906_v60 = vunpack.c.l.bf16 %v9025_v15  ;;  %v5018_v1 = vadd.f32 %v8732_v61, %v5017_v16 }
 0x344   : > { %v4722_v24 = vsel %vm1972_vm1, %v4720_v14, %v4721_v57  ;;  %v1262_v49 = vmul.f32 %v5681_v48, %v8742_v40  ;;  %v4724_v22 = vsel %vm1972_vm1, %v4721_v57, %v4723_v42  ;;  %v5078_v10 = vadd.f32 %v5015_v45, %v4905_v41 }
 0x345   : > { %v4545_v19 = vadd.f32 %v4477_v31, %v4300_v13  ;;  %v4546_v0 = vadd.f32 %v4479_v33, %v4301_v62  ;;  %v5079_v54 = vadd.f32 %v5018_v1, %v4906_v60  ;;  %v1347_v51 = vmul.f32 %v8748_v9, %v8826_v46  ;;  %v5682_v31 = vld [vmem:[%s9209_s3 + $0x4] ss:$0 sm:$0xff]  ;;  %v5684_v13 = vld [vmem:[%s9209_s3 + $0x5] ss:$0 sm:$0xff]  ;;  %v5685_v62 = vld [vmem:[#allocation2 + $0x170] sm:$0xff] }
 0x346   : > { %v1378_v50 = vadd.f32 %v9605_v11, %v9604_v3  ;;  %v9607_v7 = vrot.slane %v9606_v8, 1  ;;  %v9609_v4 = vrot.slane %v9608_v47, 1  ;;  %v5110_v40 = vmax.f32 %v5078_v10, 0.0  ;;  %v2410_v47 = vld [vmem:[#allocation2 + $0x178] sm:$0x3] }
 0x347   : > { %v4790_v20 = vadd.f32 %v4722_v24, %v4545_v19  ;;  %v4791_v27 = vadd.f32 %v4724_v22, %v4546_v0  ;;  %v5111_v55 = vmax.f32 %v5079_v54, 0.0  ;;  %v1379_v44 = vadd.f32 %v1347_v51, %v1262_v49  ;;  %v5686_v19 = vld [vmem:[#allocation2 + $0x88] sm:$0x3]  ;;  %v9613_v22 = vld [vmem:[#allocation52_spill] sm:$0xff] }
 0x348   : > { %v1559_v6 = vsel %vm1481_vm0, %v9609_v4, %v9607_v7  ;;  %v9611_v39 = vrot.slane %v9610_v43, 1  ;;  %v9612_v5 = vmov %v9607_v7  ;;  %v1677_v58 = vmul.f32 %v8925_v25, %v8826_v46  ;;  %5142 = vst [vmem:[%s8211_s18 + $0x58] sm:$0xff] %v5110_v40  ;;  %v9615_v54 = vld [vmem:[#allocation48_spill] sm:$0xff] }
 0x349   : > { %v4826_v37 = vadd.f32 %v8918_v21, %v4790_v20  ;;  %v4827_v29 = vadd.f32 %v8918_v21, %v4791_v27  ;;  %v1624_v2 = vadd.f32 %v1559_v6, %v1378_v50  ;;  %v1921_v14 = vmul.f32 %v5683_v52, %v5682_v31  ;;  %5143 = vst [vmem:[%s8211_s18 + $0x60] sm:$0xff] %v5111_v55 }
 0x34a   : > { %v1561_v9 = vsel %vm1481_vm0, %v9612_v5, %v9611_v39  ;;  %v1922_v41 = vmul.f32 %v5682_v31, %v5681_v48  ;;  %v2167_v33 = vmul.f32 %v5685_v62, %v5684_v13  ;;  %v1803_v45 = vrot.slane %v1677_v58, 1  ;;  %v2528_v39 = vld [vmem:[#allocation2 + $0x1f0] sm:$0x3] }
 0x34b   : > { %v1625_v16 = vadd.f32 %v1561_v9, %v1379_v44  ;;  %v4858_v57 = vmax.f32 %v4826_v37, 0.0  ;;  %v4859_v42 = vmax.f32 %v4827_v29, 0.0  ;;  %v2168_v25 = vmul.f32 %v5684_v13, %v8826_v46  ;;  %v9617_v46 = vld [vmem:[#allocation11_spill] sm:$0xff] }
 0x34c   : > { %v2048_v60 = vrot.slane %v1921_v14, 2  ;;  %v2049_v1 = vrot.slane %v1922_v41, 2  ;;  %v2169_v0 = vmul.f32 %v5686_v19, %v5684_v13  ;;  %v2293_v24 = vrot.slane %v2167_v33, 2  ;;  %v9093_v14 = vpop.f32.mrf.mxu2 }
 0x34d   : > { %v4876_v49 = vpack.c.bf16 %v4859_v42, %v4858_v57  ;;  %v9614_v48 = vrot.slane %v9613_v22, 1  ;;  %v9616_v51 = vrot.slane %v9615_v54, 1  ;;  %v2294_v27 = vrot.slane %v2168_v25, 2 }
 0x34e   : > { %v2050_v50 = vsel %vm1972_vm1, %v2048_v60, %v2049_v1  ;;  %v9618_v8 = vrot.slane %v9617_v46, 2  ;;  %v2296_v6 = vrot.slane %v2169_v0, 2  ;;  %v2446_v40 = vmul.f32 %v8612_v56, %v8975_v26 }
 0x34f   : > { %v1804_v10 = vsel %vm1481_vm0, %v9614_v48, %v1803_v45  ;;  %v1806_v20 = vsel %vm1481_vm0, %v1803_v45, %v9616_v51  ;;  %5056 = vmatmul.bf16.gmra.mxu3 %v4876_v49  ;;  %v2295_v4 = vsel %vm1972_vm1, %v2293_v24, %v2294_v27  ;;  %v2447_v55 = vmul.f32 %v8612_v56, %v8982_v35 }
 0x350   : > { %v1869_v3 = vadd.f32 %v1804_v10, %v1624_v2  ;;  %v1870_v11 = vadd.f32 %v1806_v20, %v1625_v16  ;;  %v2052_v7 = vsel %vm1972_vm1, %v2049_v1, %v9618_v8  ;;  %v2564_v5 = vmul.f32 %v8624_v53, %v8984_v63 }
 0x351   : > { %v2565_v9 = vmul.f32 %v8624_v53, %v8986_v28  ;;  %v2297_v37 = vsel %vm1972_vm1, %v2294_v27, %v2296_v6  ;;  %v2648_v29 = vmul.f32 %v8633_v12, %v8975_v26  ;;  %v2649_v2 = vmul.f32 %v8633_v12, %v8982_v35 }
 0x352   : > { %v2115_v44 = vadd.f32 %v2050_v50, %v1869_v3  ;;  %v2116_v43 = vadd.f32 %v2052_v7, %v1870_v11  ;;  %v2650_v58 = vmul.f32 %v8633_v12, %v2410_v47  ;;  %v2893_v31 = vmul.f32 %v8643_v17, %v8984_v63  ;;  %v3626_v50 = vld [vmem:[#allocation2 + $0x208] sm:$0x3] }
 0x353   : > { %v2894_v52 = vmul.f32 %v8643_v17, %v8986_v28  ;;  %v2774_v53 = vrot.slane %v2648_v29, 1  ;;  %v2775_v41 = vrot.slane %v2649_v2, 1  ;;  %v2895_v62 = vmul.f32 %v8643_v17, %v2528_v39 }
 0x354   : > { %v2360_v56 = vadd.f32 %v2295_v4, %v2115_v44  ;;  %v2361_v16 = vadd.f32 %v2297_v37, %v2116_v43  ;;  %v2777_v13 = vrot.slane %v2650_v58, 1  ;;  %v3019_v42 = vrot.slane %v2893_v31, 1  ;;  %v5022_v4 = vpop.f32.mrf.mxu2 }
 0x355   : > { %v3020_v45 = vrot.slane %v2894_v52, 1  ;;  %v2776_v12 = vsel %vm1481_vm0, %v2774_v53, %v2775_v41  ;;  %v3022_v60 = vrot.slane %v2895_v62, 1  ;;  %v3138_v1 = vmul.f32 %v8654_v36, %v8975_v26 }
 0x356   : > { %v2478_v33 = vadd.f32 %v2446_v40, %v2360_v56  ;;  %v2479_v57 = vadd.f32 %v2447_v55, %v2361_v16  ;;  %v2778_v25 = vsel %vm1481_vm0, %v2775_v41, %v2777_v13  ;;  %v3139_v49 = vmul.f32 %v8654_v36, %v8982_v35  ;;  %v5687_v35 = vld [vmem:[#allocation2 + $0x2b0] sm:$0xff] }
 0x357   : > { %v3021_v24 = vsel %vm1481_vm0, %v3019_v42, %v3020_v45  ;;  %v3023_v17 = vsel %vm1481_vm0, %v3020_v45, %v3022_v60  ;;  %v3140_v22 = vmul.f32 %v8654_v36, %v2410_v47  ;;  %v3264_v48 = vrot.slane %v3138_v1, 2 }
 0x358   : > { %v2596_v19 = vadd.f32 %v2564_v5, %v2478_v33  ;;  %v2597_v0 = vadd.f32 %v2565_v9, %v2479_v57  ;;  %v3383_v10 = vmul.f32 %v8667_v30, %v8984_v63  ;;  %v3265_v20 = vrot.slane %v3139_v49, 2  ;;  %v3744_v63 = vld [vmem:[#allocation2 + $0x210] sm:$0x3]  ;;  %v291_v33 = vld [vmem:[%s5951_s9 + $0x38] sm:$0xff]  }
 0x359   : > { %v3384_v26 = vmul.f32 %v8667_v30, %v8986_v28  ;;  %v3267_v27 = vrot.slane %v3140_v22, 2  ;;  %v3385_v3 = vmul.f32 %v8667_v30, %v2528_v39  ;;  %v3662_v46 = vmul.f32 %v5687_v35, %v8682_v18 }
 0x35a   : > { %v2841_v54 = vadd.f32 %v2776_v12, %v2596_v19  ;;  %v2842_v51 = vadd.f32 %v2778_v25, %v2597_v0  ;;  %v3509_v11 = vrot.slane %v3383_v10, 2  ;;  %v3266_v7 = vsel %vm1972_vm1, %v3264_v48, %v3265_v20 }
 0x35b   : > { %v3510_v47 = vrot.slane %v3384_v26, 2  ;;  %v3268_v6 = vsel %vm1972_vm1, %v3265_v20, %v3267_v27  ;;  %v3512_v40 = vrot.slane %v3385_v3, 2  ;;  %v3780_v28 = vmul.f32 %v5687_v35, %v8837_v23 }
 0x35c   : > { %v3086_v8 = vadd.f32 %v3021_v24, %v2841_v54  ;;  %v3087_v36 = vadd.f32 %v3023_v17, %v2842_v51  ;;  %v3864_v55 = vmul.f32 %v5687_v35, %v8846_v38  ;;  %v3866_v18 = vmul.f32 %v8846_v38, %v3626_v50  ;;  %v5024_v12 = vpop.f32.mrf.mxu2 }
 0x35d   : > { %v3511_v43 = vsel %vm1972_vm1, %v3509_v11, %v3510_v47  ;;  %v3513_v39 = vsel %vm1972_vm1, %v3510_v47, %v3512_v40  ;;  %v4109_v9 = vmul.f32 %v5687_v35, %v8858_v59  ;;  %v4111_v37 = vmul.f32 %v8858_v59, %v3744_v63 }
 0x35e   : > { %v3331_v30 = vadd.f32 %v3266_v7, %v3086_v8  ;;  %v3332_v44 = vadd.f32 %v3268_v6, %v3087_v36  ;;  %v3990_v5 = vrot.slane %v3864_v55, 1  ;;  %v3993_v58 = vrot.slane %v3866_v18, 1 }
 0x35f   : > { %v4354_v23 = vmul.f32 %v5687_v35, %v8868_v32  ;;  %v4235_v56 = vrot.slane %v4109_v9, 1  ;;  %v4238_v16 = vrot.slane %v4111_v37, 1  ;;  %v4356_v31 = vmul.f32 %v8868_v32, %v3626_v50 }
 0x360   : > { %v3576_v29 = vadd.f32 %v3511_v43, %v3331_v30  ;;  %v3577_v2 = vadd.f32 %v3513_v39, %v3332_v44  ;;  %v3994_v41 = vsel %vm1481_vm0, %v3990_v5, %v3993_v58  ;;  %v4599_v62 = vmul.f32 %v5687_v35, %v8882_v34  ;;  %v295_v39 = vld [vmem:[%s5951_s9 + $0x48] sm:$0xff]  }
 0x361   : > { %v4480_v38 = vrot.slane %v4354_v23, 2  ;;  %v4483_v13 = vrot.slane %v4356_v31, 2  ;;  %v4239_v42 = vsel %vm1481_vm0, %v4235_v56, %v4238_v16  ;;  %v4601_v45 = vmul.f32 %v8882_v34, %v3744_v63  ;;  %v297_v31 = vld [vmem:[%s5951_s9 + $0x50] sm:$0xff]  }
 0x362   : > { %v3694_v52 = vadd.f32 %v3662_v46, %v3576_v29  ;;  %v3695_v53 = vadd.f32 %v3662_v46, %v3577_v2  ;;  %v4725_v25 = vrot.slane %v4599_v62, 2  ;;  %v4907_v32 = vunpack.c.h.bf16 %v9025_v15  ;;  %v293_v15 = vld [vmem:[%s5951_s9 + $0x40] sm:$0xff]  }
 0x363   : > { %v5020_v60 = vadd.f32 %v8732_v61, %v9093_v14  ;;  %v4728_v0 = vrot.slane %v4601_v45, 2  ;;  %v4908_v24 = vunpack.c.l.bf16 %v291_v33  ;;  %v4484_v49 = vsel %vm1972_vm1, %v4480_v38, %v4483_v13 }
 0x364   : > { %v3812_v57 = vadd.f32 %v3780_v28, %v3694_v52  ;;  %v3813_v59 = vadd.f32 %v3780_v28, %v3695_v53  ;;  %v5023_v22 = vadd.f32 %v8732_v61, %v5022_v4  ;;  %v4909_v48 = vunpack.c.h.bf16 %v291_v33  ;;  %v5027_v36 = vpop.f32.mrf.mxu2  ;;  %v301_v53 = vld [vmem:[%s5951_s9 + $0x60] sm:$0xff]  }
 0x365   : > { %v5080_v17 = vadd.f32 %v5020_v60, %v4907_v32  ;;  %v5025_v54 = vadd.f32 %v8732_v61, %v5024_v12  ;;  %v4729_v51 = vsel %vm1972_vm1, %v4725_v25, %v4728_v0  ;;  %v4910_v50 = vunpack.c.l.bf16 %v293_v15 }
 0x366   : > { %v4057_v1 = vadd.f32 %v3990_v5, %v3812_v57  ;;  %v4058_v19 = vadd.f32 %v3994_v41, %v3813_v59  ;;  %v5081_v20 = vadd.f32 %v5023_v22, %v4908_v24  ;;  %v5028_v7 = vadd.f32 %v8732_v61, %v5027_v36 }
 0x367   : > { %v5112_v14 = vmax.f32 %v5080_v17, 0.0  ;;  %v5082_v3 = vadd.f32 %v5025_v54, %v4909_v48  ;;  %v4911_v30 = vunpack.c.h.bf16 %v293_v15  ;;  %v4913_v58 = vunpack.c.h.bf16 %v295_v39 }
 0x368   : > { %v4302_v34 = vadd.f32 %v4235_v56, %v4057_v1  ;;  %v4303_v10 = vadd.f32 %v4239_v42, %v4058_v19  ;;  %v5113_v11 = vmax.f32 %v5081_v20, 0.0  ;;  %v5083_v4 = vadd.f32 %v5028_v7, %v4910_v50  ;;  %v5688_v1 = vld [vmem:[%s9212_s6] ss:$0 sm:$0xff] }
 0x369   : > { %5144 = vst [vmem:[%s8211_s18 + $0x68] sm:$0xff] %v5112_v14  ;;  %v5114_v8 = vmax.f32 %v5082_v3, 0.0  ;;  %v4918_v13 = vunpack.c.l.bf16 %v301_v53  ;;  %v4919_v60 = vunpack.c.h.bf16 %v301_v53 }
 0x36a   : > { %v4547_v26 = vadd.f32 %v4480_v38, %v4302_v34  ;;  %v4548_v27 = vadd.f32 %v4484_v49, %v4303_v10  ;;  %5145 = vst [vmem:[%s8211_s18 + $0x70] sm:$0xff] %v5113_v11  ;;  %v5115_v28 = vmax.f32 %v5083_v4, 0.0  ;;  %v4914_v38 = vunpack.c.l.bf16 %v297_v31  ;;  %v299_v49 = vld [vmem:[%s5951_s9 + $0x58] sm:$0xff]   ;;  %v303_v11 = vld [vmem:[%s5951_s9 + $0x68] sm:$0xff]  }
 0x36b   : > { %5146 = vst [vmem:[%s8211_s18 + $0x78] sm:$0xff] %v5114_v8  ;;  %v4916_v34 = vunpack.c.l.bf16 %v299_v49  ;;  %v4917_v14 = vunpack.c.h.bf16 %v299_v49  ;;  %v4920_v50 = vunpack.c.l.bf16 %v303_v11  ;;  %v4921_v7 = vunpack.c.h.bf16 %v303_v11 }
 0x36c   : > { %v4792_v35 = vadd.f32 %v4725_v25, %v4547_v26  ;;  %v4793_v46 = vadd.f32 %v4729_v51, %v4548_v27  ;;  %5147 = vst [vmem:[%s8211_s18 + $0x80] sm:$0xff] %v5115_v28  ;;  %v5029_v44 = vpop.f32.mrf.mxu2  ;;  %v4915_v25 = vunpack.c.h.bf16 %v297_v31 }
 0x36d   : > { %v5030_v43 = vadd.f32 %v8732_v61, %v5029_v44 }
 0x36e   : > { %v4828_v47 = vadd.f32 %v8918_v21, %v4792_v35  ;;  %v4829_v63 = vadd.f32 %v8918_v21, %v4793_v46  ;;  %v4912_v21 = vunpack.c.l.bf16 %v295_v39 }
 0x36f   : > { %v5084_v18 = vadd.f32 %v5030_v43, %v4911_v30 }
 0x370   : > { %v4860_v6 = vmax.f32 %v4828_v47, 0.0  ;;  %v4861_v40 = vmax.f32 %v4829_v63, 0.0 }
 0x371   : > { %v5116_v5 = vmax.f32 %v5084_v18, 0.0 }
 0x372   : > { %v4877_v55 = vpack.c.bf16 %v4861_v40, %v4860_v6  ;;  %v305_v40 = vld [vmem:[%s5951_s9 + $0x70] sm:$0xff]  }
 0x373   : > { %5148 = vst [vmem:[%s8211_s18 + $0x88] sm:$0xff] %v5116_v5  ;;  %v4922_v28 = vunpack.c.l.bf16 %v305_v40  ;;  %v4923_v18 = vunpack.c.h.bf16 %v305_v40 }
 0x374   : > { %5061 = vmatmul.bf16.gmra.mxu3 %v4877_v55  ;;  %v5032_v9 = vpop.f32.mrf.mxu2 }
 0x375   : > { %v5033_v37 = vadd.f32 %v8732_v61, %v5032_v9 }
 0x377   : > { %v5085_v29 = vadd.f32 %v5033_v37, %v4912_v21  ;;  %v307_v37 = vld [vmem:[%s5951_s9 + $0x78] sm:$0xff]   ;;  %s5164_s9 = scalar_lea.sflag [#allocation4], %s269_s16 }
 0x379   : > { %v5117_v2 = vmax.f32 %v5085_v29, 0.0  ;;  %v4924_v29 = vunpack.c.l.bf16 %v307_v37 }
 0x37b   : > { %5149 = vst [vmem:[%s8211_s18 + $0x90] sm:$0xff] %v5117_v2 }
 0x37c   : > { %v5034_v23 = vpop.f32.mrf.mxu2 }
 0x37d   : > { %v5035_v56 = vadd.f32 %v8732_v61, %v5034_v23 }
 0x37f   : > { %v5086_v16 = vadd.f32 %v5035_v56, %v4913_v58 }
 0x381   : > { %v5118_v52 = vmax.f32 %v5086_v16, 0.0  ;;  %v4925_v16 = vunpack.c.h.bf16 %v307_v37 }
 0x383   : > { %5150 = vst [vmem:[%s8211_s18 + $0x98] sm:$0xff] %v5118_v52 }
 0x384   : > { %v5037_v41 = vpop.f32.mrf.mxu2 }
 0x385   : > { %v5038_v62 = vadd.f32 %v8732_v61, %v5037_v41 }
 0x387   : > { %v5047_v33 = vpop.f32.mrf.mxu3  ;;  %v5087_v59 = vadd.f32 %v5038_v62, %v4914_v38 }
 0x388   : > { %v5048_v57 = vadd.f32 %v8732_v61, %v5047_v33 }
 0x389   : > { %v5119_v45 = vmax.f32 %v5087_v59, 0.0 }
 0x38a   : > { %v5091_v42 = vadd.f32 %v5048_v57, %v4918_v13 }
 0x38b   : > { %5151 = vst [vmem:[%s8211_s18 + $0xa0] sm:$0xff] %v5119_v45 }
 0x38c   : > { %v5123_v12 = vmax.f32 %v5091_v42, 0.0  ;;  %v5039_v32 = vpop.f32.mrf.mxu2 }
 0x38d   : > { %v5040_v19 = vadd.f32 %v5688_v1, %v5039_v32 }
 0x38e   : > { %5155 = vst [vmem:[%s8211_s18 + $0xc0] sm:$0xff] %v5123_v12 }
 0x38f   : > { %v5049_v0 = vpop.f32.mrf.mxu3  ;;  %v5088_v61 = vadd.f32 %v5040_v19, %v4915_v25 }
 0x390   : > { %v5050_v24 = vadd.f32 %v5688_v1, %v5049_v0 }
 0x391   : > { %v5120_v22 = vmax.f32 %v5088_v61, 0.0 }
 0x392   : > { %v5092_v17 = vadd.f32 %v5050_v24, %v4919_v60 }
 0x393   : > { %5152 = vst [vmem:[%s8211_s18 + $0xa8] sm:$0xff] %v5120_v22 }
 0x394   : > { %v5124_v48 = vmax.f32 %v5092_v17, 0.0  ;;  %v5042_v10 = vpop.f32.mrf.mxu2 }
 0x395   : > { %v5043_v54 = vadd.f32 %v5688_v1, %v5042_v10 }
 0x396   : > { %5156 = vst [vmem:[%s8211_s18 + $0xc8] sm:$0xff] %v5124_v48 }
 0x397   : > { %v5089_v15 = vadd.f32 %v5043_v54, %v4916_v34 }
 0x399   : > { %v5121_v51 = vmax.f32 %v5089_v15, 0.0 }
 0x39b   : > { %5153 = vst [vmem:[%s8211_s18 + $0xb0] sm:$0xff] %v5121_v51 }
 0x39c   : > { %v5044_v20 = vpop.f32.mrf.mxu2 }
 0x39d   : > { %v5045_v26 = vadd.f32 %v5688_v1, %v5044_v20 }
 0x39f   : > { %v5090_v27 = vadd.f32 %v5045_v26, %v4917_v14 }
 0x3a1   : > { %v5122_v3 = vmax.f32 %v5090_v27, 0.0 }
 0x3a3   : > { %5154 = vst [vmem:[%s8211_s18 + $0xb8] sm:$0xff] %v5122_v3 }
 0x3ad   : > { %v5052_v35 = vpop.f32.mrf.mxu3 }
 0x3ae   : > { %v5053_v46 = vadd.f32 %v5688_v1, %v5052_v35 }
 0x3b0   : > { %v5093_v8 = vadd.f32 %v5053_v46, %v4920_v50 }
 0x3b2   : > { %v5125_v36 = vmax.f32 %v5093_v8, 0.0 }
 0x3b4   : > { %5157 = vst [vmem:[%s8211_s18 + $0xd0] sm:$0xff] %v5125_v36 }
 0x3b5   : > { %v5054_v47 = vpop.f32.mrf.mxu3 }
 0x3b6   : > { %v5055_v63 = vadd.f32 %v5688_v1, %v5054_v47 }
 0x3b8   : > { %v5094_v4 = vadd.f32 %v5055_v63, %v4921_v7 }
 0x3ba   : > { %v5126_v6 = vmax.f32 %v5094_v4, 0.0 }
 0x3bc   : > { %5158 = vst [vmem:[%s8211_s18 + $0xd8] sm:$0xff] %v5126_v6 }
 0x3d2   : > { %v5057_v55 = vpop.f32.mrf.mxu3 }
 0x3d3   : > { %v5058_v30 = vadd.f32 %v5688_v1, %v5057_v55 }
 0x3d5   : > { %v5095_v44 = vadd.f32 %v5058_v30, %v4922_v28 }
 0x3d7   : > { %v5127_v43 = vmax.f32 %v5095_v44, 0.0 }
 0x3d9   : > { %5159 = vst [vmem:[%s8211_s18 + $0xe0] sm:$0xff] %v5127_v43 }
 0x3da   : > { %v5059_v39 = vpop.f32.mrf.mxu3 }
 0x3db   : > { %v5060_v5 = vadd.f32 %v5688_v1, %v5059_v39 }
 0x3dd   : > { %v5096_v21 = vadd.f32 %v5060_v5, %v4923_v18 }
 0x3df   : > { %v5128_v9 = vmax.f32 %v5096_v21, 0.0 }
 0x3e1   : > { %5160 = vst [vmem:[%s8211_s18 + $0xe8] sm:$0xff] %v5128_v9 }
 0x3f7   : > { %v5062_v2 = vpop.f32.mrf.mxu3 }
 0x3f8   : > { %v5063_v58 = vadd.f32 %v5688_v1, %v5062_v2 }
 0x3fa   : > { %v5097_v23 = vadd.f32 %v5063_v58, %v4924_v29 }
 0x3fc   : > { %v5129_v56 = vmax.f32 %v5097_v23, 0.0 }
 0x3fe   : > { %5161 = vst [vmem:[%s8211_s18 + $0xf0] sm:$0xff] %v5129_v56 }
 0x3ff   : > { %v5064_v31 = vpop.f32.mrf.mxu3 }
 0x400   : > { %v5065_v52 = vadd.f32 %v5688_v1, %v5064_v31 }
 0x402   : > { %v5098_v53 = vadd.f32 %v5065_v52, %v4925_v16 }
 0x404   : > { %v5130_v38 = vmax.f32 %v5098_v53, 0.0 }
 0x406   : > { %5162 = vst [vmem:[%s8211_s18 + $0xf8] sm:$0xff] %v5130_v38 }
 0x407   : > { %5716 = shalt.err (!%p5713_p3)
}
 0x408   : > { %s5754_s16 = smov 128   ;;  %s5755_s18 = smov 8  }
 0x409   : > { %5496 = dma.vmem_to_hbm [thread:$0]  (%p5834_p5), %s5177_s13, 4096, %s5179_s14, %s5164_s9, %s5754_s16, %s5754_s16, %s5755_s18  }
 0x40a PF: > { %p5502_p4 = scmp.ge.s32.totalorder %s5751_s27, 2  ;;  %s5193_s29 = sand.u32 1, %s5739_s24  }
 0x40b   : > { %s5194_s8 = scalar_lea.sflag [#allocation4], %s5193_s29 }
 0x40c   : > { %p5499_p7 = pnand %p5502_p4, %p5838_p6 }
 0x40e   : > { %p5500_p8 = pneg %p5499_p7 }
 0x410   : > { %5734 = dma.done.wait (%p5500_p8), %s5194_s8, 4096  }
 0x411   : > { %5736 = vsyncadd (%p5500_p8), %s5194_s8, 4294963200  ;;  %p17_p9 = scmp.ge.s32.totalorder %s5821_s30, 6   ;;  %s9619_s24 = smov %s5743_s25 }
 0x412   : > { %s9620_s25 = smov %s5747_s26  ;;  %s9621_s26 = smov %s5832_s10 }
 0x413   : > { %s9622_s27 = smov %s5821_s30  ;;  %19 = sbr.rel (!%p17_p9) target bundleno = 3 (0x3), region = 105 }
 0x418   :  { %5200 = vsyncpa [#allocation4], 1 }
 0x419   :  { %5202 = vsyncpa [#allocation4 + $0x1], 1 }

</bundles_post_ra>
